<compile_context>
chip_gen: v7x
topology: tpu7x:2x2x1
jax: 0.10.0
libtpu: 0.0.40
codegen_flags: <defaults>
</compile_context>

<pallas_src>
import numpy as np
import jax
import jax.numpy as jnp
from jax.experimental import pallas as pl
from jax.experimental.pallas import tpu as pltpu

# ---- Student config (defaults of the PyTorch module) ----
NUM_ACTIONS       = 12
PROPRIO_DIM       = 133
EXTERO_DIM        = 52
LATENT_EXTERO_DIM = 24
EXTERO_ENC_HIDDEN = (80, 60)
BELIEF_ENC_HIDDENS = (64, 64)
GATE_ENC_HIDDENS   = (64, 64)
BELIEF_STATE_DIM  = 120
GRU_NUM_LAYERS    = 2
GRU_HIDDEN        = 50
MLP_HIDDEN        = (256, 160, 128)
NUM_LEGS          = 4

LATENT_FLAT = LATENT_EXTERO_DIM * NUM_LEGS          # 96
GRU_IN0     = LATENT_FLAT + PROPRIO_DIM             # 229
PAD         = BELIEF_STATE_DIM - LATENT_FLAT        # 24 (left zero-pad of sum_with_zeropad)

# lane-dense output slab layout: [pi(12) | h1(50) | h2(50) | pad(16)]
OUT_SLAB = 128
H1_OFF   = NUM_ACTIONS                  # 12
H2_OFF   = NUM_ACTIONS + GRU_HIDDEN     # 62


# -------------------- shared math helpers (kernel + pure-JAX reference) -------
def leaky_relu(x, slope=0.01):
    return jnp.where(x > 0, x, slope * x)


def _linear(x, w, b):
    return jnp.dot(x, w, preferred_element_type=jnp.float32) + b


def _mlp(x, layers):
    n = len(layers)
    for i, (w, b) in enumerate(layers):
        x = _linear(x, w, b)
        if i < n - 1:
            x = leaky_relu(x)
    return x


def _gru_cell(x, h, wih, bih, whh, bhh, H):
    # PyTorch nn.GRUCell semantics; gate order is [r, z, n]
    gi = jnp.dot(x, wih, preferred_element_type=jnp.float32) + bih
    gh = jnp.dot(h, whh, preferred_element_type=jnp.float32) + bhh
    i_r, i_z, i_n = gi[:, :H], gi[:, H:2 * H], gi[:, 2 * H:]
    h_r, h_z, h_n = gh[:, :H], gh[:, H:2 * H], gh[:, 2 * H:]
    r = jax.nn.sigmoid(i_r + h_r)
    z = jax.nn.sigmoid(i_z + h_z)
    n = jnp.tanh(i_n + r * h_n)
    return (1.0 - z) * n + z * h


# -------------------- the Pallas kernel --------------------
def student_kernel(
    proprio_ref, extero_ref,
    # block-diagonal extero encoder: (208->320->240->120), last layer places
    # each leg at columns 24 + leg*24 of a 120-wide slab (cols 0..23 are zero).
    ee_w0, ee_b0, ee_w1, ee_b1, ee_w2, ee_b2,
    # GRU cell 0 (h0==0 path): wih split into proprio / latent120 row blocks,
    # bias_g = bih with bhh folded into the r,z parts; bhh_n kept separately.
    g0_wp, g0_wl, g0_bg, g0_bn,
    # GRU cell 1 (h0==0 path)
    g1_w, g1_bg, g1_bn,
    # to_latent_extero_attn_gate MLP (50 -> 64 -> 64 -> 120, first 24 cols zero)
    ga_w0, ga_b0, ga_w1, ga_b1, ga_w2, ga_b2,
    # belief_state_encoder MLP (50 -> 64 -> 64 -> 120)
    be_w0, be_b0, be_w1, be_b1, be_w2, be_b2,
    # to_logits MLP; first layer split into proprio / belief row blocks
    lg_w0p, lg_w0b, lg_b0, lg_w1, lg_b1, lg_w2, lg_b2,
    # action head padded to 128 output cols + h1/h2 placement matrices
    hd_w, hd_b, s1, s2,
    # single lane-dense output slab (B, 128)
    out_ref,
):
    def dot(x, w):
        return jnp.dot(x, w, preferred_element_type=jnp.float32)

    proprio = proprio_ref[...]                    # (B, 133)
    ext = extero_ref[...]                         # (B, 208) leg-major

    # ---- extero encoder (all 4 legs in one set of block-diagonal matmuls) ----
    h = leaky_relu(dot(ext, ee_w0[...]) + ee_b0[...])        # (B, 320)
    h = leaky_relu(dot(h, ee_w1[...]) + ee_b1[...])          # (B, 240)
    latent120 = dot(h, ee_w2[...]) + ee_b2[...]              # (B, 120), cols 0..23 == 0

    H = GRU_HIDDEN

    # ---- GRU cell 0 (hiddens=None -> h0 == 0, so the whh matmul vanishes) ----
    gi = dot(proprio, g0_wp[...]) + dot(latent120, g0_wl[...]) + g0_bg[...]   # (B, 150)
    r = jax.nn.sigmoid(gi[:, :H])
    z = jax.nn.sigmoid(gi[:, H:2 * H])
    n = jnp.tanh(gi[:, 2 * H:] + r * g0_bn[...])
    h1 = (1.0 - z) * n                                        # (B, 50)

    # ---- GRU cell 1 (also zero initial hidden) ----
    gi = dot(h1, g1_w[...]) + g1_bg[...]
    r = jax.nn.sigmoid(gi[:, :H])
    z = jax.nn.sigmoid(gi[:, H:2 * H])
    n = jnp.tanh(gi[:, 2 * H:] + r * g1_bn[...])
    h2 = (1.0 - z) * n                                        # (B, 50)
    gru_output = h2

    # ---- gated latent extero + belief state (sum_with_zeropad is implicit:
    #      latent120 / gate120 already live at columns 24..119) ----
    g = leaky_relu(dot(gru_output, ga_w0[...]) + ga_b0[...])
    g = leaky_relu(dot(g, ga_w1[...]) + ga_b1[...])
    gate120 = dot(g, ga_w2[...]) + ga_b2[...]                 # (B, 120)

    b_ = leaky_relu(dot(gru_output, be_w0[...]) + be_b0[...])
    b_ = leaky_relu(dot(b_, be_w1[...]) + be_b1[...])
    belief = dot(b_, be_w2[...]) + be_b2[...]                 # (B, 120)
    belief = belief + latent120 * jax.nn.sigmoid(gate120)     # full-width VPU add

    # ---- logits MLP (concat(proprio, belief) folded into split weights) ----
    x = leaky_relu(dot(proprio, lg_w0p[...]) + dot(belief, lg_w0b[...]) + lg_b0[...])
    x = leaky_relu(dot(x, lg_w1[...]) + lg_b1[...])
    logits = dot(x, lg_w2[...]) + lg_b2[...]                  # (B, 128)

    # ---- lane-dense output slab: [pi | h1 | h2 | pad] via zero-padded head
    #      weights and placement matmuls (no masked stores, no concats) ----
    slab = (dot(leaky_relu(logits), hd_w[...]) + hd_b[...]
            + dot(h1, s1[...]) + dot(h2, s2[...]))
    out_ref[...] = slab

    # TODO(synk): return_estimated_info decoders (privileged/extero decoders +
    # extero attn gate) and the Categorical action distribution are not part of
    # the default forward path and are not emitted here.


# -------------------- wrapper --------------------
def student_forward(proprio, extero, kernel_params):
    B = proprio.shape[0]
    extero_flat = extero.reshape(B, NUM_LEGS * EXTERO_DIM)    # 'b n d -> b (n d)'
    vmem = pl.BlockSpec(memory_space=pltpu.MemorySpace.VMEM)
    n_in = 2 + len(kernel_params)
    slab = pl.pallas_call(
        student_kernel,
        out_shape=jax.ShapeDtypeStruct((B, OUT_SLAB), jnp.float32),
        in_specs=[vmem] * n_in,
        out_specs=vmem,
    )(proprio, extero_flat, *kernel_params)
    pi = slab[:, :NUM_ACTIONS]
    h1 = slab[:, H1_OFF:H1_OFF + GRU_HIDDEN]
    h2 = slab[:, H2_OFF:H2_OFF + GRU_HIDDEN]
    next_hiddens = jnp.stack([h1, h2], axis=-2)               # (B, gru_layers, 50)
    return pi, next_hiddens


# -------------------- offline weight re-layout (exact zero padding) ----------
def prepare_kernel_params(p):
    f32 = jnp.float32
    H = GRU_HIDDEN

    def block_diag(w, n=NUM_LEGS):
        din, dout = w.shape
        out = jnp.zeros((n * din, n * dout), f32)
        for l in range(n):
            out = out.at[l * din:(l + 1) * din, l * dout:(l + 1) * dout].set(w)
        return out

    (ew0, eb0), (ew1, eb1), (ew2, eb2) = p['extero_enc']
    EE_W0 = block_diag(ew0)
    EE_B0 = jnp.tile(eb0, (1, NUM_LEGS))
    EE_W1 = block_diag(ew1)
    EE_B1 = jnp.tile(eb1, (1, NUM_LEGS))
    # final layer: leg l's 24 outputs land at columns PAD + l*24 of a 120 slab
    h_last = EXTERO_ENC_HIDDEN[1]
    EE_W2 = jnp.zeros((NUM_LEGS * h_last, BELIEF_STATE_DIM), f32)
    EE_B2 = jnp.zeros((1, BELIEF_STATE_DIM), f32)
    for l in range(NUM_LEGS):
        r0 = l * h_last
        c0 = PAD + l * LATENT_EXTERO_DIM
        EE_W2 = EE_W2.at[r0:r0 + h_last, c0:c0 + LATENT_EXTERO_DIM].set(ew2)
        EE_B2 = EE_B2.at[:, c0:c0 + LATENT_EXTERO_DIM].set(eb2)

    # GRU cell 0: split wih rows (proprio first, then latent), lift latent rows
    # to the 120-wide slab indexing; fold bhh into the r,z bias (valid only for
    # the h0 == 0 / hiddens=None path implemented by this kernel).
    wih, bih, whh, bhh = p['gru0']
    G0_WP = wih[:PROPRIO_DIM]
    G0_WL = jnp.zeros((BELIEF_STATE_DIM, 3 * H), f32).at[PAD:].set(wih[PROPRIO_DIM:])
    G0_BG = bih.at[:, :2 * H].add(bhh[:, :2 * H])
    G0_BN = bhh[:, 2 * H:]

    wih, bih, whh, bhh = p['gru1']
    G1_W = wih
    G1_BG = bih.at[:, :2 * H].add(bhh[:, :2 * H])
    G1_BN = bhh[:, 2 * H:]

    (gw0, gb0), (gw1, gb1), (gw2, gb2) = p['gate']
    GA_W2 = jnp.zeros((GATE_ENC_HIDDENS[1], BELIEF_STATE_DIM), f32).at[:, PAD:].set(gw2)
    GA_B2 = jnp.zeros((1, BELIEF_STATE_DIM), f32).at[:, PAD:].set(gb2)

    (bw0, bb0), (bw1, bb1), (bw2, bb2) = p['belief']

    (lw0, lb0), (lw1, lb1), (lw2, lb2) = p['logits']
    LG_W0P = lw0[:PROPRIO_DIM]
    LG_W0B = lw0[PROPRIO_DIM:]

    hw, hb = p['head']
    HD_W = jnp.zeros((MLP_HIDDEN[-1], OUT_SLAB), f32).at[:, :NUM_ACTIONS].set(hw)
    HD_B = jnp.zeros((1, OUT_SLAB), f32).at[:, :NUM_ACTIONS].set(hb)
    eye = jnp.eye(H, dtype=f32)
    S1 = jnp.zeros((H, OUT_SLAB), f32).at[:, H1_OFF:H1_OFF + H].set(eye)
    S2 = jnp.zeros((H, OUT_SLAB), f32).at[:, H2_OFF:H2_OFF + H].set(eye)

    return [
        EE_W0, EE_B0, EE_W1, EE_B1, EE_W2, EE_B2,
        G0_WP, G0_WL, G0_BG, G0_BN,
        G1_W, G1_BG, G1_BN,
        gw0, gb0, gw1, gb1, GA_W2, GA_B2,
        bw0, bb0, bw1, bb1, bw2, bb2,
        LG_W0P, LG_W0B, lb0, lw1, lb1, lw2, lb2,
        HD_W, HD_B, S1, S2,
    ]


# -------------------- deterministic parameter init --------------------
def make_params(key):
    keys = iter(jax.random.split(key, 64))

    def linear(din, dout):
        bound = 1.0 / float(np.sqrt(din))
        w = jax.random.uniform(next(keys), (din, dout), jnp.float32, -bound, bound)
        b = jax.random.uniform(next(keys), (1, dout), jnp.float32, -bound, bound)
        return w, b

    def mlp(dims):
        return [linear(din, dout) for din, dout in zip(dims[:-1], dims[1:])]

    def gru(din, dh):
        bound = 1.0 / float(np.sqrt(dh))
        wih = jax.random.uniform(next(keys), (din, 3 * dh), jnp.float32, -bound, bound)
        bih = jax.random.uniform(next(keys), (1, 3 * dh), jnp.float32, -bound, bound)
        whh = jax.random.uniform(next(keys), (dh, 3 * dh), jnp.float32, -bound, bound)
        bhh = jax.random.uniform(next(keys), (1, 3 * dh), jnp.float32, -bound, bound)
        return (wih, bih, whh, bhh)

    p = {}
    p['extero_enc'] = mlp((EXTERO_DIM, *EXTERO_ENC_HIDDEN, LATENT_EXTERO_DIM))
    p['gru0'] = gru(GRU_IN0, GRU_HIDDEN)
    p['gru1'] = gru(GRU_HIDDEN, GRU_HIDDEN)
    p['gate'] = mlp((GRU_HIDDEN, *GATE_ENC_HIDDENS, LATENT_FLAT))
    p['belief'] = mlp((GRU_HIDDEN, *BELIEF_ENC_HIDDENS, BELIEF_STATE_DIM))
    p['logits'] = mlp((PROPRIO_DIM + BELIEF_STATE_DIM, *MLP_HIDDEN))
    p['head'] = linear(MLP_HIDDEN[-1], NUM_ACTIONS)
    return p


# -------------------- pure-JAX reference (unoptimized math) --------------------
def student_ref(proprio, extero, p):
    B = proprio.shape[0]
    latent = _mlp(extero.reshape(B * NUM_LEGS, EXTERO_DIM), p['extero_enc'])
    latent = latent.reshape(B, LATENT_FLAT)
    x = jnp.concatenate([proprio, latent], axis=-1)
    h0 = jnp.zeros((B, GRU_HIDDEN), jnp.float32)
    wih, bih, whh, bhh = p['gru0']
    h1 = _gru_cell(x, h0, wih, bih, whh, bhh, GRU_HIDDEN)
    wih, bih, whh, bhh = p['gru1']
    h2 = _gru_cell(h1, h0, wih, bih, whh, bhh, GRU_HIDDEN)
    gate = _mlp(h2, p['gate'])
    gated = latent * jax.nn.sigmoid(gate)
    belief = _mlp(h2, p['belief'])
    belief = belief + jnp.pad(gated, ((0, 0), (PAD, 0)))
    bsp = jnp.concatenate([proprio, belief], axis=-1)
    logits = _mlp(bsp, p['logits'])
    w, b = p['head']
    pi = leaky_relu(logits) @ w + b
    next_hiddens = jnp.stack([h1, h2], axis=-2)
    return pi, next_hiddens


if __name__ == "__main__":
    key = jax.random.PRNGKey(0)
    kp, k1, k2 = jax.random.split(key, 3)
    params = make_params(kp)
    kernel_params = prepare_kernel_params(params)

    B = 2
    proprio = jax.random.normal(k1, (B, PROPRIO_DIM), jnp.float32)
    extero = jax.random.normal(k2, (B, NUM_LEGS, EXTERO_DIM), jnp.float32)

    pi, next_hiddens = student_forward(proprio, extero, kernel_params)
    jax.block_until_ready((pi, next_hiddens))

    assert pi.shape == (B, NUM_ACTIONS)
    assert next_hiddens.shape == (B, GRU_NUM_LAYERS, GRU_HIDDEN)

    pi_ref, hid_ref = student_ref(proprio, extero, params)
    np.testing.assert_allclose(np.asarray(pi), np.asarray(pi_ref), rtol=2e-3, atol=2e-3)
    np.testing.assert_allclose(np.asarray(next_hiddens), np.asarray(hid_ref),
                               rtol=2e-3, atol=2e-3)

    print("KERNEL_OK")
</pallas_src>

<mosaic_0001>
module attributes {stable_mosaic.version = 11 : i64} {
  func.func @student_kernel(%arg0: memref<2x133xf32, #tpu.memory_space<vmem>>, %arg1: memref<2x208xf32, #tpu.memory_space<vmem>>, %arg2: memref<208x320xf32, #tpu.memory_space<vmem>>, %arg3: memref<1x320xf32, #tpu.memory_space<vmem>>, %arg4: memref<320x240xf32, #tpu.memory_space<vmem>>, %arg5: memref<1x240xf32, #tpu.memory_space<vmem>>, %arg6: memref<240x120xf32, #tpu.memory_space<vmem>>, %arg7: memref<1x120xf32, #tpu.memory_space<vmem>>, %arg8: memref<133x150xf32, #tpu.memory_space<vmem>>, %arg9: memref<120x150xf32, #tpu.memory_space<vmem>>, %arg10: memref<1x150xf32, #tpu.memory_space<vmem>>, %arg11: memref<1x50xf32, #tpu.memory_space<vmem>>, %arg12: memref<50x150xf32, #tpu.memory_space<vmem>>, %arg13: memref<1x150xf32, #tpu.memory_space<vmem>>, %arg14: memref<1x50xf32, #tpu.memory_space<vmem>>, %arg15: memref<50x64xf32, #tpu.memory_space<vmem>>, %arg16: memref<1x64xf32, #tpu.memory_space<vmem>>, %arg17: memref<64x64xf32, #tpu.memory_space<vmem>>, %arg18: memref<1x64xf32, #tpu.memory_space<vmem>>, %arg19: memref<64x120xf32, #tpu.memory_space<vmem>>, %arg20: memref<1x120xf32, #tpu.memory_space<vmem>>, %arg21: memref<50x64xf32, #tpu.memory_space<vmem>>, %arg22: memref<1x64xf32, #tpu.memory_space<vmem>>, %arg23: memref<64x64xf32, #tpu.memory_space<vmem>>, %arg24: memref<1x64xf32, #tpu.memory_space<vmem>>, %arg25: memref<64x120xf32, #tpu.memory_space<vmem>>, %arg26: memref<1x120xf32, #tpu.memory_space<vmem>>, %arg27: memref<133x256xf32, #tpu.memory_space<vmem>>, %arg28: memref<120x256xf32, #tpu.memory_space<vmem>>, %arg29: memref<1x256xf32, #tpu.memory_space<vmem>>, %arg30: memref<256x160xf32, #tpu.memory_space<vmem>>, %arg31: memref<1x160xf32, #tpu.memory_space<vmem>>, %arg32: memref<160x128xf32, #tpu.memory_space<vmem>>, %arg33: memref<1x128xf32, #tpu.memory_space<vmem>>, %arg34: memref<128x128xf32, #tpu.memory_space<vmem>>, %arg35: memref<1x128xf32, #tpu.memory_space<vmem>>, %arg36: memref<50x128xf32, #tpu.memory_space<vmem>>, %arg37: memref<50x128xf32, #tpu.memory_space<vmem>>, %arg38: memref<2x128xf32, #tpu.memory_space<vmem>>) attributes {dimension_semantics = [], scalar_prefetch = 0 : i64, scratch_operands = 0 : i64, tpu.core_type = #tpu.core_type<tc>} {
    %c0 = arith.constant 0 : index
    %c0_0 = arith.constant 0 : index
    %0 = vector.load %arg0[%c0, %c0_0] : memref<2x133xf32, #tpu.memory_space<vmem>>, vector<2x133xf32>
    %c0_1 = arith.constant 0 : index
    %c0_2 = arith.constant 0 : index
    %1 = vector.load %arg1[%c0_1, %c0_2] : memref<2x208xf32, #tpu.memory_space<vmem>>, vector<2x208xf32>
    %c0_3 = arith.constant 0 : index
    %c0_4 = arith.constant 0 : index
    %2 = vector.load %arg2[%c0_3, %c0_4] : memref<208x320xf32, #tpu.memory_space<vmem>>, vector<208x320xf32>
    %cst = arith.constant dense<0.000000e+00> : vector<2x320xf32>
    %3 = tpu.matmul %1, %2, %cst {dimension_numbers = #tpu.dot_dimension_numbers<[1], [0], [0], [1], [0, 0, 1, 1], [], []>} : vector<2x208xf32>, vector<208x320xf32>, vector<2x320xf32> -> vector<2x320xf32>
    %c0_5 = arith.constant 0 : index
    %c0_6 = arith.constant 0 : index
    %4 = vector.load %arg3[%c0_5, %c0_6] : memref<1x320xf32, #tpu.memory_space<vmem>>, vector<1x320xf32>
    %5 = vector.broadcast %4 : vector<1x320xf32> to vector<2x320xf32>
    %6 = arith.addf %3, %5 : vector<2x320xf32>
    %cst_7 = arith.constant 0.000000e+00 : f32
    %7 = vector.broadcast %cst_7 : f32 to vector<2x320xf32>
    %8 = arith.cmpf ogt, %6, %7 : vector<2x320xf32>
    %cst_8 = arith.constant 0.00999999977 : f32
    %9 = vector.broadcast %cst_8 : f32 to vector<2x320xf32>
    %10 = arith.mulf %9, %6 : vector<2x320xf32>
    %11 = arith.select %8, %6, %10 : vector<2x320xi1>, vector<2x320xf32>
    %c0_9 = arith.constant 0 : index
    %c0_10 = arith.constant 0 : index
    %12 = vector.load %arg4[%c0_9, %c0_10] : memref<320x240xf32, #tpu.memory_space<vmem>>, vector<320x240xf32>
    %cst_11 = arith.constant dense<0.000000e+00> : vector<2x240xf32>
    %13 = tpu.matmul %11, %12, %cst_11 {dimension_numbers = #tpu.dot_dimension_numbers<[1], [0], [0], [1], [0, 0, 1, 1], [], []>} : vector<2x320xf32>, vector<320x240xf32>, vector<2x240xf32> -> vector<2x240xf32>
    %c0_12 = arith.constant 0 : index
    %c0_13 = arith.constant 0 : index
    %14 = vector.load %arg5[%c0_12, %c0_13] : memref<1x240xf32, #tpu.memory_space<vmem>>, vector<1x240xf32>
    %15 = vector.broadcast %14 : vector<1x240xf32> to vector<2x240xf32>
    %16 = arith.addf %13, %15 : vector<2x240xf32>
    %cst_14 = arith.constant 0.000000e+00 : f32
    %17 = vector.broadcast %cst_14 : f32 to vector<2x240xf32>
    %18 = arith.cmpf ogt, %16, %17 : vector<2x240xf32>
    %cst_15 = arith.constant 0.00999999977 : f32
    %19 = vector.broadcast %cst_15 : f32 to vector<2x240xf32>
    %20 = arith.mulf %19, %16 : vector<2x240xf32>
    %21 = arith.select %18, %16, %20 : vector<2x240xi1>, vector<2x240xf32>
    %c0_16 = arith.constant 0 : index
    %c0_17 = arith.constant 0 : index
    %22 = vector.load %arg6[%c0_16, %c0_17] : memref<240x120xf32, #tpu.memory_space<vmem>>, vector<240x120xf32>
    %cst_18 = arith.constant dense<0.000000e+00> : vector<2x120xf32>
    %23 = tpu.matmul %21, %22, %cst_18 {dimension_numbers = #tpu.dot_dimension_numbers<[1], [0], [0], [1], [0, 0, 1, 1], [], []>} : vector<2x240xf32>, vector<240x120xf32>, vector<2x120xf32> -> vector<2x120xf32>
    %c0_19 = arith.constant 0 : index
    %c0_20 = arith.constant 0 : index
    %24 = vector.load %arg7[%c0_19, %c0_20] : memref<1x120xf32, #tpu.memory_space<vmem>>, vector<1x120xf32>
    %25 = vector.broadcast %24 : vector<1x120xf32> to vector<2x120xf32>
    %26 = arith.addf %23, %25 : vector<2x120xf32>
    %c0_21 = arith.constant 0 : index
    %c0_22 = arith.constant 0 : index
    %27 = vector.load %arg8[%c0_21, %c0_22] : memref<133x150xf32, #tpu.memory_space<vmem>>, vector<133x150xf32>
    %cst_23 = arith.constant dense<0.000000e+00> : vector<2x150xf32>
    %28 = tpu.matmul %0, %27, %cst_23 {dimension_numbers = #tpu.dot_dimension_numbers<[1], [0], [0], [1], [0, 0, 1, 1], [], []>} : vector<2x133xf32>, vector<133x150xf32>, vector<2x150xf32> -> vector<2x150xf32>
    %c0_24 = arith.constant 0 : index
    %c0_25 = arith.constant 0 : index
    %29 = vector.load %arg9[%c0_24, %c0_25] : memref<120x150xf32, #tpu.memory_space<vmem>>, vector<120x150xf32>
    %cst_26 = arith.constant dense<0.000000e+00> : vector<2x150xf32>
    %30 = tpu.matmul %26, %29, %cst_26 {dimension_numbers = #tpu.dot_dimension_numbers<[1], [0], [0], [1], [0, 0, 1, 1], [], []>} : vector<2x120xf32>, vector<120x150xf32>, vector<2x150xf32> -> vector<2x150xf32>
    %31 = arith.addf %28, %30 : vector<2x150xf32>
    %c0_27 = arith.constant 0 : index
    %c0_28 = arith.constant 0 : index
    %32 = vector.load %arg10[%c0_27, %c0_28] : memref<1x150xf32, #tpu.memory_space<vmem>>, vector<1x150xf32>
    %33 = vector.broadcast %32 : vector<1x150xf32> to vector<2x150xf32>
    %34 = arith.addf %31, %33 : vector<2x150xf32>
    %35 = vector.extract_strided_slice %34 {offsets = [0, 0], sizes = [2, 50], strides = [1, 1]} : vector<2x150xf32> to vector<2x50xf32>
    %36 = arith.negf %35 : vector<2x50xf32>
    %37 = math.exp %36 : vector<2x50xf32>
    %cst_29 = arith.constant 1.000000e+00 : f32
    %38 = vector.broadcast %cst_29 : f32 to vector<2x50xf32>
    %39 = arith.addf %38, %37 : vector<2x50xf32>
    %40 = arith.divf %38, %39 : vector<2x50xf32>
    %41 = vector.extract_strided_slice %34 {offsets = [0, 50], sizes = [2, 50], strides = [1, 1]} : vector<2x150xf32> to vector<2x50xf32>
    %42 = arith.negf %41 : vector<2x50xf32>
    %43 = math.exp %42 : vector<2x50xf32>
    %cst_30 = arith.constant 1.000000e+00 : f32
    %44 = vector.broadcast %cst_30 : f32 to vector<2x50xf32>
    %45 = arith.addf %44, %43 : vector<2x50xf32>
    %46 = arith.divf %44, %45 : vector<2x50xf32>
    %47 = vector.extract_strided_slice %34 {offsets = [0, 100], sizes = [2, 50], strides = [1, 1]} : vector<2x150xf32> to vector<2x50xf32>
    %c0_31 = arith.constant 0 : index
    %c0_32 = arith.constant 0 : index
    %48 = vector.load %arg11[%c0_31, %c0_32] : memref<1x50xf32, #tpu.memory_space<vmem>>, vector<1x50xf32>
    %49 = vector.broadcast %48 : vector<1x50xf32> to vector<2x50xf32>
    %50 = arith.mulf %40, %49 : vector<2x50xf32>
    %51 = arith.addf %47, %50 : vector<2x50xf32>
    %52 = math.tanh %51 : vector<2x50xf32>
    %cst_33 = arith.constant 1.000000e+00 : f32
    %53 = vector.broadcast %cst_33 : f32 to vector<2x50xf32>
    %54 = arith.subf %53, %46 : vector<2x50xf32>
    %55 = arith.mulf %54, %52 : vector<2x50xf32>
    %c0_34 = arith.constant 0 : index
    %c0_35 = arith.constant 0 : index
    %56 = vector.load %arg12[%c0_34, %c0_35] : memref<50x150xf32, #tpu.memory_space<vmem>>, vector<50x150xf32>
    %cst_36 = arith.constant dense<0.000000e+00> : vector<2x150xf32>
    %57 = tpu.matmul %55, %56, %cst_36 {dimension_numbers = #tpu.dot_dimension_numbers<[1], [0], [0], [1], [0, 0, 1, 1], [], []>} : vector<2x50xf32>, vector<50x150xf32>, vector<2x150xf32> -> vector<2x150xf32>
    %c0_37 = arith.constant 0 : index
    %c0_38 = arith.constant 0 : index
    %58 = vector.load %arg13[%c0_37, %c0_38] : memref<1x150xf32, #tpu.memory_space<vmem>>, vector<1x150xf32>
    %59 = vector.broadcast %58 : vector<1x150xf32> to vector<2x150xf32>
    %60 = arith.addf %57, %59 : vector<2x150xf32>
    %61 = vector.extract_strided_slice %60 {offsets = [0, 0], sizes = [2, 50], strides = [1, 1]} : vector<2x150xf32> to vector<2x50xf32>
    %62 = arith.negf %61 : vector<2x50xf32>
    %63 = math.exp %62 : vector<2x50xf32>
    %cst_39 = arith.constant 1.000000e+00 : f32
    %64 = vector.broadcast %cst_39 : f32 to vector<2x50xf32>
    %65 = arith.addf %64, %63 : vector<2x50xf32>
    %66 = arith.divf %64, %65 : vector<2x50xf32>
    %67 = vector.extract_strided_slice %60 {offsets = [0, 50], sizes = [2, 50], strides = [1, 1]} : vector<2x150xf32> to vector<2x50xf32>
    %68 = arith.negf %67 : vector<2x50xf32>
    %69 = math.exp %68 : vector<2x50xf32>
    %cst_40 = arith.constant 1.000000e+00 : f32
    %70 = vector.broadcast %cst_40 : f32 to vector<2x50xf32>
    %71 = arith.addf %70, %69 : vector<2x50xf32>
    %72 = arith.divf %70, %71 : vector<2x50xf32>
    %73 = vector.extract_strided_slice %60 {offsets = [0, 100], sizes = [2, 50], strides = [1, 1]} : vector<2x150xf32> to vector<2x50xf32>
    %c0_41 = arith.constant 0 : index
    %c0_42 = arith.constant 0 : index
    %74 = vector.load %arg14[%c0_41, %c0_42] : memref<1x50xf32, #tpu.memory_space<vmem>>, vector<1x50xf32>
    %75 = vector.broadcast %74 : vector<1x50xf32> to vector<2x50xf32>
    %76 = arith.mulf %66, %75 : vector<2x50xf32>
    %77 = arith.addf %73, %76 : vector<2x50xf32>
    %78 = math.tanh %77 : vector<2x50xf32>
    %cst_43 = arith.constant 1.000000e+00 : f32
    %79 = vector.broadcast %cst_43 : f32 to vector<2x50xf32>
    %80 = arith.subf %79, %72 : vector<2x50xf32>
    %81 = arith.mulf %80, %78 : vector<2x50xf32>
    %c0_44 = arith.constant 0 : index
    %c0_45 = arith.constant 0 : index
    %82 = vector.load %arg15[%c0_44, %c0_45] : memref<50x64xf32, #tpu.memory_space<vmem>>, vector<50x64xf32>
    %cst_46 = arith.constant dense<0.000000e+00> : vector<2x64xf32>
    %83 = tpu.matmul %81, %82, %cst_46 {dimension_numbers = #tpu.dot_dimension_numbers<[1], [0], [0], [1], [0, 0, 1, 1], [], []>} : vector<2x50xf32>, vector<50x64xf32>, vector<2x64xf32> -> vector<2x64xf32>
    %c0_47 = arith.constant 0 : index
    %c0_48 = arith.constant 0 : index
    %84 = vector.load %arg16[%c0_47, %c0_48] : memref<1x64xf32, #tpu.memory_space<vmem>>, vector<1x64xf32>
    %85 = vector.broadcast %84 : vector<1x64xf32> to vector<2x64xf32>
    %86 = arith.addf %83, %85 : vector<2x64xf32>
    %cst_49 = arith.constant 0.000000e+00 : f32
    %87 = vector.broadcast %cst_49 : f32 to vector<2x64xf32>
    %88 = arith.cmpf ogt, %86, %87 : vector<2x64xf32>
    %cst_50 = arith.constant 0.00999999977 : f32
    %89 = vector.broadcast %cst_50 : f32 to vector<2x64xf32>
    %90 = arith.mulf %89, %86 : vector<2x64xf32>
    %91 = arith.select %88, %86, %90 : vector<2x64xi1>, vector<2x64xf32>
    %c0_51 = arith.constant 0 : index
    %c0_52 = arith.constant 0 : index
    %92 = vector.load %arg17[%c0_51, %c0_52] : memref<64x64xf32, #tpu.memory_space<vmem>>, vector<64x64xf32>
    %cst_53 = arith.constant dense<0.000000e+00> : vector<2x64xf32>
    %93 = tpu.matmul %91, %92, %cst_53 {dimension_numbers = #tpu.dot_dimension_numbers<[1], [0], [0], [1], [0, 0, 1, 1], [], []>} : vector<2x64xf32>, vector<64x64xf32>, vector<2x64xf32> -> vector<2x64xf32>
    %c0_54 = arith.constant 0 : index
    %c0_55 = arith.constant 0 : index
    %94 = vector.load %arg18[%c0_54, %c0_55] : memref<1x64xf32, #tpu.memory_space<vmem>>, vector<1x64xf32>
    %95 = vector.broadcast %94 : vector<1x64xf32> to vector<2x64xf32>
    %96 = arith.addf %93, %95 : vector<2x64xf32>
    %cst_56 = arith.constant 0.000000e+00 : f32
    %97 = vector.broadcast %cst_56 : f32 to vector<2x64xf32>
    %98 = arith.cmpf ogt, %96, %97 : vector<2x64xf32>
    %cst_57 = arith.constant 0.00999999977 : f32
    %99 = vector.broadcast %cst_57 : f32 to vector<2x64xf32>
    %100 = arith.mulf %99, %96 : vector<2x64xf32>
    %101 = arith.select %98, %96, %100 : vector<2x64xi1>, vector<2x64xf32>
    %c0_58 = arith.constant 0 : index
    %c0_59 = arith.constant 0 : index
    %102 = vector.load %arg19[%c0_58, %c0_59] : memref<64x120xf32, #tpu.memory_space<vmem>>, vector<64x120xf32>
    %cst_60 = arith.constant dense<0.000000e+00> : vector<2x120xf32>
    %103 = tpu.matmul %101, %102, %cst_60 {dimension_numbers = #tpu.dot_dimension_numbers<[1], [0], [0], [1], [0, 0, 1, 1], [], []>} : vector<2x64xf32>, vector<64x120xf32>, vector<2x120xf32> -> vector<2x120xf32>
    %c0_61 = arith.constant 0 : index
    %c0_62 = arith.constant 0 : index
    %104 = vector.load %arg20[%c0_61, %c0_62] : memref<1x120xf32, #tpu.memory_space<vmem>>, vector<1x120xf32>
    %105 = vector.broadcast %104 : vector<1x120xf32> to vector<2x120xf32>
    %106 = arith.addf %103, %105 : vector<2x120xf32>
    %c0_63 = arith.constant 0 : index
    %c0_64 = arith.constant 0 : index
    %107 = vector.load %arg21[%c0_63, %c0_64] : memref<50x64xf32, #tpu.memory_space<vmem>>, vector<50x64xf32>
    %cst_65 = arith.constant dense<0.000000e+00> : vector<2x64xf32>
    %108 = tpu.matmul %81, %107, %cst_65 {dimension_numbers = #tpu.dot_dimension_numbers<[1], [0], [0], [1], [0, 0, 1, 1], [], []>} : vector<2x50xf32>, vector<50x64xf32>, vector<2x64xf32> -> vector<2x64xf32>
    %c0_66 = arith.constant 0 : index
    %c0_67 = arith.constant 0 : index
    %109 = vector.load %arg22[%c0_66, %c0_67] : memref<1x64xf32, #tpu.memory_space<vmem>>, vector<1x64xf32>
    %110 = vector.broadcast %109 : vector<1x64xf32> to vector<2x64xf32>
    %111 = arith.addf %108, %110 : vector<2x64xf32>
    %cst_68 = arith.constant 0.000000e+00 : f32
    %112 = vector.broadcast %cst_68 : f32 to vector<2x64xf32>
    %113 = arith.cmpf ogt, %111, %112 : vector<2x64xf32>
    %cst_69 = arith.constant 0.00999999977 : f32
    %114 = vector.broadcast %cst_69 : f32 to vector<2x64xf32>
    %115 = arith.mulf %114, %111 : vector<2x64xf32>
    %116 = arith.select %113, %111, %115 : vector<2x64xi1>, vector<2x64xf32>
    %c0_70 = arith.constant 0 : index
    %c0_71 = arith.constant 0 : index
    %117 = vector.load %arg23[%c0_70, %c0_71] : memref<64x64xf32, #tpu.memory_space<vmem>>, vector<64x64xf32>
    %cst_72 = arith.constant dense<0.000000e+00> : vector<2x64xf32>
    %118 = tpu.matmul %116, %117, %cst_72 {dimension_numbers = #tpu.dot_dimension_numbers<[1], [0], [0], [1], [0, 0, 1, 1], [], []>} : vector<2x64xf32>, vector<64x64xf32>, vector<2x64xf32> -> vector<2x64xf32>
    %c0_73 = arith.constant 0 : index
    %c0_74 = arith.constant 0 : index
    %119 = vector.load %arg24[%c0_73, %c0_74] : memref<1x64xf32, #tpu.memory_space<vmem>>, vector<1x64xf32>
    %120 = vector.broadcast %119 : vector<1x64xf32> to vector<2x64xf32>
    %121 = arith.addf %118, %120 : vector<2x64xf32>
    %cst_75 = arith.constant 0.000000e+00 : f32
    %122 = vector.broadcast %cst_75 : f32 to vector<2x64xf32>
    %123 = arith.cmpf ogt, %121, %122 : vector<2x64xf32>
    %cst_76 = arith.constant 0.00999999977 : f32
    %124 = vector.broadcast %cst_76 : f32 to vector<2x64xf32>
    %125 = arith.mulf %124, %121 : vector<2x64xf32>
    %126 = arith.select %123, %121, %125 : vector<2x64xi1>, vector<2x64xf32>
    %c0_77 = arith.constant 0 : index
    %c0_78 = arith.constant 0 : index
    %127 = vector.load %arg25[%c0_77, %c0_78] : memref<64x120xf32, #tpu.memory_space<vmem>>, vector<64x120xf32>
    %cst_79 = arith.constant dense<0.000000e+00> : vector<2x120xf32>
    %128 = tpu.matmul %126, %127, %cst_79 {dimension_numbers = #tpu.dot_dimension_numbers<[1], [0], [0], [1], [0, 0, 1, 1], [], []>} : vector<2x64xf32>, vector<64x120xf32>, vector<2x120xf32> -> vector<2x120xf32>
    %c0_80 = arith.constant 0 : index
    %c0_81 = arith.constant 0 : index
    %129 = vector.load %arg26[%c0_80, %c0_81] : memref<1x120xf32, #tpu.memory_space<vmem>>, vector<1x120xf32>
    %130 = vector.broadcast %129 : vector<1x120xf32> to vector<2x120xf32>
    %131 = arith.addf %128, %130 : vector<2x120xf32>
    %132 = arith.negf %106 : vector<2x120xf32>
    %133 = math.exp %132 : vector<2x120xf32>
    %cst_82 = arith.constant 1.000000e+00 : f32
    %134 = vector.broadcast %cst_82 : f32 to vector<2x120xf32>
    %135 = arith.addf %134, %133 : vector<2x120xf32>
    %136 = arith.divf %134, %135 : vector<2x120xf32>
    %137 = arith.mulf %26, %136 : vector<2x120xf32>
    %138 = arith.addf %131, %137 : vector<2x120xf32>
    %c0_83 = arith.constant 0 : index
    %c0_84 = arith.constant 0 : index
    %139 = vector.load %arg27[%c0_83, %c0_84] : memref<133x256xf32, #tpu.memory_space<vmem>>, vector<133x256xf32>
    %cst_85 = arith.constant dense<0.000000e+00> : vector<2x256xf32>
    %140 = tpu.matmul %0, %139, %cst_85 {dimension_numbers = #tpu.dot_dimension_numbers<[1], [0], [0], [1], [0, 0, 1, 1], [], []>} : vector<2x133xf32>, vector<133x256xf32>, vector<2x256xf32> -> vector<2x256xf32>
    %c0_86 = arith.constant 0 : index
    %c0_87 = arith.constant 0 : index
    %141 = vector.load %arg28[%c0_86, %c0_87] : memref<120x256xf32, #tpu.memory_space<vmem>>, vector<120x256xf32>
    %cst_88 = arith.constant dense<0.000000e+00> : vector<2x256xf32>
    %142 = tpu.matmul %138, %141, %cst_88 {dimension_numbers = #tpu.dot_dimension_numbers<[1], [0], [0], [1], [0, 0, 1, 1], [], []>} : vector<2x120xf32>, vector<120x256xf32>, vector<2x256xf32> -> vector<2x256xf32>
    %143 = arith.addf %140, %142 : vector<2x256xf32>
    %c0_89 = arith.constant 0 : index
    %c0_90 = arith.constant 0 : index
    %144 = vector.load %arg29[%c0_89, %c0_90] : memref<1x256xf32, #tpu.memory_space<vmem>>, vector<1x256xf32>
    %145 = vector.broadcast %144 : vector<1x256xf32> to vector<2x256xf32>
    %146 = arith.addf %143, %145 : vector<2x256xf32>
    %cst_91 = arith.constant 0.000000e+00 : f32
    %147 = vector.broadcast %cst_91 : f32 to vector<2x256xf32>
    %148 = arith.cmpf ogt, %146, %147 : vector<2x256xf32>
    %cst_92 = arith.constant 0.00999999977 : f32
    %149 = vector.broadcast %cst_92 : f32 to vector<2x256xf32>
    %150 = arith.mulf %149, %146 : vector<2x256xf32>
    %151 = arith.select %148, %146, %150 : vector<2x256xi1>, vector<2x256xf32>
    %c0_93 = arith.constant 0 : index
    %c0_94 = arith.constant 0 : index
    %152 = vector.load %arg30[%c0_93, %c0_94] : memref<256x160xf32, #tpu.memory_space<vmem>>, vector<256x160xf32>
    %cst_95 = arith.constant dense<0.000000e+00> : vector<2x160xf32>
    %153 = tpu.matmul %151, %152, %cst_95 {dimension_numbers = #tpu.dot_dimension_numbers<[1], [0], [0], [1], [0, 0, 1, 1], [], []>} : vector<2x256xf32>, vector<256x160xf32>, vector<2x160xf32> -> vector<2x160xf32>
    %c0_96 = arith.constant 0 : index
    %c0_97 = arith.constant 0 : index
    %154 = vector.load %arg31[%c0_96, %c0_97] : memref<1x160xf32, #tpu.memory_space<vmem>>, vector<1x160xf32>
    %155 = vector.broadcast %154 : vector<1x160xf32> to vector<2x160xf32>
    %156 = arith.addf %153, %155 : vector<2x160xf32>
    %cst_98 = arith.constant 0.000000e+00 : f32
    %157 = vector.broadcast %cst_98 : f32 to vector<2x160xf32>
    %158 = arith.cmpf ogt, %156, %157 : vector<2x160xf32>
    %cst_99 = arith.constant 0.00999999977 : f32
    %159 = vector.broadcast %cst_99 : f32 to vector<2x160xf32>
    %160 = arith.mulf %159, %156 : vector<2x160xf32>
    %161 = arith.select %158, %156, %160 : vector<2x160xi1>, vector<2x160xf32>
    %c0_100 = arith.constant 0 : index
    %c0_101 = arith.constant 0 : index
    %162 = vector.load %arg32[%c0_100, %c0_101] : memref<160x128xf32, #tpu.memory_space<vmem>>, vector<160x128xf32>
    %cst_102 = arith.constant dense<0.000000e+00> : vector<2x128xf32>
    %163 = tpu.matmul %161, %162, %cst_102 {dimension_numbers = #tpu.dot_dimension_numbers<[1], [0], [0], [1], [0, 0, 1, 1], [], []>} : vector<2x160xf32>, vector<160x128xf32>, vector<2x128xf32> -> vector<2x128xf32>
    %c0_103 = arith.constant 0 : index
    %c0_104 = arith.constant 0 : index
    %164 = vector.load %arg33[%c0_103, %c0_104] : memref<1x128xf32, #tpu.memory_space<vmem>>, vector<1x128xf32>
    %165 = vector.broadcast %164 : vector<1x128xf32> to vector<2x128xf32>
    %166 = arith.addf %163, %165 : vector<2x128xf32>
    %cst_105 = arith.constant 0.000000e+00 : f32
    %167 = vector.broadcast %cst_105 : f32 to vector<2x128xf32>
    %168 = arith.cmpf ogt, %166, %167 : vector<2x128xf32>
    %cst_106 = arith.constant 0.00999999977 : f32
    %169 = vector.broadcast %cst_106 : f32 to vector<2x128xf32>
    %170 = arith.mulf %169, %166 : vector<2x128xf32>
    %171 = arith.select %168, %166, %170 : vector<2x128xi1>, vector<2x128xf32>
    %c0_107 = arith.constant 0 : index
    %c0_108 = arith.constant 0 : index
    %172 = vector.load %arg34[%c0_107, %c0_108] : memref<128x128xf32, #tpu.memory_space<vmem>>, vector<128x128xf32>
    %cst_109 = arith.constant dense<0.000000e+00> : vector<2x128xf32>
    %173 = tpu.matmul %171, %172, %cst_109 {dimension_numbers = #tpu.dot_dimension_numbers<[1], [0], [0], [1], [0, 0, 1, 1], [], []>} : vector<2x128xf32>, vector<128x128xf32>, vector<2x128xf32> -> vector<2x128xf32>
    %c0_110 = arith.constant 0 : index
    %c0_111 = arith.constant 0 : index
    %174 = vector.load %arg35[%c0_110, %c0_111] : memref<1x128xf32, #tpu.memory_space<vmem>>, vector<1x128xf32>
    %175 = vector.broadcast %174 : vector<1x128xf32> to vector<2x128xf32>
    %176 = arith.addf %173, %175 : vector<2x128xf32>
    %c0_112 = arith.constant 0 : index
    %c0_113 = arith.constant 0 : index
    %177 = vector.load %arg36[%c0_112, %c0_113] : memref<50x128xf32, #tpu.memory_space<vmem>>, vector<50x128xf32>
    %cst_114 = arith.constant dense<0.000000e+00> : vector<2x128xf32>
    %178 = tpu.matmul %55, %177, %cst_114 {dimension_numbers = #tpu.dot_dimension_numbers<[1], [0], [0], [1], [0, 0, 1, 1], [], []>} : vector<2x50xf32>, vector<50x128xf32>, vector<2x128xf32> -> vector<2x128xf32>
    %179 = arith.addf %176, %178 : vector<2x128xf32>
    %c0_115 = arith.constant 0 : index
    %c0_116 = arith.constant 0 : index
    %180 = vector.load %arg37[%c0_115, %c0_116] : memref<50x128xf32, #tpu.memory_space<vmem>>, vector<50x128xf32>
    %cst_117 = arith.constant dense<0.000000e+00> : vector<2x128xf32>
    %181 = tpu.matmul %81, %180, %cst_117 {dimension_numbers = #tpu.dot_dimension_numbers<[1], [0], [0], [1], [0, 0, 1, 1], [], []>} : vector<2x50xf32>, vector<50x128xf32>, vector<2x128xf32> -> vector<2x128xf32>
    %182 = arith.addf %179, %181 : vector<2x128xf32>
    %c0_118 = arith.constant 0 : index
    %c0_119 = arith.constant 0 : index
    %183 = vector.load %arg38[%c0_118, %c0_119] : memref<2x128xf32, #tpu.memory_space<vmem>>, vector<2x128xf32>
    tpu.vector_store %arg38[%c0_118, %c0_119], %182 {strides = array<i32>} : memref<2x128xf32, #tpu.memory_space<vmem>>, vector<2x128xf32>,
    return
  }
}

</mosaic_0001>

<bundles_post_ra>
// kernel: tpu_custom_call.1
= control target key start
LH: loop header
LB: loop body
LE: loop exit
PB: predicated region body
PF: predicated region fallthrough
CT: control target
= control target key end

     0   :  { %s4620_s6 = smov 1   ;;  %s4621_s10 = smov 2   ;;  %s5501_s0 = inlined_call_operand.smem [shape: u32[39], index: -1, kind: input, shape index: {}] }
   0x1   :  { %s4708_s5 = sld [smem:[%s5501_s0]]   ;;  %s4622_s14 = smov 3  }
   0x2   :  { %s4713_s9 = sld [smem:[%s5501_s0 + %s4620_s6]]   ;;  %s4623_s18 = smov 4  }
   0x3   :  { %s4718_s13 = sld [smem:[%s5501_s0 + %s4621_s10]]   ;;  %s4624_s22 = smov 5  }
   0x4   :  { %s4723_s17 = sld [smem:[%s5501_s0 + %s4622_s14]]   ;;  %s4625_s26 = smov 6  }
   0x5   :  { %s4728_s21 = sld [smem:[%s5501_s0 + %s4623_s18]]   ;;  %s4626_s30 = smov 7  }
   0x6   :  { %s4733_s25 = sld [smem:[%s5501_s0 + %s4624_s22]]   ;;  %s4627_s4 = smov 8  }
   0x7   :  { %5522 = sst [smem:[#allocation67_spill]] %s4708_s5  ;;  %s4628_s10 = smov 9  }
   0x8   :  { %5523 = sst [smem:[#allocation68_spill]] %s4713_s9  ;;  %s4629_s15 = smov 10  }
   0x9   :  { %5524 = sst [smem:[#allocation69_spill]] %s4718_s13  ;;  %s4630_s20 = smov 11  }
   0xa   :  { %s4738_s29 = sld [smem:[%s5501_s0 + %s4625_s26]]   ;;  %s4631_s26 = smov 12  }
   0xb   :  { %5525 = sst [smem:[#allocation70_spill]] %s4728_s21  ;;  %s4632_s1 = smov 13  }
   0xc   :  { %5526 = sst [smem:[#allocation71_spill]] %s4733_s25  ;;  %s4633_s7 = smov 14  }
   0xd   :  { %s4743_s3 = sld [smem:[%s5501_s0 + %s4626_s30]]   ;;  %s4635_s22 = smov 16  }
   0xe   :  { %s4748_s8 = sld [smem:[%s5501_s0 + %s4627_s4]]   ;;  %s4636_s28 = smov 17  }
   0xf   :  { %s4753_s14 = sld [smem:[%s5501_s0 + %s4628_s10]]  }
  0x10   :  { %s4758_s19 = sld [smem:[%s5501_s0 + %s4629_s15]]   ;;  %s4634_s15 = smov 15  }
  0x11   :  { %s4763_s24 = sld [smem:[%s5501_s0 + %s4630_s20]]  }
  0x12   :  { %s4768_s30 = sld [smem:[%s5501_s0 + %s4631_s26]]  }
  0x13   :  { %5527 = sst [smem:[#allocation72_spill]] %s4743_s3 }
  0x14   :  { %5528 = sst [smem:[#allocation73_spill]] %s4748_s8 }
  0x15   :  { %5529 = sst [smem:[#allocation74_spill]] %s4753_s14 }
  0x16   :  { %s4773_s6 = sld [smem:[%s5501_s0 + %s4632_s1]]  }
  0x17   :  { %5530 = sst [smem:[#allocation75_spill]] %s4763_s24 }
  0x18   :  { %s4778_s12 = sld [smem:[%s5501_s0 + %s4633_s7]]   ;;  %s4637_s7 = smov 18  }
  0x19   :  { %s4783_s20 = sld [smem:[%s5501_s0 + %s4634_s15]]   ;;  %s4638_s15 = smov 19  }
  0x1a   :  { %s4788_s27 = sld [smem:[%s5501_s0 + %s4635_s22]]   ;;  %s4639_s22 = smov 20  }
  0x1b   :  { %s4793_s4 = sld [smem:[%s5501_s0 + %s4636_s28]]   ;;  %s4640_s28 = smov 21  }
  0x1c   :  { %5531 = sst [smem:[#allocation76_spill]] %s4773_s6 }
  0x1d   :  { %s4798_s5 = sld [smem:[%s5501_s0 + %s4637_s7]]   ;;  %s4641_s7 = smov 22  }
  0x1e   :  { %s4803_s8 = sld [smem:[%s5501_s0 + %s4638_s15]]   ;;  %s4642_s15 = smov 23  }
  0x1f   :  { %5532 = sst [smem:[#allocation77_spill]] %s4783_s20 }
  0x20   :  { %s4808_s14 = sld [smem:[%s5501_s0 + %s4639_s22]]   ;;  %s4643_s22 = smov 24  }
  0x21   :  { %5533 = sst [smem:[#allocation78_spill]] %s4793_s4 }
  0x22   :  { %s4813_s4 = sld [smem:[%s5501_s0 + %s4640_s28]]   ;;  %s4644_s28 = smov 25  }
  0x23   :  { %5534 = sst [smem:[#allocation79_spill]] %s4798_s5 }
  0x24   :  { %s4818_s21 = sld [smem:[%s5501_s0 + %s4641_s7]]   ;;  %s4645_s7 = smov 26  }
  0x25   :  { %s4823_s9 = sld [smem:[%s5501_s0 + %s4642_s15]]   ;;  %s4646_s15 = smov 27  }
  0x26   :  { %5535 = sst [smem:[#allocation80_spill]] %s4808_s14 }
  0x27   :  { %s4828_s14 = sld [smem:[%s5501_s0 + %s4643_s22]]   ;;  %s4647_s22 = smov 28  }
  0x28   :  { %s4833_s5 = sld [smem:[%s5501_s0 + %s4644_s28]]   ;;  %s4648_s28 = smov 29  }
  0x29   :  { %s4843_s20 = sld [smem:[%s5501_s0 + %s4646_s15]]   ;;  %s4650_s15 = smov 31  }
  0x2a   :  { %5536 = sst [smem:[#allocation81_spill]] %s4818_s21 }
  0x2b   :  { %s4838_s21 = sld [smem:[%s5501_s0 + %s4645_s7]]   ;;  %s4649_s7 = smov 30  }
  0x2c   :  { %s4853_s6 = sld [smem:[%s5501_s0 + %s4648_s28]]   ;;  %s4652_s28 = smov 33  }
  0x2d   :  { %5537 = sst [smem:[#allocation82_spill]] %s4828_s14 }
  0x2e   :  { %s4848_s14 = sld [smem:[%s5501_s0 + %s4647_s22]]   ;;  %s4651_s22 = smov 32  }
  0x2f   :  { %s4863_s24 = sld [smem:[%s5501_s0 + %s4650_s15]]   ;;  %s4654_s15 = smov 35  }
  0x30   :  { %s4873_s3 = sld [smem:[%s5501_s0 + %s4652_s28]]   ;;  %s4656_s28 = smov 37  }
  0x31   :  { %5538 = sst [smem:[#allocation83_spill]] %s4838_s21 }
  0x32   :  { %s4858_s21 = sld [smem:[%s5501_s0 + %s4649_s7]]   ;;  %s4653_s7 = smov 34  }
  0x34   :  { %5539 = sst [smem:[#allocation84_spill]] %s4848_s14 }
  0x35   :  { %5541 = sst [smem:[#allocation86_spill]] %s4863_s24 }
  0x36   :  { %s4868_s14 = sld [smem:[%s5501_s0 + %s4651_s22]]   ;;  %s4655_s22 = smov 36  }
  0x37   :  { %5542 = sst [smem:[#allocation87_spill]] %s4873_s3 }
  0x38   :  { %5540 = sst [smem:[#allocation85_spill]] %s4858_s21 }
  0x39   :  { %s4878_s21 = sld [smem:[%s5501_s0 + %s4653_s7]]   ;;  %s4657_s7 = smov 38  }
  0x3a   :  { %s4883_s24 = sld [smem:[%s5501_s0 + %s4654_s15]]  }
  0x3b   :  { %s4888_s25 = sld [smem:[%s5501_s0 + %s4655_s22]]  }
  0x3c   :  { %s4893_s3 = sld [smem:[%s5501_s0 + %s4656_s28]]  }
  0x3d   :  { %s4898_s13 = sld [smem:[%s5501_s0 + %s4657_s7]]  }
  0x3e   :  { %82 = vsyncpa [#allocation3], 0 }
  0x3f   :  { %83 = vsyncpa [#allocation6], 0 }
  0x40   :  { %84 = vsyncpa [#allocation9], 0 }
  0x41   :  { %85 = vsyncpa [#allocation12], 0 }
  0x42   :  { %86 = vsyncpa [#allocation15], 0 }
  0x43   :  { %87 = vsyncpa [#allocation18], 0 }
  0x44   :  { %88 = vsyncpa [#allocation21], 0 }
  0x45   :  { %89 = vsyncpa [#allocation24], 0 }
  0x46   :  { %90 = vsyncpa [#allocation27], 0 }
  0x47   :  { %91 = vsyncpa [#allocation30], 0 }
  0x48   :  { %92 = vsyncpa [#allocation33], 0 }
  0x49   :  { %93 = vsyncpa [#allocation36], 0 }
  0x4a   :  { %94 = vsyncpa [#allocation39], 0 }
  0x4b   :  { %95 = vsyncpa [#allocation42], 0 }
  0x4c   :  { %96 = vsyncpa [#allocation45], 0 }
  0x4d   :  { %97 = vsyncpa [#allocation48], 0 }
  0x4e   :  { %98 = vsyncpa [#allocation4], 0  ;;  %s4658_s0 = smov [#allocation5]   ;;  %s4659_s16 = smov [#allocation8]  }
  0x4f   :  { %s121_s15 = sshll.u32 %s4658_s0, 4  ;;  %s142_s18 = sshll.u32 %s4659_s16, 4  ;;  %s122_s15 = int_to_ptr.vmem [resolvable:$true] %s121_s15  ;;  %s4900_s18 = int_to_ptr.vmem [resolvable:$true] %s142_s18 }
  0x50   :  { %s3904_s22 = scalar_lea.hbm %s4723_s17, 48 }
  0x51   :  { %p3905_p0 = scmp.ne.s32.totalorder %s4723_s17, %s3904_s22  ;;  %p3908_p1 = scmp.lt.u32.totalorder %s3904_s22, %s4723_s17 }
  0x53   :  { %p3910_p2 = pnand %p3908_p1, %p3905_p0 }
  0x55   :  { %3913 = shalt.err (!%p3910_p2)
}
  0x56   :  { %s3914_s23 = scalar_lea.vmem %s122_s15, 48  ;;  %s3918_s26 = scalar_lea.vmem %s122_s15, 64 }
  0x57   :  { %p3915_p3 = scmp.ne.s32.totalorder %s122_s15, %s3914_s23  ;;  %p3919_p4 = scmp.lt.s32.totalorder %s122_s15, %s122_s15 }
  0x58   :  { %p3920_p5 = scmp.lt.s32.totalorder %s3918_s26, %s3914_s23 }
  0x5a   :  { %p3921_p6 = por %p3920_p5, %p3919_p4 }
  0x5c   :  { %p3922_p7 = pnand %p3921_p6, %p3915_p3 }
  0x5e   :  { %3925 = shalt.err (!%p3922_p7)
}
  0x5f   :  { %124 = dma.hbm_to_vmem [thread:$0]  %s4723_s17, 48, %s122_s15, [#allocation6]  }
  0x60   :  { %s3926_s28 = scalar_lea.hbm %s4738_s29, 3840 }
  0x61   :  { %p3927_p8 = scmp.ne.s32.totalorder %s4738_s29, %s3926_s28  ;;  %p3930_p9 = scmp.lt.u32.totalorder %s3926_s28, %s4738_s29 }
  0x63   :  { %p3932_p10 = pnand %p3930_p9, %p3927_p8 }
  0x65   :  { %3935 = shalt.err (!%p3932_p10)
}
  0x66   :  { %s3936_s1 = scalar_lea.vmem %s4900_s18, 3840  ;;  %p3941_p12 = scmp.lt.s32.totalorder %s4900_s18, %s4900_s18 }
  0x67   :  { %p3937_p11 = scmp.ne.s32.totalorder %s4900_s18, %s3936_s1  ;;  %p3942_p13 = scmp.lt.s32.totalorder %s3936_s1, %s3936_s1 }
  0x69   :  { %p3943_p0 = por %p3942_p13, %p3941_p12 }
  0x6b   :  { %p3944_p1 = pnand %p3943_p0, %p3937_p11 }
  0x6d   :  { %3947 = shalt.err (!%p3944_p1)
}
  0x6e   :  { %s4660_s2 = smov 128   ;;  %s4661_s17 = smov 8  }
  0x6f   :  { %148 = dma.hbm_to_vmem [thread:$0]  %s4738_s29, 3840, %s4900_s18, [#allocation9], %s4660_s2, %s4660_s2, %s4661_s17  }
  0x70   :  { %s4662_s7 = smov [#allocation11]   ;;  %s4663_s11 = smov [#allocation14]  }
  0x71   :  { %s169_s10 = sshll.u32 %s4662_s7, 4  ;;  %s188_s0 = sshll.u32 %s4663_s11, 4  ;;  %s170_s10 = int_to_ptr.vmem [resolvable:$true] %s169_s10  ;;  %s4918_s0 = int_to_ptr.vmem [resolvable:$true] %s188_s0 }
  0x72   :  { %s3948_s15 = scalar_lea.hbm %s4758_s19, 32 }
  0x73   :  { %p3949_p2 = scmp.ne.s32.totalorder %s4758_s19, %s3948_s15  ;;  %p3952_p3 = scmp.lt.u32.totalorder %s3948_s15, %s4758_s19 }
  0x75   :  { %p3954_p4 = pnand %p3952_p3, %p3949_p2 }
  0x77   :  { %3957 = shalt.err (!%p3954_p4)
}
  0x78   :  { %s3958_s16 = scalar_lea.vmem %s170_s10, 32  ;;  %p3963_p6 = scmp.lt.s32.totalorder %s170_s10, %s170_s10 }
  0x79   :  { %p3959_p5 = scmp.ne.s32.totalorder %s170_s10, %s3958_s16  ;;  %p3964_p7 = scmp.lt.s32.totalorder %s3958_s16, %s3958_s16 }
  0x7b   :  { %p3965_p8 = por %p3964_p7, %p3963_p6 }
  0x7d   :  { %p3966_p9 = pnand %p3965_p8, %p3959_p5 }
  0x7f   :  { %3969 = shalt.err (!%p3966_p9)
}
  0x80   :  { %172 = dma.hbm_to_vmem [thread:$0]  %s4758_s19, 32, %s170_s10, [#allocation12]  }
  0x81   :  { %s3970_s29 = scalar_lea.hbm %s4768_s30, 1792 }
  0x82   :  { %p3971_p10 = scmp.ne.s32.totalorder %s4768_s30, %s3970_s29  ;;  %p3974_p11 = scmp.lt.u32.totalorder %s3970_s29, %s4768_s30 }
  0x84   :  { %p3976_p12 = pnand %p3974_p11, %p3971_p10 }
  0x86   :  { %3979 = shalt.err (!%p3976_p12)
}
  0x87   :  { %s3980_s18 = scalar_lea.vmem %s4918_s0, 1792  ;;  %p3985_p0 = scmp.lt.s32.totalorder %s4918_s0, %s4918_s0 }
  0x88   :  { %p3981_p13 = scmp.ne.s32.totalorder %s4918_s0, %s3980_s18  ;;  %p3986_p1 = scmp.lt.s32.totalorder %s3980_s18, %s3980_s18 }
  0x8a   :  { %p3987_p2 = por %p3986_p1, %p3985_p0 }
  0x8c   :  { %p3988_p3 = pnand %p3987_p2, %p3981_p13 }
  0x8e   :  { %3991 = shalt.err (!%p3988_p3)
}
  0x8f   :  { %s4664_s22 = smov 256   ;;  %s4665_s19 = smov 16  }
  0x90   :  { %194 = dma.hbm_to_vmem [thread:$0]  %s4768_s30, 1792, %s4918_s0, [#allocation15], %s4664_s22, %s4664_s22, %s4665_s19  }
  0x91   :  { %s4666_s23 = smov [#allocation17]   ;;  %s4667_s28 = smov [#allocation20]  }
  0x92   :  { %s211_s26 = sshll.u32 %s4666_s23, 4  ;;  %s233_s1 = sshll.u32 %s4667_s28, 4  ;;  %s212_s26 = int_to_ptr.vmem [resolvable:$true] %s211_s26  ;;  %s234_s1 = int_to_ptr.vmem [resolvable:$true] %s233_s1 }
  0x93   :  { %s3992_s7 = scalar_lea.hbm %s4778_s12, 16 }
  0x94   :  { %p3993_p4 = scmp.ne.s32.totalorder %s4778_s12, %s3992_s7  ;;  %p3996_p5 = scmp.lt.u32.totalorder %s3992_s7, %s4778_s12 }
  0x96   :  { %p3998_p6 = pnand %p3996_p5, %p3993_p4 }
  0x98   :  { %4001 = shalt.err (!%p3998_p6)
}
  0x99   :  { %s4002_s10 = scalar_lea.vmem %s212_s26, 16  ;;  %s4006_s11 = scalar_lea.vmem %s212_s26, 32 }
  0x9a   :  { %p4003_p7 = scmp.ne.s32.totalorder %s212_s26, %s4002_s10  ;;  %p4007_p8 = scmp.lt.s32.totalorder %s212_s26, %s212_s26 }
  0x9b   :  { %p4008_p9 = scmp.lt.s32.totalorder %s4006_s11, %s4002_s10 }
  0x9d   :  { %p4009_p10 = por %p4008_p9, %p4007_p8 }
  0x9f   :  { %p4010_p11 = pnand %p4009_p10, %p4003_p7 }
  0xa1   :  { %4013 = shalt.err (!%p4010_p11)
}
  0xa2   :  { %214 = dma.hbm_to_vmem [thread:$0]  %s4778_s12, 16, %s212_s26, [#allocation18]  }
  0xa3   :  { %s4014_s30 = scalar_lea.hbm %s4788_s27, 16 }
  0xa4   :  { %p4015_p12 = scmp.ne.s32.totalorder %s4788_s27, %s4014_s30  ;;  %p4018_p13 = scmp.lt.u32.totalorder %s4014_s30, %s4788_s27 }
  0xa6   :  { %p4020_p0 = pnand %p4018_p13, %p4015_p12 }
  0xa8   :  { %4023 = shalt.err (!%p4020_p0)
}
  0xa9   :  { %s4024_s0 = scalar_lea.vmem %s234_s1, 16  ;;  %s4028_s15 = scalar_lea.vmem %s234_s1, 32 }
  0xaa   :  { %p4025_p1 = scmp.ne.s32.totalorder %s234_s1, %s4024_s0  ;;  %p4029_p2 = scmp.lt.s32.totalorder %s234_s1, %s234_s1 }
  0xab   :  { %p4030_p3 = scmp.lt.s32.totalorder %s4028_s15, %s4024_s0 }
  0xad   :  { %p4031_p4 = por %p4030_p3, %p4029_p2 }
  0xaf   :  { %p4032_p5 = pnand %p4031_p4, %p4025_p1 }
  0xb1   :  { %4035 = shalt.err (!%p4032_p5)
}
  0xb2   :  { %236 = dma.hbm_to_vmem [thread:$0]  %s4788_s27, 16, %s234_s1, [#allocation21]  }
  0xb3   :  { %s4668_s16 = smov [#allocation23]   ;;  %s4669_s29 = smov [#allocation26]  }
  0xb4   :  { %s254_s12 = sshll.u32 %s4668_s16, 4  ;;  %s276_s18 = sshll.u32 %s4669_s29, 4  ;;  %s255_s12 = int_to_ptr.vmem [resolvable:$true] %s254_s12  ;;  %s4944_s18 = int_to_ptr.vmem [resolvable:$true] %s276_s18 }
  0xb5   :  { %s4036_s23 = scalar_lea.hbm %s4803_s8, 1024 }
  0xb6   :  { %p4037_p6 = scmp.ne.s32.totalorder %s4803_s8, %s4036_s23  ;;  %p4040_p7 = scmp.lt.u32.totalorder %s4036_s23, %s4803_s8 }
  0xb8   :  { %p4042_p8 = pnand %p4040_p7, %p4037_p6 }
  0xba   :  { %4045 = shalt.err (!%p4042_p8)
}
  0xbb   :  { %s4046_s26 = scalar_lea.vmem %s255_s12, 1024  ;;  %p4051_p10 = scmp.lt.s32.totalorder %s255_s12, %s255_s12 }
  0xbc   :  { %p4047_p9 = scmp.ne.s32.totalorder %s255_s12, %s4046_s26  ;;  %p4052_p11 = scmp.lt.s32.totalorder %s4046_s26, %s4046_s26 }
  0xbe   :  { %p4053_p12 = por %p4052_p11, %p4051_p10 }
  0xc0   :  { %p4054_p13 = pnand %p4053_p12, %p4047_p9 }
  0xc2   :  { %4057 = shalt.err (!%p4054_p13)
}
  0xc3   :  { %260 = dma.hbm_to_vmem [thread:$0]  %s4803_s8, 1024, %s255_s12, [#allocation24], %s4660_s2, %s4660_s2, %s4661_s17  }
  0xc4   :  { %s4058_s27 = scalar_lea.hbm %s4813_s4, 896 }
  0xc5   :  { %p4059_p0 = scmp.ne.s32.totalorder %s4813_s4, %s4058_s27  ;;  %p4062_p1 = scmp.lt.u32.totalorder %s4058_s27, %s4813_s4 }
  0xc7   :  { %p4064_p2 = pnand %p4062_p1, %p4059_p0 }
  0xc9   :  { %4067 = shalt.err (!%p4064_p2)
}
  0xca   :  { %s4068_s28 = scalar_lea.vmem %s4944_s18, 896  ;;  %p4073_p4 = scmp.lt.s32.totalorder %s4944_s18, %s4944_s18 }
  0xcb   :  { %p4069_p3 = scmp.ne.s32.totalorder %s4944_s18, %s4068_s28  ;;  %p4074_p5 = scmp.lt.s32.totalorder %s4068_s28, %s4068_s28 }
  0xcd   :  { %p4075_p6 = por %p4074_p5, %p4073_p4 }
  0xcf   :  { %p4076_p7 = pnand %p4075_p6, %p4069_p3 }
  0xd1   :  { %4079 = shalt.err (!%p4076_p7)
}
  0xd2   :  { %282 = dma.hbm_to_vmem [thread:$0]  %s4813_s4, 896, %s4944_s18, [#allocation27], %s4660_s2, %s4660_s2, %s4661_s17  }
  0xd3   :  { %s4670_s8 = smov [#allocation29]   ;;  %s4671_s7 = smov [#allocation32]  }
  0xd4   :  { %s298_s1 = sshll.u32 %s4670_s8, 4  ;;  %s320_s10 = sshll.u32 %s4671_s7, 4  ;;  %s299_s1 = int_to_ptr.vmem [resolvable:$true] %s298_s1  ;;  %s4965_s10 = int_to_ptr.vmem [resolvable:$true] %s320_s10 }
  0xd5   :  { %s4080_s11 = scalar_lea.hbm %s4823_s9, 1024 }
  0xd6   :  { %p4081_p8 = scmp.ne.s32.totalorder %s4823_s9, %s4080_s11  ;;  %p4084_p9 = scmp.lt.u32.totalorder %s4080_s11, %s4823_s9 }
  0xd8   :  { %p4086_p10 = pnand %p4084_p9, %p4081_p8 }
  0xda   :  { %4089 = shalt.err (!%p4086_p10)
}
  0xdb   :  { %s4090_s30 = scalar_lea.vmem %s299_s1, 1024  ;;  %p4095_p12 = scmp.lt.s32.totalorder %s299_s1, %s299_s1 }
  0xdc   :  { %p4091_p11 = scmp.ne.s32.totalorder %s299_s1, %s4090_s30  ;;  %p4096_p13 = scmp.lt.s32.totalorder %s4090_s30, %s4090_s30 }
  0xde   :  { %p4097_p0 = por %p4096_p13, %p4095_p12 }
  0xe0   :  { %p4098_p1 = pnand %p4097_p0, %p4091_p11 }
  0xe2   :  { %4101 = shalt.err (!%p4098_p1)
}
  0xe3   :  { %304 = dma.hbm_to_vmem [thread:$0]  %s4823_s9, 1024, %s299_s1, [#allocation30], %s4660_s2, %s4660_s2, %s4661_s17  }
  0xe4   :  { %s4102_s4 = scalar_lea.hbm %s4833_s5, 1024 }
  0xe5   :  { %p4103_p2 = scmp.ne.s32.totalorder %s4833_s5, %s4102_s4  ;;  %p4106_p3 = scmp.lt.u32.totalorder %s4102_s4, %s4833_s5 }
  0xe7   :  { %p4108_p4 = pnand %p4106_p3, %p4103_p2 }
  0xe9   :  { %4111 = shalt.err (!%p4108_p4)
}
  0xea   :  { %s4112_s0 = scalar_lea.vmem %s4965_s10, 1024  ;;  %p4117_p6 = scmp.lt.s32.totalorder %s4965_s10, %s4965_s10 }
  0xeb   :  { %p4113_p5 = scmp.ne.s32.totalorder %s4965_s10, %s4112_s0  ;;  %p4118_p7 = scmp.lt.s32.totalorder %s4112_s0, %s4112_s0 }
  0xed   :  { %p4119_p8 = por %p4118_p7, %p4117_p6 }
  0xef   :  { %p4120_p9 = pnand %p4119_p8, %p4113_p5 }
  0xf1   :  { %4123 = shalt.err (!%p4120_p9)
}
  0xf2   :  { %326 = dma.hbm_to_vmem [thread:$0]  %s4833_s5, 1024, %s4965_s10, [#allocation33], %s4660_s2, %s4660_s2, %s4661_s17  }
  0xf3   :  { %s4672_s9 = smov [#allocation35]   ;;  %s4673_s16 = smov [#allocation38]  }
  0xf4   :  { %s342_s15 = sshll.u32 %s4672_s9, 4  ;;  %s367_s12 = sshll.u32 %s4673_s16, 4  ;;  %s343_s15 = int_to_ptr.vmem [resolvable:$true] %s342_s15  ;;  %s368_s12 = int_to_ptr.vmem [resolvable:$true] %s367_s12 }
  0xf5   :  { %s4124_s29 = scalar_lea.hbm %s4843_s20, 4352 }
  0xf6   :  { %p4125_p10 = scmp.ne.s32.totalorder %s4843_s20, %s4124_s29  ;;  %p4128_p11 = scmp.lt.u32.totalorder %s4124_s29, %s4843_s20 }
  0xf8   :  { %p4130_p12 = pnand %p4128_p11, %p4125_p10 }
  0xfa   :  { %4133 = shalt.err (!%p4130_p12)
}
  0xfb   :  { %s4134_s18 = scalar_lea.vmem %s343_s15, 4352  ;;  %p4139_p0 = scmp.lt.s32.totalorder %s343_s15, %s343_s15 }
  0xfc   :  { %p4135_p13 = scmp.ne.s32.totalorder %s343_s15, %s4134_s18  ;;  %p4140_p1 = scmp.lt.s32.totalorder %s4134_s18, %s4134_s18 }
  0xfe   :  { %p4141_p2 = por %p4140_p1, %p4139_p0 }
 0x100   :  { %p4142_p3 = pnand %p4141_p2, %p4135_p13 }
 0x102   :  { %4145 = shalt.err (!%p4142_p3)
}
 0x103   :  { %348 = dma.hbm_to_vmem [thread:$0]  %s4843_s20, 4352, %s343_s15, [#allocation36], %s4664_s22, %s4664_s22, %s4665_s19  }
 0x104   :  { %s4146_s5 = scalar_lea.hbm %s4853_s6, 32 }
 0x105   :  { %p4147_p4 = scmp.ne.s32.totalorder %s4853_s6, %s4146_s5  ;;  %p4150_p5 = scmp.lt.u32.totalorder %s4146_s5, %s4853_s6 }
 0x107   :  { %p4152_p6 = pnand %p4150_p5, %p4147_p4 }
 0x109   :  { %4155 = shalt.err (!%p4152_p6)
}
 0x10a   :  { %s4156_s23 = scalar_lea.vmem %s368_s12, 32  ;;  %p4161_p8 = scmp.lt.s32.totalorder %s368_s12, %s368_s12 }
 0x10b   :  { %p4157_p7 = scmp.ne.s32.totalorder %s368_s12, %s4156_s23  ;;  %p4162_p9 = scmp.lt.s32.totalorder %s4156_s23, %s4156_s23 }
 0x10d   :  { %p4163_p10 = por %p4162_p9, %p4161_p8 }
 0x10f   :  { %p4164_p11 = pnand %p4163_p10, %p4157_p7 }
 0x111   :  { %4167 = shalt.err (!%p4164_p11)
}
 0x112   :  { %370 = dma.hbm_to_vmem [thread:$0]  %s4853_s6, 32, %s368_s12, [#allocation39]  }
 0x113   :  { %s4674_s26 = smov [#allocation41]   ;;  %s4675_s20 = smov [#allocation44]  }
 0x114   :  { %s388_s27 = sshll.u32 %s4674_s26, 4  ;;  %s410_s28 = sshll.u32 %s4675_s20, 4  ;;  %s389_s27 = int_to_ptr.vmem [resolvable:$true] %s388_s27  ;;  %s4997_s28 = int_to_ptr.vmem [resolvable:$true] %s410_s28 }
 0x115   :  { %s4168_s8 = scalar_lea.hbm %s4868_s14, 2560 }
 0x116   :  { %p4169_p12 = scmp.ne.s32.totalorder %s4868_s14, %s4168_s8  ;;  %p4172_p13 = scmp.lt.u32.totalorder %s4168_s8, %s4868_s14 }
 0x118   :  { %p4174_p0 = pnand %p4172_p13, %p4169_p12 }
 0x11a   :  { %4177 = shalt.err (!%p4174_p0)
}
 0x11b   :  { %s4178_s1 = scalar_lea.vmem %s389_s27, 2560  ;;  %p4183_p2 = scmp.lt.s32.totalorder %s389_s27, %s389_s27 }
 0x11c   :  { %p4179_p1 = scmp.ne.s32.totalorder %s389_s27, %s4178_s1  ;;  %p4184_p3 = scmp.lt.s32.totalorder %s4178_s1, %s4178_s1 }
 0x11e   :  { %p4185_p4 = por %p4184_p3, %p4183_p2 }
 0x120   :  { %p4186_p5 = pnand %p4185_p4, %p4179_p1 }
 0x122   :  { %4189 = shalt.err (!%p4186_p5)
}
 0x123   :  { %394 = dma.hbm_to_vmem [thread:$0]  %s4868_s14, 2560, %s389_s27, [#allocation42], %s4660_s2, %s4660_s2, %s4661_s17  }
 0x124   :  { %s4190_s6 = scalar_lea.hbm %s4878_s21, 2048 }
 0x125   :  { %p4191_p6 = scmp.ne.s32.totalorder %s4878_s21, %s4190_s6  ;;  %p4194_p7 = scmp.lt.u32.totalorder %s4190_s6, %s4878_s21 }
 0x127   :  { %p4196_p8 = pnand %p4194_p7, %p4191_p6 }
 0x129   :  { %4199 = shalt.err (!%p4196_p8)
}
 0x12a   :  { %s4200_s7 = scalar_lea.vmem %s4997_s28, 2048  ;;  %p4205_p10 = scmp.lt.s32.totalorder %s4997_s28, %s4997_s28 }
 0x12b   :  { %p4201_p9 = scmp.ne.s32.totalorder %s4997_s28, %s4200_s7  ;;  %p4206_p11 = scmp.lt.s32.totalorder %s4200_s7, %s4200_s7 }
 0x12d   :  { %p4207_p12 = por %p4206_p11, %p4205_p10 }
 0x12f   :  { %p4208_p13 = pnand %p4207_p12, %p4201_p9 }
 0x131   :  { %4211 = shalt.err (!%p4208_p13)
}
 0x132   :  { %s5543_s14 = sld [smem:[#allocation69_spill]]  ;;  %s4676_s10 = smov [#allocation2]  }
 0x133   :  { %416 = dma.hbm_to_vmem [thread:$0]  %s4878_s21, 2048, %s4997_s28, [#allocation45], %s4660_s2, %s4660_s2, %s4661_s17  }
 0x134   :  { %s108_s11 = sshll.u32 %s4676_s10, 4  ;;  %s109_s11 = int_to_ptr.vmem [resolvable:$true] %s108_s11 }
 0x138   :  { %s4212_s30 = scalar_lea.hbm %s5543_s14, 9984 }
 0x139   :  { %p4213_p0 = scmp.ne.s32.totalorder %s5543_s14, %s4212_s30  ;;  %p4216_p1 = scmp.lt.u32.totalorder %s4212_s30, %s5543_s14 }
 0x13b   :  { %p4218_p2 = pnand %p4216_p1, %p4213_p0 }
 0x13d   :  { %4221 = shalt.err (!%p4218_p2)
}
 0x13e   :  { %s4222_s4 = scalar_lea.vmem %s109_s11, 9984  ;;  %p4227_p4 = scmp.lt.s32.totalorder %s109_s11, %s109_s11 }
 0x13f   :  { %p4223_p3 = scmp.ne.s32.totalorder %s109_s11, %s4222_s4  ;;  %p4228_p5 = scmp.lt.s32.totalorder %s4222_s4, %s4222_s4 }
 0x141   :  { %p4229_p6 = por %p4228_p5, %p4227_p4 }
 0x143   :  { %p4230_p7 = pnand %p4229_p6, %p4223_p3 }
 0x145   :  { %4233 = shalt.err (!%p4230_p7)
}
 0x146   :  { %s4677_s0 = smov 384   ;;  %s5544_s9 = sld [smem:[#allocation71_spill]] }
 0x147   :  { %s4678_s21 = smov 24   ;;  %s4679_s15 = smov [#allocation7]  }
 0x148   :  { %114 = dma.hbm_to_vmem [thread:$0]  %s5543_s14, 9984, %s109_s11, [#allocation3], %s4677_s0, %s4677_s0, %s4678_s21  }
 0x149   :  { %s133_s16 = sshll.u32 %s4679_s15, 4  ;;  %s4680_s12 = smov [#allocation10]   ;;  %s134_s16 = int_to_ptr.vmem [resolvable:$true] %s133_s16 }
 0x14a   :  { %s155_s29 = sshll.u32 %s4680_s12, 4  ;;  %s156_s29 = int_to_ptr.vmem [resolvable:$true] %s155_s29 }
 0x14c   :  { %s4234_s18 = scalar_lea.hbm %s5544_s9, 32 }
 0x14d   :  { %p4235_p8 = scmp.ne.s32.totalorder %s5544_s9, %s4234_s18  ;;  %p4238_p9 = scmp.lt.u32.totalorder %s4234_s18, %s5544_s9 }
 0x14f   :  { %p4240_p10 = pnand %p4238_p9, %p4235_p8 }
 0x151   :  { %4243 = shalt.err (!%p4240_p10)
}
 0x152   :  { %s4244_s5 = scalar_lea.vmem %s134_s16, 32  ;;  %p4249_p12 = scmp.lt.s32.totalorder %s134_s16, %s134_s16 }
 0x153   :  { %p4245_p11 = scmp.ne.s32.totalorder %s134_s16, %s4244_s5  ;;  %p4250_p13 = scmp.lt.s32.totalorder %s4244_s5, %s4244_s5 }
 0x155   :  { %p4251_p0 = por %p4250_p13, %p4249_p12 }
 0x157   :  { %p4252_p1 = pnand %p4251_p0, %p4245_p11 }
 0x159   :  { %4255 = shalt.err (!%p4252_p1)
}
 0x15a   :  { %s5545_s23 = sld [smem:[#allocation72_spill]] }
 0x15b   :  { %136 = dma.hbm_to_vmem [thread:$0]  %s5544_s9, 32, %s134_s16, [#allocation6]  }
 0x160   :  { %s4256_s26 = scalar_lea.hbm %s5545_s23, 16 }
 0x161   :  { %p4257_p2 = scmp.ne.s32.totalorder %s5545_s23, %s4256_s26  ;;  %p4260_p3 = scmp.lt.u32.totalorder %s4256_s26, %s5545_s23 }
 0x163   :  { %p4262_p4 = pnand %p4260_p3, %p4257_p2 }
 0x165   :  { %4265 = shalt.err (!%p4262_p4)
}
 0x166   :  { %s4266_s27 = scalar_lea.vmem %s156_s29, 16  ;;  %s4270_s20 = scalar_lea.vmem %s156_s29, 32 }
 0x167   :  { %p4267_p5 = scmp.ne.s32.totalorder %s156_s29, %s4266_s27  ;;  %p4271_p6 = scmp.lt.s32.totalorder %s156_s29, %s156_s29 }
 0x168   :  { %p4272_p7 = scmp.lt.s32.totalorder %s4270_s20, %s4266_s27 }
 0x16a   :  { %p4273_p8 = por %p4272_p7, %p4271_p6 }
 0x16c   :  { %p4274_p9 = pnand %p4273_p8, %p4267_p5 }
 0x16e   :  { %4277 = shalt.err (!%p4274_p9)
}
 0x16f   :  { %s5546_s28 = sld [smem:[#allocation75_spill]]  ;;  %s4681_s8 = smov [#allocation13]  }
 0x170   :  { %158 = dma.hbm_to_vmem [thread:$0]  %s5545_s23, 16, %s156_s29, [#allocation9]  }
 0x171   :  { %s179_s1 = sshll.u32 %s4681_s8, 4  ;;  %s4682_s6 = smov [#allocation16]   ;;  %s180_s1 = int_to_ptr.vmem [resolvable:$true] %s179_s1 }
 0x172   :  { %s201_s7 = sshll.u32 %s4682_s6, 4  ;;  %s202_s7 = int_to_ptr.vmem [resolvable:$true] %s201_s7 }
 0x175   :  { %s4278_s14 = scalar_lea.hbm %s5546_s28, 16 }
 0x176   :  { %p4279_p10 = scmp.ne.s32.totalorder %s5546_s28, %s4278_s14  ;;  %p4282_p11 = scmp.lt.u32.totalorder %s4278_s14, %s5546_s28 }
 0x178   :  { %p4284_p12 = pnand %p4282_p11, %p4279_p10 }
 0x17a   :  { %4287 = shalt.err (!%p4284_p12)
}
 0x17b   :  { %s4288_s10 = scalar_lea.vmem %s180_s1, 16  ;;  %s4292_s11 = scalar_lea.vmem %s180_s1, 32 }
 0x17c   :  { %p4289_p13 = scmp.ne.s32.totalorder %s180_s1, %s4288_s10  ;;  %p4293_p0 = scmp.lt.s32.totalorder %s180_s1, %s180_s1 }
 0x17d   :  { %p4294_p1 = scmp.lt.s32.totalorder %s4292_s11, %s4288_s10 }
 0x17f   :  { %p4295_p2 = por %p4294_p1, %p4293_p0 }
 0x181   :  { %p4296_p3 = pnand %p4295_p2, %p4289_p13 }
 0x183   :  { %4299 = shalt.err (!%p4296_p3)
}
 0x184   :  { %s5547_s30 = sld [smem:[#allocation76_spill]] }
 0x185   :  { %182 = dma.hbm_to_vmem [thread:$0]  %s5546_s28, 16, %s180_s1, [#allocation12]  }
 0x18a   :  { %s4300_s4 = scalar_lea.hbm %s5547_s30, 32 }
 0x18b   :  { %p4301_p4 = scmp.ne.s32.totalorder %s5547_s30, %s4300_s4  ;;  %p4304_p5 = scmp.lt.u32.totalorder %s4300_s4, %s5547_s30 }
 0x18d   :  { %p4306_p6 = pnand %p4304_p5, %p4301_p4 }
 0x18f   :  { %4309 = shalt.err (!%p4306_p6)
}
 0x190   :  { %s4310_s0 = scalar_lea.vmem %s202_s7, 32  ;;  %p4315_p8 = scmp.lt.s32.totalorder %s202_s7, %s202_s7 }
 0x191   :  { %p4311_p7 = scmp.ne.s32.totalorder %s202_s7, %s4310_s0  ;;  %p4316_p9 = scmp.lt.s32.totalorder %s4310_s0, %s4310_s0 }
 0x193   :  { %p4317_p10 = por %p4316_p9, %p4315_p8 }
 0x195   :  { %p4318_p11 = pnand %p4317_p10, %p4311_p7 }
 0x197   :  { %4321 = shalt.err (!%p4318_p11)
}
 0x198   :  { %s5548_s9 = sld [smem:[#allocation77_spill]]  ;;  %s4683_s21 = smov [#allocation19]  }
 0x199   :  { %204 = dma.hbm_to_vmem [thread:$0]  %s5547_s30, 32, %s202_s7, [#allocation15]  }
 0x19a   :  { %s220_s15 = sshll.u32 %s4683_s21, 4  ;;  %s4684_s16 = smov [#allocation22]   ;;  %s221_s15 = int_to_ptr.vmem [resolvable:$true] %s220_s15 }
 0x19b   :  { %s245_s12 = sshll.u32 %s4684_s16, 4  ;;  %s246_s12 = int_to_ptr.vmem [resolvable:$true] %s245_s12 }
 0x19e   :  { %s4322_s29 = scalar_lea.hbm %s5548_s9, 896 }
 0x19f   :  { %p4323_p12 = scmp.ne.s32.totalorder %s5548_s9, %s4322_s29  ;;  %p4326_p13 = scmp.lt.u32.totalorder %s4322_s29, %s5548_s9 }
 0x1a1   :  { %p4328_p0 = pnand %p4326_p13, %p4323_p12 }
 0x1a3   :  { %4331 = shalt.err (!%p4328_p0)
}
 0x1a4   :  { %s4332_s18 = scalar_lea.vmem %s221_s15, 896  ;;  %p4337_p2 = scmp.lt.s32.totalorder %s221_s15, %s221_s15 }
 0x1a5   :  { %p4333_p1 = scmp.ne.s32.totalorder %s221_s15, %s4332_s18  ;;  %p4338_p3 = scmp.lt.s32.totalorder %s4332_s18, %s4332_s18 }
 0x1a7   :  { %p4339_p4 = por %p4338_p3, %p4337_p2 }
 0x1a9   :  { %p4340_p5 = pnand %p4339_p4, %p4333_p1 }
 0x1ab   :  { %4343 = shalt.err (!%p4340_p5)
}
 0x1ac   :  { %s5549_s5 = sld [smem:[#allocation79_spill]] }
 0x1ad   :  { %226 = dma.hbm_to_vmem [thread:$0]  %s5548_s9, 896, %s221_s15, [#allocation18], %s4660_s2, %s4660_s2, %s4661_s17  }
 0x1b2   :  { %s4344_s23 = scalar_lea.hbm %s5549_s5, 16 }
 0x1b3   :  { %p4345_p6 = scmp.ne.s32.totalorder %s5549_s5, %s4344_s23  ;;  %p4348_p7 = scmp.lt.u32.totalorder %s4344_s23, %s5549_s5 }
 0x1b5   :  { %p4350_p8 = pnand %p4348_p7, %p4345_p6 }
 0x1b7   :  { %4353 = shalt.err (!%p4350_p8)
}
 0x1b8   :  { %s4354_s26 = scalar_lea.vmem %s246_s12, 16  ;;  %s4358_s27 = scalar_lea.vmem %s246_s12, 32 }
 0x1b9   :  { %p4355_p9 = scmp.ne.s32.totalorder %s246_s12, %s4354_s26  ;;  %p4359_p10 = scmp.lt.s32.totalorder %s246_s12, %s246_s12 }
 0x1ba   :  { %p4360_p11 = scmp.lt.s32.totalorder %s4358_s27, %s4354_s26 }
 0x1bc   :  { %p4361_p12 = por %p4360_p11, %p4359_p10 }
 0x1be   :  { %p4362_p13 = pnand %p4361_p12, %p4355_p9 }
 0x1c0   :  { %4365 = shalt.err (!%p4362_p13)
}
 0x1c1   :  { %s5550_s20 = sld [smem:[#allocation80_spill]]  ;;  %s4685_s28 = smov [#allocation25]  }
 0x1c2   :  { %248 = dma.hbm_to_vmem [thread:$0]  %s5549_s5, 16, %s246_s12, [#allocation21]  }
 0x1c3   :  { %s267_s8 = sshll.u32 %s4685_s28, 4  ;;  %s4686_s1 = smov [#allocation28]   ;;  %s268_s8 = int_to_ptr.vmem [resolvable:$true] %s267_s8 }
 0x1c4   :  { %s289_s6 = sshll.u32 %s4686_s1, 4  ;;  %s290_s6 = int_to_ptr.vmem [resolvable:$true] %s289_s6 }
 0x1c7   :  { %s4366_s7 = scalar_lea.hbm %s5550_s20, 16 }
 0x1c8   :  { %p4367_p0 = scmp.ne.s32.totalorder %s5550_s20, %s4366_s7  ;;  %p4370_p1 = scmp.lt.u32.totalorder %s4366_s7, %s5550_s20 }
 0x1ca   :  { %p4372_p2 = pnand %p4370_p1, %p4367_p0 }
 0x1cc   :  { %4375 = shalt.err (!%p4372_p2)
}
 0x1cd   :  { %s4376_s14 = scalar_lea.vmem %s268_s8, 16  ;;  %s4380_s10 = scalar_lea.vmem %s268_s8, 32 }
 0x1ce   :  { %p4377_p3 = scmp.ne.s32.totalorder %s268_s8, %s4376_s14  ;;  %p4381_p4 = scmp.lt.s32.totalorder %s268_s8, %s268_s8 }
 0x1cf   :  { %p4382_p5 = scmp.lt.s32.totalorder %s4380_s10, %s4376_s14 }
 0x1d1   :  { %p4383_p6 = por %p4382_p5, %p4381_p4 }
 0x1d3   :  { %p4384_p7 = pnand %p4383_p6, %p4377_p3 }
 0x1d5   :  { %4387 = shalt.err (!%p4384_p7)
}
 0x1d6   :  { %s5551_s11 = sld [smem:[#allocation81_spill]] }
 0x1d7   :  { %270 = dma.hbm_to_vmem [thread:$0]  %s5550_s20, 16, %s268_s8, [#allocation24]  }
 0x1dc   :  { %s4388_s30 = scalar_lea.hbm %s5551_s11, 16 }
 0x1dd   :  { %p4389_p8 = scmp.ne.s32.totalorder %s5551_s11, %s4388_s30  ;;  %p4392_p9 = scmp.lt.u32.totalorder %s4388_s30, %s5551_s11 }
 0x1df   :  { %p4394_p10 = pnand %p4392_p9, %p4389_p8 }
 0x1e1   :  { %4397 = shalt.err (!%p4394_p10)
}
 0x1e2   :  { %s4398_s4 = scalar_lea.vmem %s290_s6, 16  ;;  %s4402_s0 = scalar_lea.vmem %s290_s6, 32 }
 0x1e3   :  { %p4399_p11 = scmp.ne.s32.totalorder %s290_s6, %s4398_s4  ;;  %p4403_p12 = scmp.lt.s32.totalorder %s290_s6, %s290_s6 }
 0x1e4   :  { %p4404_p13 = scmp.lt.s32.totalorder %s4402_s0, %s4398_s4 }
 0x1e6   :  { %p4405_p0 = por %p4404_p13, %p4403_p12 }
 0x1e8   :  { %p4406_p1 = pnand %p4405_p0, %p4399_p11 }
 0x1ea   :  { %4409 = shalt.err (!%p4406_p1)
}
 0x1eb   :  { %s5552_s9 = sld [smem:[#allocation82_spill]]  ;;  %s4687_s21 = smov [#allocation31]  }
 0x1ec   :  { %292 = dma.hbm_to_vmem [thread:$0]  %s5551_s11, 16, %s290_s6, [#allocation27]  }
 0x1ed   :  { %s311_s15 = sshll.u32 %s4687_s21, 4  ;;  %s4688_s16 = smov [#allocation34]   ;;  %s312_s15 = int_to_ptr.vmem [resolvable:$true] %s311_s15 }
 0x1ee   :  { %s333_s12 = sshll.u32 %s4688_s16, 4  ;;  %s334_s12 = int_to_ptr.vmem [resolvable:$true] %s333_s12 }
 0x1f1   :  { %s4410_s29 = scalar_lea.hbm %s5552_s9, 16 }
 0x1f2   :  { %p4411_p2 = scmp.ne.s32.totalorder %s5552_s9, %s4410_s29  ;;  %p4414_p3 = scmp.lt.u32.totalorder %s4410_s29, %s5552_s9 }
 0x1f4   :  { %p4416_p4 = pnand %p4414_p3, %p4411_p2 }
 0x1f6   :  { %4419 = shalt.err (!%p4416_p4)
}
 0x1f7   :  { %s4420_s18 = scalar_lea.vmem %s312_s15, 16  ;;  %s4424_s5 = scalar_lea.vmem %s312_s15, 32 }
 0x1f8   :  { %p4421_p5 = scmp.ne.s32.totalorder %s312_s15, %s4420_s18  ;;  %p4425_p6 = scmp.lt.s32.totalorder %s312_s15, %s312_s15 }
 0x1f9   :  { %p4426_p7 = scmp.lt.s32.totalorder %s4424_s5, %s4420_s18 }
 0x1fb   :  { %p4427_p8 = por %p4426_p7, %p4425_p6 }
 0x1fd   :  { %p4428_p9 = pnand %p4427_p8, %p4421_p5 }
 0x1ff   :  { %4431 = shalt.err (!%p4428_p9)
}
 0x200   :  { %s5553_s23 = sld [smem:[#allocation83_spill]] }
 0x201   :  { %314 = dma.hbm_to_vmem [thread:$0]  %s5552_s9, 16, %s312_s15, [#allocation30]  }
 0x206   :  { %s4432_s26 = scalar_lea.hbm %s5553_s23, 16 }
 0x207   :  { %p4433_p10 = scmp.ne.s32.totalorder %s5553_s23, %s4432_s26  ;;  %p4436_p11 = scmp.lt.u32.totalorder %s4432_s26, %s5553_s23 }
 0x209   :  { %p4438_p12 = pnand %p4436_p11, %p4433_p10 }
 0x20b   :  { %4441 = shalt.err (!%p4438_p12)
}
 0x20c   :  { %s4442_s27 = scalar_lea.vmem %s334_s12, 16  ;;  %s4446_s20 = scalar_lea.vmem %s334_s12, 32 }
 0x20d   :  { %p4443_p13 = scmp.ne.s32.totalorder %s334_s12, %s4442_s27  ;;  %p4447_p0 = scmp.lt.s32.totalorder %s334_s12, %s334_s12 }
 0x20e   :  { %p4448_p1 = scmp.lt.s32.totalorder %s4446_s20, %s4442_s27 }
 0x210   :  { %p4449_p2 = por %p4448_p1, %p4447_p0 }
 0x212   :  { %p4450_p3 = pnand %p4449_p2, %p4443_p13 }
 0x214   :  { %4453 = shalt.err (!%p4450_p3)
}
 0x215   :  { %s5554_s28 = sld [smem:[#allocation84_spill]]  ;;  %s4689_s8 = smov [#allocation37]  }
 0x216   :  { %336 = dma.hbm_to_vmem [thread:$0]  %s5553_s23, 16, %s334_s12, [#allocation33]  }
 0x217   :  { %s354_s1 = sshll.u32 %s4689_s8, 4  ;;  %s4690_s6 = smov [#allocation40]   ;;  %s355_s1 = int_to_ptr.vmem [resolvable:$true] %s354_s1 }
 0x218   :  { %s379_s7 = sshll.u32 %s4690_s6, 4  ;;  %s380_s7 = int_to_ptr.vmem [resolvable:$true] %s379_s7 }
 0x21b   :  { %s4454_s14 = scalar_lea.hbm %s5554_s28, 3840 }
 0x21c   :  { %p4455_p4 = scmp.ne.s32.totalorder %s5554_s28, %s4454_s14  ;;  %p4458_p5 = scmp.lt.u32.totalorder %s4454_s14, %s5554_s28 }
 0x21e   :  { %p4460_p6 = pnand %p4458_p5, %p4455_p4 }
 0x220   :  { %4463 = shalt.err (!%p4460_p6)
}
 0x221   :  { %s4464_s10 = scalar_lea.vmem %s355_s1, 3840  ;;  %p4469_p8 = scmp.lt.s32.totalorder %s355_s1, %s355_s1 }
 0x222   :  { %p4465_p7 = scmp.ne.s32.totalorder %s355_s1, %s4464_s10  ;;  %p4470_p9 = scmp.lt.s32.totalorder %s4464_s10, %s4464_s10 }
 0x224   :  { %p4471_p10 = por %p4470_p9, %p4469_p8 }
 0x226   :  { %p4472_p11 = pnand %p4471_p10, %p4465_p7 }
 0x228   :  { %4475 = shalt.err (!%p4472_p11)
}
 0x229   :  { %s5555_s11 = sld [smem:[#allocation86_spill]] }
 0x22a   :  { %360 = dma.hbm_to_vmem [thread:$0]  %s5554_s28, 3840, %s355_s1, [#allocation36], %s4664_s22, %s4664_s22, %s4665_s19  }
 0x22f   :  { %s4476_s30 = scalar_lea.hbm %s5555_s11, 32 }
 0x230   :  { %p4477_p12 = scmp.ne.s32.totalorder %s5555_s11, %s4476_s30  ;;  %p4480_p13 = scmp.lt.u32.totalorder %s4476_s30, %s5555_s11 }
 0x232   :  { %p4482_p0 = pnand %p4480_p13, %p4477_p12 }
 0x234   :  { %4485 = shalt.err (!%p4482_p0)
}
 0x235   :  { %s4486_s4 = scalar_lea.vmem %s380_s7, 32  ;;  %p4491_p2 = scmp.lt.s32.totalorder %s380_s7, %s380_s7 }
 0x236   :  { %p4487_p1 = scmp.ne.s32.totalorder %s380_s7, %s4486_s4  ;;  %p4492_p3 = scmp.lt.s32.totalorder %s4486_s4, %s4486_s4 }
 0x238   :  { %p4493_p4 = por %p4492_p3, %p4491_p2 }
 0x23a   :  { %p4494_p5 = pnand %p4493_p4, %p4487_p1 }
 0x23c   :  { %4497 = shalt.err (!%p4494_p5)
}
 0x23d   :  { %s5556_s0 = sld [smem:[#allocation87_spill]]  ;;  %s4691_s9 = smov [#allocation43]  }
 0x23e   :  { %382 = dma.hbm_to_vmem [thread:$0]  %s5555_s11, 32, %s380_s7, [#allocation39]  }
 0x23f   :  { %s401_s22 = sshll.u32 %s4691_s9, 4  ;;  %s4692_s19 = smov [#allocation46]   ;;  %s402_s22 = int_to_ptr.vmem [resolvable:$true] %s401_s22 }
 0x240   :  { %s423_s21 = sshll.u32 %s4692_s19, 4  ;;  %s424_s21 = int_to_ptr.vmem [resolvable:$true] %s423_s21 }
 0x243   :  { %s4498_s15 = scalar_lea.hbm %s5556_s0, 16 }
 0x244   :  { %p4499_p6 = scmp.ne.s32.totalorder %s5556_s0, %s4498_s15  ;;  %p4502_p7 = scmp.lt.u32.totalorder %s4498_s15, %s5556_s0 }
 0x246   :  { %p4504_p8 = pnand %p4502_p7, %p4499_p6 }
 0x248   :  { %4507 = shalt.err (!%p4504_p8)
}
 0x249   :  { %s4508_s16 = scalar_lea.vmem %s402_s22, 16  ;;  %s4512_s12 = scalar_lea.vmem %s402_s22, 32 }
 0x24a   :  { %p4509_p9 = scmp.ne.s32.totalorder %s402_s22, %s4508_s16  ;;  %p4513_p10 = scmp.lt.s32.totalorder %s402_s22, %s402_s22 }
 0x24b   :  { %p4514_p11 = scmp.lt.s32.totalorder %s4512_s12, %s4508_s16 }
 0x24d   :  { %p4515_p12 = por %p4514_p11, %p4513_p10 }
 0x24f   :  { %p4516_p13 = pnand %p4515_p12, %p4509_p9 }
 0x251   :  { %4519 = shalt.err (!%p4516_p13)
}
 0x252   :  { %404 = dma.hbm_to_vmem [thread:$0]  %s5556_s0, 16, %s402_s22, [#allocation42]  }
 0x253   :  { %s4520_s29 = scalar_lea.hbm %s4883_s24, 16 }
 0x254   :  { %p4521_p0 = scmp.ne.s32.totalorder %s4883_s24, %s4520_s29  ;;  %p4524_p1 = scmp.lt.u32.totalorder %s4520_s29, %s4883_s24 }
 0x256   :  { %p4526_p2 = pnand %p4524_p1, %p4521_p0 }
 0x258   :  { %4529 = shalt.err (!%p4526_p2)
}
 0x259   :  { %s4530_s18 = scalar_lea.vmem %s424_s21, 16  ;;  %s4534_s5 = scalar_lea.vmem %s424_s21, 32 }
 0x25a   :  { %p4531_p3 = scmp.ne.s32.totalorder %s424_s21, %s4530_s18  ;;  %p4535_p4 = scmp.lt.s32.totalorder %s424_s21, %s424_s21 }
 0x25b   :  { %p4536_p5 = scmp.lt.s32.totalorder %s4534_s5, %s4530_s18 }
 0x25d   :  { %p4537_p6 = por %p4536_p5, %p4535_p4 }
 0x25f   :  { %p4538_p7 = pnand %p4537_p6, %p4531_p3 }
 0x261   :  { %4541 = shalt.err (!%p4538_p7)
}
 0x262   :  { %426 = dma.hbm_to_vmem [thread:$0]  %s4883_s24, 16, %s424_s21, [#allocation45]  }
 0x263   :  { %s4693_s23 = smov [#allocation47]   ;;  %s4542_s27 = scalar_lea.hbm %s4893_s3, 896 }
 0x264   :  { %s434_s26 = sshll.u32 %s4693_s23, 4  ;;  %p4543_p8 = scmp.ne.s32.totalorder %s4893_s3, %s4542_s27  ;;  %s435_s26 = int_to_ptr.vmem [resolvable:$true] %s434_s26 }
 0x265   :  { %p4546_p9 = scmp.lt.u32.totalorder %s4542_s27, %s4893_s3 }
 0x267   :  { %p4548_p10 = pnand %p4546_p9, %p4543_p8 }
 0x269   :  { %4551 = shalt.err (!%p4548_p10)
}
 0x26a   :  { %s4552_s20 = scalar_lea.vmem %s435_s26, 896  ;;  %p4557_p12 = scmp.lt.s32.totalorder %s435_s26, %s435_s26 }
 0x26b   :  { %p4553_p11 = scmp.ne.s32.totalorder %s435_s26, %s4552_s20  ;;  %p4558_p13 = scmp.lt.s32.totalorder %s4552_s20, %s4552_s20 }
 0x26d   :  { %p4559_p0 = por %p4558_p13, %p4557_p12 }
 0x26f   :  { %p4560_p1 = pnand %p4559_p0, %p4553_p11 }
 0x271   :  { %4563 = shalt.err (!%p4560_p1)
}
 0x272   :  { %440 = dma.hbm_to_vmem [thread:$0]  %s4893_s3, 896, %s435_s26, [#allocation48], %s4660_s2, %s4660_s2, %s4661_s17  }
 0x273   :  { %4586 = dma.done.wait [#allocation3], 9984  }
 0x274   :  { %4587 = vsyncadd [#allocation3], 4294957312 }
 0x275   :  { %4588 = dma.done.wait [#allocation6], 80  }
 0x276   :  { %4589 = vsyncadd [#allocation6], 4294967216 }
 0x277   :  { %4590 = dma.done.wait [#allocation9], 3856  }
 0x278   :  { %4591 = vsyncadd [#allocation9], 4294963440 }
 0x279   :  { %4592 = dma.done.wait [#allocation12], 48  }
 0x27a   :  { %4593 = vsyncadd [#allocation12], 4294967248 }
 0x27b   :  { %4594 = dma.done.wait [#allocation15], 1824  }
 0x27c   :  { %4595 = vsyncadd [#allocation15], 4294965472 }
 0x27d   :  { %4596 = dma.done.wait [#allocation18], 912  }
 0x27e   :  { %4597 = vsyncadd [#allocation18], 4294966384 }
 0x27f   :  { %4598 = dma.done.wait [#allocation21], 32  }
 0x280   :  { %4599 = vsyncadd [#allocation21], 4294967264 }
 0x281   :  { %4600 = dma.done.wait [#allocation24], 1040  }
 0x282   :  { %4601 = vsyncadd [#allocation24], 4294966256 }
 0x283   :  { %4602 = dma.done.wait [#allocation27], 912  }
 0x284   :  { %4603 = vsyncadd [#allocation27], 4294966384 }
 0x285   :  { %4604 = dma.done.wait [#allocation30], 1040  }
 0x286   :  { %4605 = vsyncadd [#allocation30], 4294966256 }
 0x287   :  { %4606 = dma.done.wait [#allocation33], 1040  }
 0x288   :  { %4607 = vsyncadd [#allocation33], 4294966256 }
 0x289   :  { %4608 = dma.done.wait [#allocation36], 8192  }
 0x28a   :  { %4609 = vsyncadd [#allocation36], 4294959104 }
 0x28b   :  { %4610 = dma.done.wait [#allocation39], 64  }
 0x28c   :  { %4611 = vsyncadd [#allocation39], 4294967232 }
 0x28d   :  { %4612 = dma.done.wait [#allocation42], 2576  }
 0x28e   :  { %4613 = vsyncadd [#allocation42], 4294964720 }
 0x28f   :  { %4614 = dma.done.wait [#allocation45], 2064  }
 0x290   :  { %4615 = vsyncadd [#allocation45], 4294965232 }
 0x291   :  { %4616 = dma.done.wait [#allocation48], 896  }
 0x292   :  { %4617 = vsyncadd [#allocation48], 4294966400  ;;  %v4694_v0 = vmov 0.0|0.0   ;;  %v534_v1 = vld [vmem:[#allocation2 + $0x8] sm:$0xff]  ;;  %v537_v2 = vld [vmem:[#allocation2 + $0x20] sm:$0xff]  ;;  %s5557_s3 = sld [smem:[#allocation68_spill]] }
 0x293   :  { %3292 = vmatprep.subr.bf16.mxu1 %v4694_v0  ;;  %v533_v3 = vld [vmem:[#allocation2] sm:$0xff]  ;;  %v3240_v4 = vpack.c.bf16 %v537_v2, %v534_v1  ;;  %v536_v5 = vld [vmem:[#allocation2 + $0x18] sm:$0xff]  ;;  %v543_v7 = vld [vmem:[#allocation2 + $0x50] sm:$0xff]  ;;  %vm638_vm0 = vcmask 654336   ;;  %s5558_s24 = sld [smem:[#allocation70_spill]]  ;;  %s5559_s2 = sld [smem:[#allocation74_spill]] }
 0x294   :  { %v540_v6 = vld [vmem:[#allocation2 + $0x38] sm:$0xff]  ;;  %v3242_v8 = vpack.c.bf16 %v536_v5, %v533_v3  ;;  %v539_v10 = vld [vmem:[#allocation2 + $0x30] sm:$0xff]  ;;  %v542_v11 = vld [vmem:[#allocation2 + $0x48] sm:$0xff]  ;;  %vm883_vm4 = vcmask 523264   ;;  %vm1072_vm7 = vcmask 916480   ;;  %s5560_s17 = sld [smem:[#allocation73_spill]] }
 0x295   :  { %v3244_v9 = vpack.c.bf16 %v543_v7, %v540_v6  ;;  %v546_v12 = vld [vmem:[#allocation2 + $0x68] sm:$0xff]  ;;  %3241 = vmatprep.subr.bf16.mxu0 %v3240_v4  ;;  %v549_v13 = vld [vmem:[#allocation2 + $0x80] sm:$0xff]  ;;  %v3246_v14 = vpack.c.bf16 %v542_v11, %v539_v10  ;;  %v548_v17 = vld [vmem:[#allocation2 + $0x78] sm:$0xff]  ;;  %s5561_s28 = sld [smem:[#allocation67_spill]]  ;;  %vm1210_vm8 = vcmask 982016   ;;  %vm1295_vm9 = vcmask 39936  }
 0x296   :  { %3243 = vmatpush1.bf16.msra.mxu0 %v3242_v8  ;;  %v3248_v15 = vpack.c.bf16 %v549_v13, %v546_v12  ;;  %v545_v16 = vld [vmem:[#allocation2 + $0x60] sm:$0xff]  ;;  %v552_v18 = vld [vmem:[#allocation2 + $0x98] sm:$0xff]  ;;  %v555_v19 = vld [vmem:[#allocation2 + $0xb0] sm:$0xff]  ;;  %vm1298_vm10 = vcmask 1044480   ;;  %s4696_s8 = smov 100   ;;  %s4697_s1 = smov 78  }
 0x297   :  { %3245 = vmatprep.subr.bf16.mxu0 %v3244_v9  ;;  %v535_v20 = vld [vmem:[#allocation2 + $0x10] sm:$0xff]  ;;  %v538_v21 = vld [vmem:[#allocation2 + $0x28] sm:$0xff]  ;;  %v3250_v23 = vpack.c.bf16 %v548_v17, %v545_v16  ;;  %v541_v24 = vld [vmem:[#allocation2 + $0x40] sm:$0xff]  ;;  %v3252_v26 = vpack.c.bf16 %v555_v19, %v552_v18  ;;  %vm1455_vm11 = vcmask 1041408   ;;  %vm1419_vm12 = vcmask 637952   ;;  %s5562_s6 = sld [smem:[#allocation78_spill]] }
 0x298   :  { %v3293_v22 = vpack.c.bf16 %v538_v21, %v535_v20  ;;  %v544_v25 = vld [vmem:[#allocation2 + $0x58] sm:$0xff]  ;;  %v551_v27 = vld [vmem:[#allocation2 + $0x90] sm:$0xff]  ;;  %v554_v28 = vld [vmem:[#allocation2 + $0xa8] sm:$0xff]  ;;  %vm1452_vm13 = vcmask 408576   ;;  %vm4698_vm14 = vmmov 0   ;;  %s5563_s7 = sld [smem:[#allocation85_spill]] }
 0x299   :  { %v558_v29 = vld [vmem:[#allocation2 + $0xc8] sm:$0xff]  ;;  %v3296_v30 = vpack.c.bf16 %v544_v25, %v541_v24  ;;  %v561_v31 = vld [vmem:[#allocation2 + $0xe0] sm:$0xff]  ;;  %v547_v32 = vld [vmem:[#allocation2 + $0x70] sm:$0xff]  ;;  %v3254_v34 = vpack.c.bf16 %v554_v28, %v551_v27 }
 0x29a   :  { %3247 = vmatpush1.bf16.msra.mxu0 %v3246_v14  ;;  %3294 = vmatpush1.bf16.msra.mxu1 %v3293_v22  ;;  %v550_v33 = vld [vmem:[#allocation2 + $0x88] sm:$0xff]  ;;  %v3256_v35 = vpack.c.bf16 %v561_v31, %v558_v29  ;;  %v557_v36 = vld [vmem:[#allocation2 + $0xc0] sm:$0xff]  ;;  %v560_v37 = vld [vmem:[#allocation2 + $0xd8] sm:$0xff] }
 0x29b   :  { %3249 = vmatprep.subr.bf16.mxu0 %v3248_v15  ;;  %3295 = vmatprep.subr.bf16.mxu1 %v4694_v0  ;;  %v564_v38 = vld [vmem:[#allocation2 + $0xf8] sm:$0xff]  ;;  %v3299_v39 = vpack.c.bf16 %v550_v33, %v547_v32  ;;  %v567_v40 = vld [vmem:[#allocation2 + $0x110] sm:$0xff]  ;;  %v553_v41 = vld [vmem:[#allocation2 + $0xa0] sm:$0xff]  ;;  %v3258_v43 = vpack.c.bf16 %v560_v37, %v557_v36 }
 0x29c   :  { %v556_v42 = vld [vmem:[#allocation2 + $0xb8] sm:$0xff]  ;;  %v3260_v44 = vpack.c.bf16 %v567_v40, %v564_v38  ;;  %v563_v45 = vld [vmem:[#allocation2 + $0xf0] sm:$0xff]  ;;  %v566_v46 = vld [vmem:[#allocation2 + $0x108] sm:$0xff] }
 0x29d   :  { %v570_v47 = vld [vmem:[#allocation2 + $0x128] sm:$0xff]  ;;  %v3302_v48 = vpack.c.bf16 %v556_v42, %v553_v41  ;;  %v573_v49 = vld [vmem:[#allocation2 + $0x140] sm:$0xff]  ;;  %v559_v50 = vld [vmem:[#allocation2 + $0xd0] sm:$0xff]  ;;  %v3262_v52 = vpack.c.bf16 %v566_v46, %v563_v45 }
 0x29e   :  { %3251 = vmatpush1.bf16.msra.mxu0 %v3250_v23  ;;  %3297 = vmatpush1.bf16.msra.mxu1 %v3296_v30  ;;  %v562_v51 = vld [vmem:[#allocation2 + $0xe8] sm:$0xff]  ;;  %v3264_v53 = vpack.c.bf16 %v573_v49, %v570_v47  ;;  %v569_v54 = vld [vmem:[#allocation2 + $0x120] sm:$0xff]  ;;  %v572_v55 = vld [vmem:[#allocation2 + $0x138] sm:$0xff] }
 0x29f   :  { %3253 = vmatprep.subr.bf16.mxu0 %v3252_v26  ;;  %3298 = vmatprep.subr.bf16.mxu1 %v4694_v0  ;;  %v576_v56 = vld [vmem:[#allocation2 + $0x158] sm:$0xff]  ;;  %v3305_v57 = vpack.c.bf16 %v562_v51, %v559_v50  ;;  %v579_v58 = vld [vmem:[#allocation2 + $0x170] sm:$0xff]  ;;  %v565_v59 = vld [vmem:[#allocation2 + $0x100] sm:$0xff]  ;;  %v3266_v62 = vpack.c.bf16 %v572_v55, %v569_v54 }
 0x2a0   :  { %v568_v60 = vld [vmem:[#allocation2 + $0x118] sm:$0xff]  ;;  %v5097_v61 = vld.sshfl [vmem:[%s5557_s3] sm:$0x33 pattern:$0x76325410]  ;;  %v3268_v1 = vpack.c.bf16 %v579_v58, %v576_v56  ;;  %v575_v2 = vld [vmem:[#allocation2 + $0x150] sm:$0xff] }
 0x2a1   :  { %v636_v63 = vcombine.high %v5097_v61, %v5097_v61  ;;  %v578_v3 = vld [vmem:[#allocation2 + $0x168] sm:$0xff]  ;;  %v3308_v5 = vpack.c.bf16 %v568_v60, %v565_v59  ;;  %v585_v6 = vld [vmem:[#allocation2 + $0x1a0] sm:$0xff]  ;;  %v571_v7 = vld [vmem:[#allocation2 + $0x130] sm:$0xff] }
 0x2a2   :  { %3255 = vmatpush1.bf16.msra.mxu0 %v3254_v34  ;;  %3300 = vmatpush1.bf16.msra.mxu1 %v3299_v39  ;;  %v582_v4 = vld [vmem:[#allocation2 + $0x188] sm:$0xff]  ;;  %v3270_v9 = vpack.c.bf16 %v578_v3, %v575_v2  ;;  %v581_v11 = vld [vmem:[#allocation2 + $0x180] sm:$0xff]  ;;  %v584_v12 = vld [vmem:[#allocation2 + $0x198] sm:$0xff] }
 0x2a3   :  { %3257 = vmatprep.subr.bf16.mxu0 %v3256_v35  ;;  %3301 = vmatprep.subr.bf16.mxu1 %v4694_v0  ;;  %v574_v8 = vld [vmem:[#allocation2 + $0x148] sm:$0xff]  ;;  %v3272_v10 = vpack.c.bf16 %v585_v6, %v582_v4  ;;  %v588_v13 = vld [vmem:[#allocation2 + $0x1b8] sm:$0xff]  ;;  %v591_v15 = vld [vmem:[#allocation2 + $0x1d0] sm:$0xff]  ;;  %v3274_v18 = vpack.c.bf16 %v584_v12, %v581_v11 }
 0x2a4   :  { %2933 = vmatprep.mubr.msk.f32.mxu0 %vm638_vm0, %v636_v63  ;;  %2934 = vmatprep.mubr.msk.f32.mxu1 %vm638_vm0, %v636_v63  ;;  %v3311_v14 = vpack.c.bf16 %v574_v8, %v571_v7  ;;  %v577_v16 = vld [vmem:[#allocation2 + $0x160] sm:$0xff]  ;;  %v580_v17 = vld [vmem:[#allocation2 + $0x178] sm:$0xff]  ;;  %v3276_v19 = vpack.c.bf16 %v591_v15, %v588_v13  ;;  %v587_v20 = vld [vmem:[#allocation2 + $0x1b0] sm:$0xff] }
 0x2a5   :  { %v590_v21 = vld [vmem:[#allocation2 + $0x1c8] sm:$0xff]  ;;  %v3314_v23 = vpack.c.bf16 %v580_v17, %v577_v16  ;;  %v597_v24 = vld [vmem:[#allocation2 + $0x200] sm:$0xff]  ;;  %v583_v25 = vld [vmem:[#allocation2 + $0x190] sm:$0xff] }
 0x2a6   :  { %3259 = vmatpush1.bf16.msra.mxu0 %v3258_v43  ;;  %3303 = vmatpush1.bf16.msra.mxu1 %v3302_v48  ;;  %v594_v22 = vld [vmem:[#allocation2 + $0x1e8] sm:$0xff]  ;;  %v3278_v27 = vpack.c.bf16 %v590_v21, %v587_v20  ;;  %v593_v29 = vld [vmem:[#allocation2 + $0x1e0] sm:$0xff]  ;;  %v596_v30 = vld [vmem:[#allocation2 + $0x1f8] sm:$0xff] }
 0x2a7   :  { %3261 = vmatprep.subr.bf16.mxu0 %v3260_v44  ;;  %3304 = vmatprep.subr.bf16.mxu1 %v4694_v0  ;;  %v586_v26 = vld [vmem:[#allocation2 + $0x1a8] sm:$0xff]  ;;  %v3280_v28 = vpack.c.bf16 %v597_v24, %v594_v22  ;;  %v600_v31 = vld [vmem:[#allocation2 + $0x218] sm:$0xff]  ;;  %v603_v33 = vld [vmem:[#allocation2 + $0x230] sm:$0xff]  ;;  %v3282_v36 = vpack.c.bf16 %v596_v30, %v593_v29 }
 0x2a8   :  { %v3317_v32 = vpack.c.bf16 %v586_v26, %v583_v25  ;;  %v589_v34 = vld [vmem:[#allocation2 + $0x1c0] sm:$0xff]  ;;  %v592_v35 = vld [vmem:[#allocation2 + $0x1d8] sm:$0xff]  ;;  %v3284_v37 = vpack.c.bf16 %v603_v33, %v600_v31  ;;  %v599_v38 = vld [vmem:[#allocation2 + $0x210] sm:$0xff] }
 0x2a9   :  { %v602_v39 = vld [vmem:[#allocation2 + $0x228] sm:$0xff]  ;;  %v3320_v41 = vpack.c.bf16 %v592_v35, %v589_v34  ;;  %v609_v42 = vld [vmem:[#allocation2 + $0x260] sm:$0xff]  ;;  %v595_v43 = vld [vmem:[#allocation2 + $0x1f0] sm:$0xff] }
 0x2aa   :  { %3263 = vmatpush1.bf16.msra.mxu0 %v3262_v52  ;;  %3306 = vmatpush1.bf16.msra.mxu1 %v3305_v57  ;;  %v606_v40 = vld [vmem:[#allocation2 + $0x248] sm:$0xff]  ;;  %v3286_v45 = vpack.c.bf16 %v602_v39, %v599_v38  ;;  %v605_v47 = vld [vmem:[#allocation2 + $0x240] sm:$0xff]  ;;  %v608_v48 = vld [vmem:[#allocation2 + $0x258] sm:$0xff] }
 0x2ab   :  { %3265 = vmatprep.subr.bf16.mxu0 %v3264_v53  ;;  %3307 = vmatprep.subr.bf16.mxu1 %v4694_v0  ;;  %v598_v44 = vld [vmem:[#allocation2 + $0x208] sm:$0xff]  ;;  %v3288_v46 = vpack.c.bf16 %v609_v42, %v606_v40  ;;  %v601_v50 = vld [vmem:[#allocation2 + $0x220] sm:$0xff]  ;;  %v604_v51 = vld [vmem:[#allocation2 + $0x238] sm:$0xff]  ;;  %v3290_v54 = vpack.c.bf16 %v608_v48, %v605_v47 }
 0x2ac   :  { %v3323_v49 = vpack.c.bf16 %v598_v44, %v595_v43  ;;  %v792_v52 = vld [vmem:[%s5558_s24 + $0x8] sm:$0xff]  ;;  %v794_v53 = vld [vmem:[%s5558_s24 + $0x18] sm:$0xff]  ;;  %v3326_v55 = vpack.c.bf16 %v604_v51, %v601_v50  ;;  %v607_v56 = vld [vmem:[#allocation2 + $0x250] sm:$0xff] }
 0x2ad   :  { %v3331_v57 = vpack.c.bf16 %v794_v53, %v792_v52  ;;  %v791_v58 = vld [vmem:[%s5558_s24] sm:$0xff]  ;;  %v793_v59 = vld [vmem:[%s5558_s24 + $0x10] sm:$0xff]  ;;  %v610_v60 = vld [vmem:[#allocation2 + $0x268] sm:$0xff] }
 0x2ae   :  { %3267 = vmatpush1.bf16.msra.mxu0 %v3266_v62  ;;  %3309 = vmatpush1.bf16.msra.mxu1 %v3308_v5  ;;  %v796_v62 = vld [vmem:[%s5558_s24 + $0x28] sm:$0xff]  ;;  %v798_v63 = vld [vmem:[%s5558_s24 + $0x38] sm:$0xff]  ;;  %v3329_v2 = vpack.c.bf16 %v610_v60, %v607_v56  ;;  %v795_v4 = vld [vmem:[%s5558_s24 + $0x20] sm:$0xff] }
 0x2af   :  { %3269 = vmatprep.subr.bf16.mxu0 %v3268_v1  ;;  %3310 = vmatprep.subr.bf16.mxu1 %v4694_v0  ;;  %v3333_v1 = vpack.c.bf16 %v793_v59, %v791_v58  ;;  %v3335_v3 = vpack.c.bf16 %v798_v63, %v796_v62  ;;  %v797_v5 = vld [vmem:[%s5558_s24 + $0x30] sm:$0xff]  ;;  %v800_v6 = vld [vmem:[%s5558_s24 + $0x48] sm:$0xff]  ;;  %v802_v7 = vld [vmem:[%s5558_s24 + $0x58] sm:$0xff] }
 0x2b0   :  { %v3337_v8 = vpack.c.bf16 %v797_v5, %v795_v4  ;;  %v801_v11 = vld [vmem:[%s5558_s24 + $0x50] sm:$0xff]  ;;  %v804_v12 = vld [vmem:[%s5558_s24 + $0x68] sm:$0xff]  ;;  %v806_v13 = vld [vmem:[%s5558_s24 + $0x78] sm:$0xff] }
 0x2b1   :  { %v3343_v15 = vpack.c.bf16 %v806_v13, %v804_v12  ;;  %v803_v16 = vld [vmem:[%s5558_s24 + $0x60] sm:$0xff]  ;;  %v805_v17 = vld [vmem:[%s5558_s24 + $0x70] sm:$0xff]  ;;  %v814_v24 = vld [vmem:[%s5558_s24 + $0xb8] sm:$0xff] }
 0x2b2   :  { %3271 = vmatpush1.bf16.msra.mxu0 %v3270_v9  ;;  %3312 = vmatpush1.bf16.msra.mxu1 %v3311_v14  ;;  %v3339_v9 = vpack.c.bf16 %v802_v7, %v800_v6  ;;  %v3345_v20 = vpack.c.bf16 %v805_v17, %v803_v16  ;;  %v807_v22 = vld [vmem:[%s5558_s24 + $0x80] sm:$0xff]  ;;  %v816_v29 = vld [vmem:[%s5558_s24 + $0xc8] sm:$0xff]  ;;  %v818_v30 = vld [vmem:[%s5558_s24 + $0xd8] sm:$0xff] }
 0x2b3   :  { %3273 = vmatprep.subr.bf16.mxu0 %v3272_v10  ;;  %3313 = vmatprep.subr.bf16.mxu1 %v4694_v0  ;;  %v799_v10 = vld [vmem:[%s5558_s24 + $0x40] sm:$0xff]  ;;  %v817_v34 = vld [vmem:[%s5558_s24 + $0xd0] sm:$0xff]  ;;  %v820_v35 = vld [vmem:[%s5558_s24 + $0xe8] sm:$0xff] }
 0x2b4   :  { %v3341_v14 = vpack.c.bf16 %v801_v11, %v799_v10  ;;  %v815_v33 = vld [vmem:[%s5558_s24 + $0xc0] sm:$0xff]  ;;  %v821_v40 = vld [vmem:[%s5558_s24 + $0xf0] sm:$0xff]  ;;  %v826_v42 = vld [vmem:[%s5558_s24 + $0x118] sm:$0xff] }
 0x2b5   :  { %v819_v39 = vld [vmem:[%s5558_s24 + $0xe0] sm:$0xff]  ;;  %v828_v47 = vld [vmem:[%s5558_s24 + $0x128] sm:$0xff]  ;;  %v830_v48 = vld [vmem:[%s5558_s24 + $0x138] sm:$0xff] }
 0x2b6   :  { %3275 = vmatpush1.bf16.msra.mxu0 %v3274_v18  ;;  %3315 = vmatpush1.bf16.msra.mxu1 %v3314_v23  ;;  %v808_v18 = vld [vmem:[%s5558_s24 + $0x88] sm:$0xff]  ;;  %v3361_v43 = vpack.c.bf16 %v821_v40, %v819_v39  ;;  %v3367_v50 = vpack.c.bf16 %v830_v48, %v828_v47  ;;  %v827_v51 = vld [vmem:[%s5558_s24 + $0x120] sm:$0xff]  ;;  %v829_v52 = vld [vmem:[%s5558_s24 + $0x130] sm:$0xff] }
 0x2b7   :  { %3277 = vmatprep.subr.bf16.mxu0 %v3276_v19  ;;  %3316 = vmatprep.subr.bf16.mxu1 %v4694_v0  ;;  %v810_v19 = vld [vmem:[%s5558_s24 + $0x98] sm:$0xff]  ;;  %v812_v23 = vld [vmem:[%s5558_s24 + $0xa8] sm:$0xff]  ;;  %v833_v58 = vld [vmem:[%s5558_s24 + $0x150] sm:$0xff] }
 0x2b8   :  { %v3347_v21 = vpack.c.bf16 %v810_v19, %v808_v18  ;;  %v3351_v26 = vpack.c.bf16 %v814_v24, %v812_v23  ;;  %v832_v53 = vld [vmem:[%s5558_s24 + $0x148] sm:$0xff]  ;;  %v838_v60 = vld [vmem:[%s5558_s24 + $0x178] sm:$0xff]  ;;  %v839_v7 = vld [vmem:[%s5558_s24 + $0x180] sm:$0xff] }
 0x2b9   :  { %v836_v59 = vld [vmem:[%s5558_s24 + $0x168] sm:$0xff]  ;;  %v842_v4 = vld [vmem:[%s5558_s24 + $0x198] sm:$0xff]  ;;  %v843_v13 = vld [vmem:[%s5558_s24 + $0x1a0] sm:$0xff] }
 0x2ba   :  { %3279 = vmatpush1.bf16.msra.mxu0 %v3278_v27  ;;  %3318 = vmatpush1.bf16.msra.mxu1 %v3317_v32  ;;  %v811_v27 = vld [vmem:[%s5558_s24 + $0xa0] sm:$0xff]  ;;  %v3355_v32 = vpack.c.bf16 %v818_v30, %v816_v29  ;;  %v3375_v63 = vpack.c.bf16 %v838_v60, %v836_v59  ;;  %v846_v10 = vld [vmem:[%s5558_s24 + $0x1b8] sm:$0xff]  ;;  %v1042_v40 = vld [vmem:[#allocation8 + $0x38] sm:$0xff] }
 0x2bb   :  { %3281 = vmatprep.subr.bf16.mxu0 %v3280_v28  ;;  %3319 = vmatprep.subr.bf16.mxu1 %v4694_v0  ;;  %v813_v28 = vld [vmem:[%s5558_s24 + $0xb0] sm:$0xff]  ;;  %v850_v16 = vld [vmem:[%s5558_s24 + $0x1d8] sm:$0xff]  ;;  %v847_v19 = vld [vmem:[%s5558_s24 + $0x1c0] sm:$0xff] }
 0x2bc   :  { %v3353_v31 = vpack.c.bf16 %v813_v28, %v811_v27  ;;  %v851_v24 = vld [vmem:[%s5558_s24 + $0x1e0] sm:$0xff]  ;;  %v856_v27 = vld [vmem:[%s5558_s24 + $0x208] sm:$0xff]  ;;  %v858_v28 = vld [vmem:[%s5558_s24 + $0x218] sm:$0xff] }
 0x2bd   :  { %v3395_v29 = vpack.c.bf16 %v858_v28, %v856_v27  ;;  %v1035_v30 = vld [vmem:[#allocation8] sm:$0xff]  ;;  %v1041_v39 = vld [vmem:[#allocation8 + $0x30] sm:$0xff] }
 0x2be   :  { %3283 = vmatpush1.bf16.msra.mxu0 %v3282_v36  ;;  %3321 = vmatpush1.bf16.msra.mxu1 %v3320_v41  ;;  %v822_v36 = vld [vmem:[%s5558_s24 + $0xf8] sm:$0xff]  ;;  %v824_v41 = vld [vmem:[%s5558_s24 + $0x108] sm:$0xff]  ;;  %v859_v27 = vld [vmem:[%s5558_s24 + $0x220] sm:$0xff] }
 0x2bf   :  { %3285 = vmatprep.subr.bf16.mxu0 %v3284_v37  ;;  %3322 = vmatprep.subr.bf16.mxu1 %v4694_v0  ;;  %v3357_v37 = vpack.c.bf16 %v817_v34, %v815_v33  ;;  %v3359_v38 = vpack.c.bf16 %v822_v36, %v820_v35  ;;  %v3363_v44 = vpack.c.bf16 %v826_v42, %v824_v41  ;;  %v1038_v34 = vld [vmem:[#allocation8 + $0x18] sm:$0xff]  ;;  %v1039_v36 = vld [vmem:[#allocation8 + $0x20] sm:$0xff] }
 0x2c0   :  { %v3421_v41 = vpack.c.bf16 %v1042_v40, %v1041_v39  ;;  %v1043_v42 = vld [vmem:[#allocation8 + $0x40] sm:$0xff]  ;;  %v868_v40 = vld [vmem:[%s5558_s24 + $0x268] sm:$0xff] }
 0x2c1   :  { %v1047_v48 = vld [vmem:[#allocation8 + $0x60] sm:$0xff] }
 0x2c2   :  { %3287 = vmatpush1.bf16.msra.mxu0 %v3286_v45  ;;  %3324 = vmatpush1.bf16.msra.mxu1 %v3323_v49  ;;  %v823_v45 = vld [vmem:[%s5558_s24 + $0x100] sm:$0xff]  ;;  %v1055_v60 = vld [vmem:[#allocation8 + $0xa0] sm:$0xff] }
 0x2c3   :  { %3289 = vmatprep.subr.bf16.mxu0 %v3288_v46  ;;  %3325 = vmatprep.subr.bf16.mxu1 %v4694_v0  ;;  %v825_v46 = vld [vmem:[%s5558_s24 + $0x110] sm:$0xff] }
 0x2c4   :  { %v3365_v49 = vpack.c.bf16 %v825_v46, %v823_v45  ;;  %v1045_v45 = vld [vmem:[#allocation8 + $0x50] sm:$0xff]  ;;  %v1046_v46 = vld [vmem:[#allocation8 + $0x58] sm:$0xff] }
 0x2c5   :  { %v3427_v47 = vpack.c.bf16 %v1046_v46, %v1045_v45  ;;  %v861_v28 = vld [vmem:[%s5558_s24 + $0x230] sm:$0xff] }
 0x2c6   :  { %3291 = vmatpush1.bf16.msra.mxu0 %v3290_v54  ;;  %3327 = vmatpush1.bf16.msra.mxu1 %v3326_v55  ;;  %v834_v54 = vld [vmem:[%s5558_s24 + $0x158] sm:$0xff]  ;;  %v3369_v55 = vpack.c.bf16 %v829_v52, %v827_v51  ;;  %v1049_v51 = vld [vmem:[#allocation8 + $0x70] sm:$0xff]  ;;  %v1050_v52 = vld [vmem:[#allocation8 + $0x78] sm:$0xff] }
 0x2c7   :  { %3332 = vmatprep.subr.bf16.mxu0 %v3331_v57  ;;  %3328 = vmatprep.subr.bf16.mxu1 %v4694_v0  ;;  %v3371_v56 = vpack.c.bf16 %v834_v54, %v832_v53  ;;  %v831_v57 = vld [vmem:[%s5558_s24 + $0x140] sm:$0xff]  ;;  %v3433_v53 = vpack.c.bf16 %v1050_v52, %v1049_v51  ;;  %v1051_v54 = vld [vmem:[#allocation8 + $0x80] sm:$0xff]  ;;  %v1062_v51 = vld [vmem:[#allocation8 + $0xd8] sm:$0xff] }
 0x2c8   :  { %v3373_v62 = vpack.c.bf16 %v833_v58, %v831_v57  ;;  %v1053_v57 = vld [vmem:[#allocation8 + $0x90] sm:$0xff]  ;;  %v1054_v58 = vld [vmem:[#allocation8 + $0x98] sm:$0xff] }
 0x2c9   :  { %706 = vmatmul.mubr.f32.vlgmr.msra.gmra.mrb[0].mxu0 %v5097_v61  ;;  %v3439_v59 = vpack.c.bf16 %v1054_v58, %v1053_v57  ;;  %v869_v45 = vld [vmem:[%s5558_s24 + $0x270] sm:$0xff]  ;;  %v1183_v57 = vld [vmem:[%s5559_s2 + $0x18] sm:$0xff] }
 0x2ca   :  { %3334 = vmatpush1.bf16.msra.mxu0 %v3333_v1  ;;  %3330 = vmatpush1.bf16.msra.mxu1 %v3329_v2  ;;  %v835_v1 = vld [vmem:[%s5558_s24 + $0x160] sm:$0xff]  ;;  %v837_v2 = vld [vmem:[%s5558_s24 + $0x170] sm:$0xff] }
 0x2cb   :  { %3336 = vmatprep.subr.bf16.mxu0 %v3335_v3  ;;  %3411 = vmatprep.subr.bf16.mxu1 %v4694_v0  ;;  %v840_v3 = vld [vmem:[%s5558_s24 + $0x188] sm:$0xff]  ;;  %v3377_v5 = vpack.c.bf16 %v837_v2, %v835_v1 }
 0x2cc   :  { %v3379_v6 = vpack.c.bf16 %v842_v4, %v840_v3  ;;  %v1057_v1 = vld [vmem:[#allocation8 + $0xb0] sm:$0xff]  ;;  %v1058_v2 = vld [vmem:[#allocation8 + $0xb8] sm:$0xff]  ;;  %v1059_v4 = vld [vmem:[#allocation8 + $0xc0] sm:$0xff] }
 0x2cd   :  { %777 = vmatmul.mubr.f32.vlgmr.msra.gmra.mrb[0].mxu1 %v5097_v61  ;;  %v809_v61 = vld [vmem:[%s5558_s24 + $0x90] sm:$0xff]  ;;  %v3445_v3 = vpack.c.bf16 %v1058_v2, %v1057_v1 }
 0x2ce   :  { %3338 = vmatpush1.bf16.msra.mxu0 %v3337_v8  ;;  %v3349_v25 = vpack.c.bf16 %v809_v61, %v807_v22  ;;  %v841_v8 = vld [vmem:[%s5558_s24 + $0x190] sm:$0xff]  ;;  %v852_v22 = vld [vmem:[%s5558_s24 + $0x1e8] sm:$0xff]  ;;  %v854_v61 = vld [vmem:[%s5558_s24 + $0x1f8] sm:$0xff] }
 0x2cf   :  { %3340 = vmatprep.subr.bf16.mxu0 %v3339_v9  ;;  %v844_v9 = vld [vmem:[%s5558_s24 + $0x1a8] sm:$0xff]  ;;  %v3381_v11 = vpack.c.bf16 %v841_v8, %v839_v7  ;;  %v3391_v23 = vpack.c.bf16 %v854_v61, %v852_v22  ;;  %v613_v7 = vlaneseq  ;;  %v862_v22 = vld [vmem:[%s5558_s24 + $0x238] sm:$0xff] }
 0x2d0   :  { %v3383_v12 = vpack.c.bf16 %v846_v10, %v844_v9  ;;  %v611_v10 = vld [vmem:[#allocation5] sm:$0x7] }
 0x2d1   :  { %v614_v8 = vshrl.u32 %v613_v7, 7  ;;  %v1185_v7 = vld [vmem:[%s5559_s2 + $0x28] sm:$0xff] }
 0x2d2   :  { %3342 = vmatpush1.bf16.msra.mxu0 %v3341_v14  ;;  %v845_v14 = vld [vmem:[%s5558_s24 + $0x1b0] sm:$0xff] }
 0x2d3   :  { %3344 = vmatprep.subr.bf16.mxu0 %v3343_v15  ;;  %v848_v15 = vld [vmem:[%s5558_s24 + $0x1c8] sm:$0xff]  ;;  %v3385_v17 = vpack.c.bf16 %v845_v14, %v843_v13  ;;  %v5193_v9 = vsub.s32 0, %v614_v8 }
 0x2d4   :  { %v3387_v18 = vpack.c.bf16 %v850_v16, %v848_v15 }
 0x2d6   :  { %3346 = vmatpush1.bf16.msra.mxu0 %v3345_v20  ;;  %v849_v20 = vld [vmem:[%s5558_s24 + $0x1d0] sm:$0xff] }
 0x2d7   :  { %3348 = vmatprep.subr.bf16.mxu0 %v3347_v21  ;;  %v3389_v21 = vpack.c.bf16 %v849_v20, %v847_v19  ;;  %v857_v19 = vld [vmem:[%s5558_s24 + $0x210] sm:$0xff] }
 0x2da   :  { %3350 = vmatpush1.bf16.msra.mxu0 %v3349_v25  ;;  %v853_v25 = vld [vmem:[%s5558_s24 + $0x1f0] sm:$0xff] }
 0x2db   :  { %3352 = vmatprep.subr.bf16.mxu0 %v3351_v26  ;;  %v3393_v26 = vpack.c.bf16 %v853_v25, %v851_v24 }
 0x2de   :  { %3354 = vmatpush1.bf16.msra.mxu0 %v3353_v31  ;;  %v1036_v31 = vld [vmem:[#allocation8 + $0x8] sm:$0xff] }
 0x2df   :  { %3356 = vmatprep.subr.bf16.mxu0 %v3355_v32  ;;  %v1037_v32 = vld [vmem:[#allocation8 + $0x10] sm:$0xff]  ;;  %v3412_v33 = vpack.c.bf16 %v1036_v31, %v1035_v30  ;;  %v623_v31 = vsub.s32 2, %v614_v8 }
 0x2e0   :  { %v3415_v35 = vpack.c.bf16 %v1038_v34, %v1037_v32  ;;  %v864_v32 = vld [vmem:[%s5558_s24 + $0x248] sm:$0xff]  ;;  %v3401_v34 = vpack.c.bf16 %v861_v28, %v859_v27  ;;  %v1192_v27 = vld [vmem:[%s5559_s2 + $0x60] sm:$0xff]  ;;  %v1194_v28 = vld [vmem:[%s5559_s2 + $0x70] sm:$0xff] }
 0x2e1   :  { %3413 = vmatpush1.bf16.msra.mxu1 %v3412_v33  ;;  %v866_v33 = vld [vmem:[%s5558_s24 + $0x258] sm:$0xff]  ;;  %v624_v39 = vrot.slane %v611_v10, %v623_v31  ;;  %v3470_v31 = vpack.c.bf16 %v1194_v28, %v1192_v27 }
 0x2e2   :  { %3358 = vmatpush1.bf16.msra.mxu0 %v3357_v37  ;;  %3414 = vmatprep.subr.bf16.mxu1 %v4694_v0  ;;  %v1040_v37 = vld [vmem:[#allocation8 + $0x28] sm:$0xff] }
 0x2e3   :  { %3360 = vmatprep.subr.bf16.mxu0 %v3359_v38  ;;  %v3418_v38 = vpack.c.bf16 %v1040_v37, %v1039_v36  ;;  %v3403_v36 = vpack.c.bf16 %v866_v33, %v864_v32  ;;  %v863_v37 = vld [vmem:[%s5558_s24 + $0x240] sm:$0xff] }
 0x2e4   :  { %v1196_v33 = vld [vmem:[%s5559_s2 + $0x80] sm:$0xff] }
 0x2e5   :  { %3416 = vmatpush1.bf16.msra.mxu1 %v3415_v35  ;;  %v4695_v35 = vmov 0.0  }
 0x2e6   :  { %3362 = vmatpush1.bf16.msra.mxu0 %v3361_v43  ;;  %3417 = vmatprep.subr.bf16.mxu1 %v4694_v0  ;;  %v1044_v43 = vld [vmem:[#allocation8 + $0x48] sm:$0xff] }
 0x2e7   :  { %3364 = vmatprep.subr.bf16.mxu0 %v3363_v44  ;;  %v3424_v44 = vpack.c.bf16 %v1044_v43, %v1043_v42 }
 0x2e9   :  { %3419 = vmatpush1.bf16.msra.mxu1 %v3418_v38  ;;  %v865_v38 = vld [vmem:[%s5558_s24 + $0x250] sm:$0xff] }
 0x2ea   :  { %3366 = vmatpush1.bf16.msra.mxu0 %v3365_v49  ;;  %3420 = vmatprep.subr.bf16.mxu1 %v4694_v0  ;;  %v1048_v49 = vld [vmem:[#allocation8 + $0x68] sm:$0xff]  ;;  %v3405_v42 = vpack.c.bf16 %v865_v38, %v863_v37 }
 0x2eb   :  { %3368 = vmatprep.subr.bf16.mxu0 %v3367_v50  ;;  %v3430_v50 = vpack.c.bf16 %v1048_v49, %v1047_v48  ;;  %v1203_v37 = vld [vmem:[%s5559_s2 + $0xb8] sm:$0xff] }
 0x2ed   :  { %3422 = vmatpush1.bf16.msra.mxu1 %v3421_v41  ;;  %v870_v41 = vld [vmem:[%s5558_s24 + $0x278] sm:$0xff] }
 0x2ee   :  { %3370 = vmatpush1.bf16.msra.mxu0 %v3369_v55  ;;  %3423 = vmatprep.subr.bf16.mxu1 %v4694_v0  ;;  %v1052_v55 = vld [vmem:[#allocation8 + $0x88] sm:$0xff]  ;;  %v3407_v43 = vpack.c.bf16 %v870_v41, %v868_v40  ;;  %v1202_v41 = vld [vmem:[%s5559_s2 + $0xb0] sm:$0xff] }
 0x2ef   :  { %3372 = vmatprep.subr.bf16.mxu0 %v3371_v56  ;;  %v3436_v56 = vpack.c.bf16 %v1052_v55, %v1051_v54  ;;  %v1064_v54 = vld [vmem:[#allocation8 + $0xe8] sm:$0xff] }
 0x2f0   :  { %v1200_v40 = vld [vmem:[%s5559_s2 + $0xa0] sm:$0xff] }
 0x2f1   :  { %3425 = vmatpush1.bf16.msra.mxu1 %v3424_v44  ;;  %v867_v44 = vld [vmem:[%s5558_s24 + $0x260] sm:$0xff] }
 0x2f2   :  { %3374 = vmatpush1.bf16.msra.mxu0 %v3373_v62  ;;  %3426 = vmatprep.subr.bf16.mxu1 %v4694_v0  ;;  %v1056_v62 = vld [vmem:[#allocation8 + $0xa8] sm:$0xff] }
 0x2f3   :  { %3376 = vmatprep.subr.bf16.mxu0 %v3375_v63  ;;  %v3442_v63 = vpack.c.bf16 %v1056_v62, %v1055_v60 }
 0x2f5   :  { %3428 = vmatpush1.bf16.msra.mxu1 %v3427_v47  ;;  %v3409_v47 = vpack.c.bf16 %v869_v45, %v867_v44  ;;  %v3478_v44 = vpack.c.bf16 %v1202_v41, %v1200_v40 }
 0x2f6   :  { %3378 = vmatpush1.bf16.msra.mxu0 %v3377_v5  ;;  %3429 = vmatprep.subr.bf16.mxu1 %v4694_v0  ;;  %v1060_v5 = vld [vmem:[#allocation8 + $0xc8] sm:$0xff] }
 0x2f7   :  { %3380 = vmatprep.subr.bf16.mxu0 %v3379_v6  ;;  %v3448_v6 = vpack.c.bf16 %v1060_v5, %v1059_v4  ;;  %v1180_v4 = vld [vmem:[%s5559_s2] sm:$0xff]  ;;  %v1182_v5 = vld [vmem:[%s5559_s2 + $0x10] sm:$0xff] }
 0x2f9   :  { %3431 = vmatpush1.bf16.msra.mxu1 %v3430_v50  ;;  %v1061_v50 = vld [vmem:[#allocation8 + $0xd0] sm:$0xff] }
 0x2fa   :  { %3382 = vmatpush1.bf16.msra.mxu0 %v3381_v11  ;;  %3432 = vmatprep.subr.bf16.mxu1 %v4694_v0  ;;  %v5195_v11 = vsub.s32 1, %v614_v8  ;;  %v3451_v52 = vpack.c.bf16 %v1062_v51, %v1061_v50  ;;  %v1187_v8 = vld [vmem:[%s5559_s2 + $0x38] sm:$0xff]  ;;  %v1147_v50 = vld [vmem:[%s5560_s17 + $0x8] sm:$0xff] }
 0x2fb   :  { %3384 = vmatprep.subr.bf16.mxu0 %v3383_v12  ;;  %v616_v12 = vrot.slane %v611_v10, %v5193_v9  ;;  %v1149_v51 = vld [vmem:[%s5560_s17 + $0x18] sm:$0xff] }
 0x2fc   :  { %v620_v13 = vrot.slane %v611_v10, %v5195_v11 }
 0x2fd   :  { %3434 = vmatpush1.bf16.msra.mxu1 %v3433_v53  ;;  %v1063_v53 = vld [vmem:[#allocation8 + $0xe0] sm:$0xff] }
 0x2fe   :  { %3386 = vmatpush1.bf16.msra.mxu0 %v3385_v17  ;;  %3435 = vmatprep.subr.bf16.mxu1 %v4694_v0  ;;  %v3454_v55 = vpack.c.bf16 %v1064_v54, %v1063_v53  ;;  %v3484_v53 = vpack.c.bf16 %v1149_v51, %v1147_v50  ;;  %v1146_v54 = vld [vmem:[%s5560_s17] sm:$0xff] }
 0x2ff   :  { %3388 = vmatprep.subr.bf16.mxu0 %v3387_v18  ;;  %v855_v18 = vld [vmem:[%s5558_s24 + $0x200] sm:$0xff] }
 0x301   :  { %3437 = vmatpush1.bf16.msra.mxu1 %v3436_v56  ;;  %v1181_v56 = vld [vmem:[%s5559_s2 + $0x8] sm:$0xff] }
 0x302   :  { %3390 = vmatpush1.bf16.msra.mxu0 %v3389_v21  ;;  %3438 = vmatprep.subr.bf16.mxu1 %v4694_v0  ;;  %v860_v21 = vld [vmem:[%s5558_s24 + $0x228] sm:$0xff]  ;;  %v3456_v58 = vpack.c.bf16 %v1183_v57, %v1181_v56  ;;  %v5255_v56 = vld.sshfl [vmem:[%s5561_s28] sm:$0x33 pattern:$0x76325410] }
 0x303   :  { %3392 = vmatprep.subr.bf16.mxu0 %v3391_v23  ;;  %v3397_v23 = vpack.c.bf16 %v857_v19, %v855_v18  ;;  %v1189_v18 = vld [vmem:[%s5559_s2 + $0x48] sm:$0xff]  ;;  %v1191_v19 = vld [vmem:[%s5559_s2 + $0x58] sm:$0xff]  ;;  %v2936_v57 = vld [vmem:[#allocation10] ss:$0 sm:$0xff] }
 0x305   :  { %3440 = vmatpush1.bf16.msra.mxu1 %v3439_v59  ;;  %v871_v59 = vld [vmem:[#allocation7] sm:$0x3] }
 0x306   :  { %3394 = vmatpush1.bf16.msra.mxu0 %v3393_v26  ;;  %3441 = vmatprep.subr.bf16.mxu1 %v4694_v0  ;;  %v3399_v26 = vpack.c.bf16 %v862_v22, %v860_v21  ;;  %v876_v60 = vrot.slane %v871_v59, %v5193_v9  ;;  %v880_v62 = vrot.slane %v871_v59, %v5195_v11  ;;  %v1188_v22 = vld [vmem:[%s5559_s2 + $0x40] sm:$0xff]  ;;  %v1153_v59 = vld [vmem:[%s5560_s17 + $0x38] sm:$0xff] }
 0x307   :  { %3396 = vmatprep.subr.bf16.mxu0 %v3395_v29  ;;  %v3464_v21 = vpack.c.bf16 %v1191_v19, %v1189_v18  ;;  %v1158_v18 = vld [vmem:[%s5560_s17 + $0x60] sm:$0xff]  ;;  %v1160_v19 = vld [vmem:[%s5560_s17 + $0x70] sm:$0xff] }
 0x309   :  { %3443 = vmatpush1.bf16.msra.mxu1 %v3442_v63 }
 0x30a   :  { %3444 = vmatprep.subr.bf16.mxu1 %v4694_v0 }
 0x30d   :  { %3446 = vmatpush1.bf16.msra.mxu1 %v3445_v3 }
 0x30e   :  { %3447 = vmatprep.subr.bf16.mxu1 %v4694_v0 }
 0x311   :  { %3449 = vmatpush1.bf16.msra.mxu1 %v3448_v6 }
 0x312   :  { %3450 = vmatprep.subr.bf16.mxu1 %v4694_v0 }
 0x315   :  { %3452 = vmatpush1.bf16.msra.mxu1 %v3451_v52  ;;  %v1208_v52 = vld [vmem:[%s5559_s2 + $0xe0] sm:$0xff] }
 0x316   :  { %3453 = vmatprep.subr.bf16.mxu1 %v4694_v0 }
 0x319   :  { %3455 = vmatpush1.bf16.msra.mxu1 %v3454_v55  ;;  %v1148_v55 = vld [vmem:[%s5560_s17 + $0x10] sm:$0xff] }
 0x31a   :  { %3457 = vmatprep.subr.bf16.mxu1 %v3456_v58  ;;  %v1151_v58 = vld [vmem:[%s5560_s17 + $0x28] sm:$0xff] }
 0x39c   :  { %v707_v14 = vpop.f32.mrb[0].mxu0 }
 0x39d   :  { %v708_v15 = vadd.f32 %v707_v14, %v616_v12  ;;  %v709_v16 = vpop.f32.mrb[1].mxu0  ;;  %v3458_v12 = vpack.c.bf16 %v1182_v5, %v1180_v4  ;;  %v3460_v14 = vpack.c.bf16 %v1187_v8, %v1185_v7  ;;  %v1150_v4 = vld [vmem:[%s5560_s17 + $0x20] sm:$0xff]  ;;  %v1152_v5 = vld [vmem:[%s5560_s17 + $0x30] sm:$0xff]  ;;  %v1157_v7 = vld [vmem:[%s5560_s17 + $0x58] sm:$0xff] }
 0x39e   :  { %v710_v17 = vadd.f32 %v709_v16, %v620_v13  ;;  %v1186_v16 = vld [vmem:[%s5559_s2 + $0x30] sm:$0xff]  ;;  %v3490_v8 = vpack.c.bf16 %v1152_v5, %v1150_v4  ;;  %v1426_v4 = vld [vmem:[#allocation14 + $0x18] sm:$0xff] }
 0x39f   :  { %v785_v20 = vmul.f32 0.01, %v708_v15  ;;  %vm782_vm1 = vcmp.gt.f32.partialorder %v708_v15, 0.0  ;;  %v1423_v5 = vld [vmem:[#allocation14] sm:$0xff] }
 0x3a0   :  { %v786_v61 = vmul.f32 0.01, %v710_v17  ;;  %vm783_vm2 = vcmp.gt.f32.partialorder %v710_v17, 0.0  ;;  %v778_v24 = vpop.f32.mrb[0].mxu1 }
 0x3a1   :  { %v780_v29 = vpop.f32.mrb[1].mxu1  ;;  %v788_v30 = vsel %vm782_vm1, %v708_v15, %v785_v20  ;;  %v779_v46 = vadd.f32 %v778_v24, %v624_v39  ;;  %v1184_v15 = vld [vmem:[%s5559_s2 + $0x20] sm:$0xff]  ;;  %v1195_v24 = vld [vmem:[%s5559_s2 + $0x78] sm:$0xff] }
 0x3a2   :  { %v789_v25 = vsel %vm783_vm2, %v710_v17, %v786_v61  ;;  %v3462_v20 = vpack.c.bf16 %v1186_v16, %v1184_v15  ;;  %v1190_v61 = vld [vmem:[%s5559_s2 + $0x50] sm:$0xff]  ;;  %v1197_v29 = vld [vmem:[%s5559_s2 + $0x88] sm:$0xff]  ;;  %v1161_v15 = vld [vmem:[%s5560_s17 + $0x78] sm:$0xff] }
 0x3a3   :  { %951 = vmatprep.mubr.f32.mxu0 %v789_v25  ;;  %v787_v48 = vmul.f32 0.01, %v779_v46  ;;  %vm784_vm3 = vcmp.gt.f32.partialorder %v779_v46, 0.0  ;;  %v3466_v25 = vpack.c.bf16 %v1190_v61, %v1188_v22  ;;  %v3498_v22 = vpack.c.bf16 %v1160_v19, %v1158_v18 }
 0x3a4   :  { %952 = vmatmul.mubr.f32.vlgmr.msra.gmra.mrb[2].mxu0 %v788_v30  ;;  %v1199_v30 = vld [vmem:[%s5559_s2 + $0x98] sm:$0xff] }
 0x3a5   :  { %3398 = vmatpush1.bf16.msra.mxu0 %v3397_v23  ;;  %1022 = vmatprep.mubr.f32.mxu0 %v4695_v35  ;;  %v790_v49 = vsel %vm784_vm3, %v779_v46, %v787_v48  ;;  %v1193_v23 = vld [vmem:[%s5559_s2 + $0x68] sm:$0xff]  ;;  %v3472_v32 = vpack.c.bf16 %v1199_v30, %v1197_v29  ;;  %v1204_v46 = vld [vmem:[%s5559_s2 + $0xc0] sm:$0xff]  ;;  %v1168_v30 = vld [vmem:[%s5560_s17 + $0xb0] sm:$0xff] }
 0x3a6   :  { %3400 = vmatprep.subr.bf16.mxu0 %v3399_v26  ;;  %v3468_v26 = vpack.c.bf16 %v1195_v24, %v1193_v23  ;;  %v1162_v23 = vld [vmem:[%s5560_s17 + $0x80] sm:$0xff]  ;;  %v1164_v24 = vld [vmem:[%s5560_s17 + $0x90] sm:$0xff] }
 0x3a7   :  { %v3502_v27 = vpack.c.bf16 %v1164_v24, %v1162_v23  ;;  %v1166_v29 = vld [vmem:[%s5560_s17 + $0xa0] sm:$0xff]  ;;  %v1436_v24 = vld [vmem:[#allocation14 + $0x68] sm:$0x3] }
 0x3a9   :  { %3402 = vmatpush1.bf16.msra.mxu0 %v3401_v34  ;;  %v1198_v34 = vld [vmem:[%s5559_s2 + $0x90] sm:$0xff] }
 0x3aa   :  { %3404 = vmatprep.subr.bf16.mxu0 %v3403_v36  ;;  %v1201_v36 = vld [vmem:[%s5559_s2 + $0xa8] sm:$0xff]  ;;  %v3474_v38 = vpack.c.bf16 %v1198_v34, %v1196_v33  ;;  %v3506_v33 = vpack.c.bf16 %v1168_v30, %v1166_v29 }
 0x3ab   :  { %v3476_v39 = vpack.c.bf16 %v1203_v37, %v1201_v36  ;;  %v1170_v36 = vld [vmem:[%s5560_s17 + $0xc0] sm:$0xff]  ;;  %v1172_v37 = vld [vmem:[%s5560_s17 + $0xd0] sm:$0xff] }
 0x3ac   :  { %v3510_v40 = vpack.c.bf16 %v1172_v37, %v1170_v36 }
 0x3ad   :  { %3406 = vmatpush1.bf16.msra.mxu0 %v3405_v42  ;;  %v1205_v42 = vld [vmem:[%s5559_s2 + $0xc8] sm:$0xff] }
 0x3ae   :  { %3408 = vmatprep.subr.bf16.mxu0 %v3407_v43  ;;  %v1207_v43 = vld [vmem:[%s5559_s2 + $0xd8] sm:$0xff] }
 0x3af   :  { %v3480_v45 = vpack.c.bf16 %v1207_v43, %v1205_v42  ;;  %v1174_v42 = vld [vmem:[%s5560_s17 + $0xe0] sm:$0xff]  ;;  %v1176_v43 = vld [vmem:[%s5560_s17 + $0xf0] sm:$0xff] }
 0x3b1   :  { %3410 = vmatpush1.bf16.msra.mxu0 %v3409_v47  ;;  %v1206_v47 = vld [vmem:[%s5559_s2 + $0xd0] sm:$0xff] }
 0x3b2   :  { %3528 = vmatprep.subr.bf16.mxu0 %v4694_v0  ;;  %v3482_v48 = vpack.c.bf16 %v1206_v47, %v1204_v46  ;;  %v1178_v46 = vld [vmem:[%s5560_s17 + $0x100] sm:$0x1f]  ;;  %v1376_v47 = vld [vmem:[#allocation11] sm:$0x3] }
 0x3b4   :  { %2935 = vmatmul.mubr.msk.f32.vlgmr.msra.gmra.mrb[2].mxu0 %vm883_vm4, %v790_v49  ;;  %v1209_v49 = vld [vmem:[%s5559_s2 + $0xe8] sm:$0xff] }
 0x3b5   :  { %3075 = vmatprep.mubr.msk.f32.mxu0 %vm4698_vm14, %v4695_v35 }
 0x487   :  { %v1024_v63 = vpop.f32.mrb[2].mxu0 }
 0x488   :  { %v3790_v1 = vadd.f32 %v1024_v63, %v876_v60  ;;  %v1026_v2 = vpop.f32.mrb[3].mxu0  ;;  %v5261_v63 = vcombine.high %v5255_v56, %v5255_v56 }
 0x489   :  { %v3791_v3 = vadd.f32 %v1026_v2, %v880_v62  ;;  %v3486_v62 = vpack.c.bf16 %v1148_v55, %v1146_v54 }
 0x48a   :  { %v1031_v6 = vmul.f32 0.01, %v3790_v1  ;;  %vm1029_vm5 = vcmp.gt.f32.partialorder %v3790_v1, 0.0 }
 0x48b   :  { %vm1030_vm6 = vcmp.gt.f32.partialorder %v3791_v3, 0.0  ;;  %v1032_v10 = vmul.f32 0.01, %v3791_v3 }
 0x48c   :  { %v1033_v17 = vsel %vm1029_vm5, %v3790_v1, %v1031_v6  ;;  %v1155_v6 = vld [vmem:[%s5560_s17 + $0x48] sm:$0xff] }
 0x48d   :  { %v1034_v13 = vsel %vm1030_vm6, %v3791_v3, %v1032_v10  ;;  %v3488_v3 = vpack.c.bf16 %v1153_v59, %v1151_v58  ;;  %v3492_v10 = vpack.c.bf16 %v1157_v7, %v1155_v6  ;;  %v2944_v58 = vld [vmem:[#allocation13] ss:$0 sm:$0xff]  ;;  %v1425_v7 = vld [vmem:[#allocation14 + $0x10] sm:$0xff] }
 0x48e   :  { %2937 = vmatprep.mubr.msk.f32.mxu1 %vm1072_vm7, %v1034_v13  ;;  %v1156_v13 = vld [vmem:[%s5560_s17 + $0x50] sm:$0xff]  ;;  %vm2531_vm7 = vcmask 261120  }
 0x48f   :  { %1141 = vmatmul.mubr.f32.vlgmr.msra.gmra.mrb[2].mxu1 %v1033_v17 }
 0x490   :  { %3459 = vmatpush1.bf16.msra.mxu1 %v3458_v12  ;;  %1278 = vmatprep.mubr.f32.mxu1 %v4695_v35  ;;  %v1154_v12 = vld [vmem:[%s5560_s17 + $0x40] sm:$0xff] }
 0x491   :  { %3461 = vmatprep.subr.bf16.mxu1 %v3460_v14  ;;  %v1159_v14 = vld [vmem:[%s5560_s17 + $0x68] sm:$0xff]  ;;  %v3494_v16 = vpack.c.bf16 %v1156_v13, %v1154_v12  ;;  %v3518_v12 = vpack.c.bf16 %v1425_v7, %v1423_v5 }
 0x492   :  { %v3496_v17 = vpack.c.bf16 %v1161_v15, %v1159_v14  ;;  %v1427_v14 = vld [vmem:[#allocation14 + $0x20] sm:$0xff]  ;;  %v1429_v15 = vld [vmem:[#allocation14 + $0x30] sm:$0xff] }
 0x493   :  { %v3522_v18 = vpack.c.bf16 %v1429_v15, %v1427_v14 }
 0x494   :  { %3463 = vmatpush1.bf16.msra.mxu1 %v3462_v20  ;;  %v1163_v20 = vld [vmem:[%s5560_s17 + $0x88] sm:$0xff] }
 0x495   :  { %3465 = vmatprep.subr.bf16.mxu1 %v3464_v21  ;;  %v1165_v21 = vld [vmem:[%s5560_s17 + $0x98] sm:$0xff] }
 0x496   :  { %v3500_v61 = vpack.c.bf16 %v1165_v21, %v1163_v20  ;;  %v1431_v20 = vld [vmem:[#allocation14 + $0x40] sm:$0xff]  ;;  %v1433_v21 = vld [vmem:[#allocation14 + $0x50] sm:$0xff] }
 0x498   :  { %3467 = vmatpush1.bf16.msra.mxu1 %v3466_v25  ;;  %v1167_v25 = vld [vmem:[%s5560_s17 + $0xa8] sm:$0xff] }
 0x499   :  { %3469 = vmatprep.subr.bf16.mxu1 %v3468_v26  ;;  %v1169_v26 = vld [vmem:[%s5560_s17 + $0xb8] sm:$0xff] }
 0x49a   :  { %v3504_v28 = vpack.c.bf16 %v1169_v26, %v1167_v25  ;;  %v1435_v25 = vld [vmem:[#allocation14 + $0x60] sm:$0x3] }
 0x49c   :  { %3471 = vmatpush1.bf16.msra.mxu1 %v3470_v31  ;;  %v1171_v31 = vld [vmem:[%s5560_s17 + $0xc8] sm:$0xff] }
 0x49d   :  { %3473 = vmatprep.subr.bf16.mxu1 %v3472_v32  ;;  %v1173_v32 = vld [vmem:[%s5560_s17 + $0xd8] sm:$0xff] }
 0x49e   :  { %v3508_v34 = vpack.c.bf16 %v1173_v32, %v1171_v31  ;;  %v1437_v32 = vld [vmem:[#allocation16] sm:$0x3] }
 0x4a0   :  { %3475 = vmatpush1.bf16.msra.mxu1 %v3474_v38  ;;  %v1175_v38 = vld [vmem:[%s5560_s17 + $0xe8] sm:$0xff] }
 0x4a1   :  { %3477 = vmatprep.subr.bf16.mxu1 %v3476_v39  ;;  %v1177_v39 = vld [vmem:[%s5560_s17 + $0xf8] sm:$0xff] }
 0x4a2   :  { %v3512_v41 = vpack.c.bf16 %v1177_v39, %v1175_v38 }
 0x4a4   :  { %3479 = vmatpush1.bf16.msra.mxu1 %v3478_v44  ;;  %v3514_v44 = vpack.c.bf16 %v1176_v43, %v1174_v42 }
 0x4a5   :  { %3481 = vmatprep.subr.bf16.mxu1 %v3480_v45  ;;  %v1179_v45 = vld [vmem:[%s5560_s17 + $0x108] sm:$0x1f] }
 0x4a8   :  { %3483 = vmatpush1.bf16.msra.mxu1 %v3482_v48  ;;  %v1381_v48 = vrot.slane %v1376_v47, %v5193_v9 }
 0x4a9   :  { %1242 = vmatprep.subr.mxu1 %v1209_v49  ;;  %v1385_v49 = vrot.slane %v1376_v47, %v5195_v11 }
 0x4ac   :  { %1243 = vmatpush1.msra.mxu1 %v1208_v52 }
 0x4ad   :  { %3485 = vmatprep.subr.bf16.mxu1 %v3484_v53 }
 0x562   :  { %v1142_v60 = vpop.f32.mrb[2].mxu1 }
 0x563   :  { %v5263_v1 = vadd.f32 %v2936_v57, %v1142_v60  ;;  %v1144_v2 = vpop.f32.mrb[3].mxu1 }
 0x565   :  { %2938 = vmatmul.mubr.msk.f32.vlgmr.msra.gmra.mrb[4].mxu1 %vm1210_vm8, %v5263_v1 }
 0x566   :  { %3487 = vmatpush1.bf16.msra.mxu1 %v3486_v62  ;;  %2942 = vmatprep.mubr.msk.f32.mxu1 %vm1295_vm9, %v5261_v63 }
 0x567   :  { %3489 = vmatprep.subr.bf16.mxu1 %v3488_v3  ;;  %v1424_v3 = vld [vmem:[#allocation14 + $0x8] sm:$0xff] }
 0x568   :  { %v3516_v6 = vpack.c.bf16 %v1426_v4, %v1424_v3  ;;  %v1843_v3 = vld [vmem:[#allocation26 + $0x20] sm:$0xff]  ;;  %v1844_v4 = vld [vmem:[#allocation26 + $0x28] sm:$0xff] }
 0x569   :  { %v3568_v7 = vpack.c.bf16 %v1844_v4, %v1843_v3  ;;  %v1756_v3 = vld [vmem:[#allocation23 + $0x28] sm:$0xff] }
 0x56a   :  { %3491 = vmatpush1.bf16.msra.mxu1 %v3490_v8  ;;  %v1428_v8 = vld [vmem:[#allocation14 + $0x28] sm:$0xff] }
 0x56b   :  { %3493 = vmatprep.subr.bf16.mxu1 %v3492_v10  ;;  %v1430_v10 = vld [vmem:[#allocation14 + $0x38] sm:$0xff] }
 0x56c   :  { %v3520_v13 = vpack.c.bf16 %v1430_v10, %v1428_v8  ;;  %v1571_v10 = vld [vmem:[#allocation19 + $0x30] sm:$0x3] }
 0x56e   :  { %3495 = vmatpush1.bf16.msra.mxu1 %v3494_v16  ;;  %v1432_v16 = vld [vmem:[#allocation14 + $0x48] sm:$0xff] }
 0x56f   :  { %3497 = vmatprep.subr.bf16.mxu1 %v3496_v17  ;;  %v1434_v17 = vld [vmem:[#allocation14 + $0x58] sm:$0xff] }
 0x570   :  { %v3524_v19 = vpack.c.bf16 %v1434_v17, %v1432_v16 }
 0x572   :  { %3499 = vmatpush1.bf16.msra.mxu1 %v3498_v22 }
 0x573   :  { %3501 = vmatprep.subr.bf16.mxu1 %v3500_v61  ;;  %v3526_v61 = vpack.c.bf16 %v1433_v21, %v1431_v20  ;;  %v1929_v20 = vld [vmem:[#allocation29] sm:$0xff]  ;;  %v1930_v21 = vld [vmem:[#allocation29 + $0x8] sm:$0xff] }
 0x576   :  { %3503 = vmatpush1.bf16.msra.mxu1 %v3502_v27 }
 0x577   :  { %3505 = vmatprep.subr.bf16.mxu1 %v3504_v28 }
 0x57a   :  { %3507 = vmatpush1.bf16.msra.mxu1 %v3506_v33  ;;  %v1442_v33 = vrot.slane %v1437_v32, %v5193_v9 }
 0x57b   :  { %3509 = vmatprep.subr.bf16.mxu1 %v3508_v34 }
 0x57e   :  { %3511 = vmatpush1.bf16.msra.mxu1 %v3510_v40 }
 0x57f   :  { %3513 = vmatprep.subr.bf16.mxu1 %v3512_v41  ;;  %v2949_v41 = vld [vmem:[#allocation17] ss:$0 sm:$0xff] }
 0x582   :  { %3515 = vmatpush1.bf16.msra.mxu1 %v3514_v44  ;;  %v1446_v44 = vrot.slane %v1437_v32, %v5195_v11  ;;  %v1665_v32 = vld [vmem:[%s5562_s6 + $0x28] sm:$0xff] }
 0x583   :  { %2940 = vmatprep.subr.msk.mxu1 %vm1298_vm10, %v1179_v45 }
 0x586   :  { %2941 = vmatpush1.msk.msra.mxu1 %vm1298_vm10, %v1178_v46 }
 0x587   :  { %1370 = vmatmul.mubr.f32.vlgmr.msra.gmra.mrb[4].mxu1 %v5255_v56  ;;  %3517 = vmatprep.subr.bf16.mxu1 %v3516_v6 }
 0x588   :  { %1526 = vmatprep.mubr.f32.mxu1 %v4695_v35  ;;  %3519 = vmatpush1.bf16.msra.mxu1 %v3518_v12  ;;  %v1845_v12 = vld [vmem:[#allocation26 + $0x30] sm:$0x3] }
 0x589   :  { %3521 = vmatprep.subr.bf16.mxu1 %v3520_v13 }
 0x58c   :  { %3523 = vmatpush1.bf16.msra.mxu1 %v3522_v18  ;;  %v1660_v18 = vld [vmem:[%s5562_s6] sm:$0xff] }
 0x58d   :  { %3525 = vmatprep.subr.bf16.mxu1 %v3524_v19  ;;  %v1661_v19 = vld [vmem:[%s5562_s6 + $0x8] sm:$0xff] }
 0x590   :  { %3527 = vmatpush1.bf16.msra.mxu1 %v3526_v61  ;;  %v3571_v61 = vpack.c.bf16 %v1930_v21, %v1929_v20  ;;  %v2022_v20 = vld [vmem:[#allocation32 + $0x10] sm:$0xff]  ;;  %v2023_v21 = vld [vmem:[#allocation32 + $0x18] sm:$0xff] }
 0x591   :  { %2945 = vmatprep.subr.msk.mxu1 %vm1455_vm11, %v1436_v24  ;;  %v1663_v24 = vld [vmem:[%s5562_s6 + $0x18] sm:$0xff] }
 0x594   :  { %2946 = vmatpush1.msk.msra.mxu1 %vm1455_vm11, %v1435_v25  ;;  %v1931_v25 = vld [vmem:[#allocation29 + $0x10] sm:$0xff] }
 0x595   :  { %3561 = vmatprep.subr.bf16.mxu1 %v4694_v0 }
 0x65a   :  { %v1371_v50 = vpop.f32.mrb[4].mxu1 }
 0x65b   :  { %v1388_v51 = vadd.f32 %v1381_v48, %v1371_v50  ;;  %v1373_v52 = vpop.f32.mrb[5].mxu1  ;;  %v1566_v50 = vld [vmem:[#allocation19 + $0x8] sm:$0xff] }
 0x65c   :  { %v1389_v53 = vadd.f32 %v1385_v49, %v1373_v52  ;;  %v1565_v49 = vld [vmem:[#allocation19] sm:$0xff] }
 0x65d   :  { %v2943_v54 = vmul.f32 -1.442695, %v1388_v51  ;;  %v3529_v52 = vpack.c.bf16 %v1566_v50, %v1565_v49 }
 0x65f   :  { %3883 = vpow2.f32 %v2943_v54  ;;  %v1567_v54 = vld [vmem:[#allocation19 + $0x10] sm:$0xff]  ;;  %3530 = vmatpush3.bf16.msra.mxu0 %v3529_v52 }
 0x660   :  { %3531 = vmatprep.subr.bf16.mxu0 %v4694_v0 }
 0x669   :  { %v3884_v55 = vpop.eup %3883 }
 0x66a   :  { %v1393_v57 = vadd.f32 1.0, %v3884_v55  ;;  %v1568_v55 = vld [vmem:[#allocation19 + $0x18] sm:$0xff] }
 0x66c   :  { %3885 = vrcp.f32 %v1393_v57 }
 0x676   :  { %v3886_v59 = vpop.eup %3885 }
 0x677   :  { %v1403_v60 = vmul.f32 %v3886_v59, %v2944_v58  ;;  %v1412_v27 = vsub.f32 1.0, %v3886_v59  ;;  %v1841_v58 = vld [vmem:[#allocation26 + $0x10] sm:$0xff]  ;;  %v1842_v59 = vld [vmem:[#allocation26 + $0x18] sm:$0xff] }
 0x679   :  { %1405 = vrot.lane.b32.xlu0 %v1403_v60, %s4696_s8  ;;  %v3532_v60 = vpack.c.bf16 %v1568_v55, %v1567_v54 }
 0x67b   :  { %3533 = vmatpush3.bf16.msra.mxu0 %v3532_v60 }
 0x67c   :  { %3534 = vmatprep.subr.bf16.mxu0 %v4694_v0 }
 0x6eb   :  { %v1406_v56 = vpop.permute.xlu0 %1405 }
 0x6ec   :  { %v1408_v62 = vadd.f32 %v1406_v56, %v1388_v51  ;;  %v1409_v2 = vadd.f32 %v1406_v56, %v1389_v53  ;;  %v1839_v51 = vld [vmem:[#allocation26] sm:$0xff]  ;;  %v1840_v53 = vld [vmem:[#allocation26 + $0x8] sm:$0xff]  ;;  %v3565_v56 = vpack.c.bf16 %v1842_v59, %v1841_v58  ;;  %v1754_v59 = vld [vmem:[#allocation23 + $0x18] sm:$0xff] }
 0x6ed   :  { %v3562_v57 = vpack.c.bf16 %v1840_v53, %v1839_v51  ;;  %v1753_v58 = vld [vmem:[#allocation23 + $0x10] sm:$0xff] }
 0x6ee   :  { %3887 = vtanh.f32 %v1408_v62  ;;  %v1569_v62 = vld [vmem:[#allocation19 + $0x20] sm:$0xff] }
 0x6ef   :  { %3889 = vtanh.f32 %v1409_v2  ;;  %v1570_v2 = vld [vmem:[#allocation19 + $0x28] sm:$0xff] }
 0x6f0   :  { %v3535_v5 = vpack.c.bf16 %v1570_v2, %v1569_v62  ;;  %v3553_v62 = vpack.c.bf16 %v1754_v59, %v1753_v58  ;;  %v1755_v2 = vld [vmem:[#allocation23 + $0x20] sm:$0xff]  ;;  %v2162_v58 = vld [vmem:[#allocation37 + $0x60] sm:$0xff] }
 0x6f1   :  { %v3556_v4 = vpack.c.bf16 %v1756_v3, %v1755_v2  ;;  %v2164_v59 = vld [vmem:[#allocation37 + $0x70] sm:$0xff]  ;;  %v2166_v3 = vld [vmem:[#allocation37 + $0x80] sm:$0xff] }
 0x6f2   :  { %3536 = vmatpush3.bf16.msra.mxu0 %v3535_v5  ;;  %v1757_v5 = vld [vmem:[#allocation23 + $0x30] sm:$0xff] }
 0x6f3   :  { %3073 = vmatprep.subr.mxu0 %v4695_v35 }
 0x6f6   :  { %3074 = vmatpush3.msk.msra.mxu0 %vm1455_vm11, %v1571_v10 }
 0x6f7   :  { %3537 = vmatprep.subr.bf16.mxu0 %v4694_v0 }
 0x6f8   :  { %v3888_v22 = vpop.eup %3887 }
 0x6f9   :  { %v3890_v23 = vpop.eup %3889  ;;  %1415 = vrot.lane.b32.xlu0 %v3888_v22, %s4697_s1  ;;  %v3538_v22 = vpack.c.bf16 %v1661_v19, %v1660_v18 }
 0x6fa   :  { %1417 = vrot.lane.b32.xlu1 %v3890_v23, %s4697_s1  ;;  %v1662_v23 = vld [vmem:[%s5562_s6 + $0x10] sm:$0xff] }
 0x76b   :  { %v1416_v26 = vpop.permute.xlu0 %1415 }
 0x76c   :  { %v1418_v28 = vpop.permute.xlu1 %1417 }
 0x76d   :  { %v1420_v29 = vsel %vm1419_vm12, %v1416_v26, %v1418_v28  ;;  %v1932_v26 = vld [vmem:[#allocation29 + $0x18] sm:$0xff]  ;;  %v3541_v28 = vpack.c.bf16 %v1663_v24, %v1662_v23  ;;  %v2024_v23 = vld [vmem:[#allocation32 + $0x20] sm:$0xff]  ;;  %v2025_v24 = vld [vmem:[#allocation32 + $0x28] sm:$0xff] }
 0x76e   :  { %v1422_v30 = vmul.f32 %v1420_v29, %v1412_v27  ;;  %v3574_v29 = vpack.c.bf16 %v1932_v26, %v1931_v25  ;;  %v2960_v25 = vld [vmem:[#allocation31] ss:$0 sm:$0xff]  ;;  %v3589_v26 = vpack.c.bf16 %v2025_v24, %v2024_v23  ;;  %v2352_v24 = vld [vmem:[%s5563_s7 + $0x8] sm:$0xff] }
 0x770   :  { %1450 = vrot.lane.b32.xlu1 %v1422_v30, %s4697_s1  ;;  %v1664_v30 = vld [vmem:[%s5562_s6 + $0x20] sm:$0xff] }
 0x7e2   :  { %v5311_v31 = vpop.permute.xlu1 %1450 }
 0x7e3   :  { %2947 = vmatmul.mubr.msk.f32.vlgmr.msra.gmra.mrb[6].mxu1 %vm1452_vm13, %v5311_v31 }
 0x7e4   :  { %3130 = vmatprep.mubr.msk.f32.mxu1 %vm4698_vm14, %v4695_v35  ;;  %3563 = vmatpush3.bf16.msra.mxu1 %v3562_v57 }
 0x7e5   :  { %3564 = vmatprep.subr.bf16.mxu1 %v4694_v0 }
 0x7e8   :  { %3566 = vmatpush3.bf16.msra.mxu1 %v3565_v56 }
 0x7e9   :  { %3567 = vmatprep.subr.bf16.mxu1 %v4694_v0 }
 0x7ec   :  { %3569 = vmatpush3.bf16.msra.mxu1 %v3568_v7 }
 0x7ed   :  { %3128 = vmatprep.subr.mxu1 %v4695_v35 }
 0x7f0   :  { %3129 = vmatpush3.msk.msra.mxu1 %vm1455_vm11, %v1845_v12 }
 0x7f1   :  { %3570 = vmatprep.subr.bf16.mxu1 %v4694_v0 }
 0x8b6   :  { %v1528_v34 = vpop.f32.mrb[6].mxu1 }
 0x8b7   :  { %v1529_v36 = vadd.f32 %v1528_v34, %v1442_v33  ;;  %v1530_v37 = vpop.f32.mrb[7].mxu1  ;;  %v1933_v33 = vld [vmem:[#allocation29 + $0x20] sm:$0xff]  ;;  %v1934_v34 = vld [vmem:[#allocation29 + $0x28] sm:$0xff] }
 0x8b8   :  { %v1531_v45 = vadd.f32 %v1530_v37, %v1446_v44  ;;  %v3577_v37 = vpack.c.bf16 %v1934_v34, %v1933_v33  ;;  %v2950_v44 = vld [vmem:[#allocation20] ss:$0 sm:$0xff] }
 0x8b9   :  { %v2948_v38 = vmul.f32 -1.442695, %v1529_v36 }
 0x8bb   :  { %3891 = vpow2.f32 %v2948_v38  ;;  %v1666_v38 = vld [vmem:[%s5562_s6 + $0x30] sm:$0xff] }
 0x8c5   :  { %v3892_v39 = vpop.eup %3891 }
 0x8c6   :  { %v1536_v40 = vadd.f32 1.0, %v3892_v39  ;;  %v1667_v39 = vld [vmem:[%s5562_s6 + $0x38] sm:$0xff] }
 0x8c8   :  { %3893 = vrcp.f32 %v1536_v40  ;;  %v3547_v40 = vpack.c.bf16 %v1667_v39, %v1666_v38  ;;  %v2150_v39 = vld [vmem:[#allocation37] sm:$0xff] }
 0x8d2   :  { %v3894_v42 = vpop.eup %3893 }
 0x8d3   :  { %v1546_v43 = vmul.f32 %v3894_v42, %v2949_v41  ;;  %v1555_v15 = vsub.f32 1.0, %v3894_v42  ;;  %v1935_v41 = vld [vmem:[#allocation29 + $0x30] sm:$0xff]  ;;  %v1936_v42 = vld [vmem:[#allocation29 + $0x38] sm:$0xff] }
 0x8d5   :  { %1548 = vrot.lane.b32.xlu0 %v1546_v43, %s4696_s8  ;;  %v3580_v43 = vpack.c.bf16 %v1936_v42, %v1935_v41  ;;  %v2155_v42 = vld [vmem:[#allocation37 + $0x28] sm:$0xff] }
 0x947   :  { %v1549_v46 = vpop.permute.xlu0 %1548 }
 0x948   :  { %v1551_v47 = vadd.f32 %v1549_v46, %v1529_v36  ;;  %v1552_v48 = vadd.f32 %v1549_v46, %v1531_v45  ;;  %v3544_v36 = vpack.c.bf16 %v1665_v32, %v1664_v30  ;;  %v2957_v45 = vld [vmem:[#allocation28] ss:$0 sm:$0xff]  ;;  %v1751_v46 = vld [vmem:[#allocation23] sm:$0xff] }
 0x94a   :  { %3895 = vtanh.f32 %v1551_v47  ;;  %v1752_v47 = vld [vmem:[#allocation23 + $0x8] sm:$0xff] }
 0x94b   :  { %3897 = vtanh.f32 %v1552_v48  ;;  %v3550_v54 = vpack.c.bf16 %v1752_v47, %v1751_v46  ;;  %v2156_v46 = vld [vmem:[#allocation37 + $0x30] sm:$0xff] }
 0x954   :  { %v3896_v6 = vpop.eup %3895 }
 0x955   :  { %v3898_v8 = vpop.eup %3897  ;;  %1558 = vrot.lane.b32.xlu1 %v3896_v6, %s4697_s1  ;;  %v1758_v6 = vld [vmem:[#allocation23 + $0x38] sm:$0xff] }
 0x956   :  { %1560 = vrot.lane.b32.xlu0 %v3898_v8, %s4697_s1  ;;  %v3559_v7 = vpack.c.bf16 %v1758_v6, %v1757_v5  ;;  %v2953_v8 = vld [vmem:[#allocation22] ss:$0 sm:$0xff] }
 0x957   :  { %v2171_v6 = vld [vmem:[#allocation37 + $0xa8] sm:$0xff] }
 0x9c7   :  { %v1559_v13 = vpop.permute.xlu1 %1558 }
 0x9c8   :  { %v1561_v14 = vpop.permute.xlu0 %1560 }
 0x9c9   :  { %v1562_v16 = vsel %vm1419_vm12, %v1559_v13, %v1561_v14  ;;  %v2020_v13 = vld [vmem:[#allocation32] sm:$0xff]  ;;  %v2021_v14 = vld [vmem:[#allocation32 + $0x8] sm:$0xff] }
 0x9ca   :  { %v1564_v17 = vmul.f32 %v1562_v16, %v1555_v15  ;;  %v3583_v19 = vpack.c.bf16 %v2021_v14, %v2020_v13  ;;  %v2175_v14 = vld [vmem:[#allocation37 + $0xc8] sm:$0xff] }
 0x9cc   :  { %1580 = vrot.lane.b32.xlu1 %v1564_v17, %s4697_s1 }
 0xa3e   :  { %v5340_v27 = vpop.permute.xlu1 %1580 }
 0xa3f   :  { %3076 = vmatmul.mubr.msk.f32.vlgmr.msra.gmra.mrb[4].mxu0 %vm1452_vm13, %v5340_v27  ;;  %3131 = vmatmul.mubr.msk.f32.vlgmr.msra.gmra.mrb[8].mxu1 %vm1452_vm13, %v5340_v27 }
 0xa40   :  { %3539 = vmatpush3.bf16.msra.mxu0 %v3538_v22  ;;  %3572 = vmatpush3.bf16.msra.mxu1 %v3571_v61  ;;  %v3586_v61 = vpack.c.bf16 %v2023_v21, %v2022_v20  ;;  %v2179_v20 = vld [vmem:[#allocation37 + $0xe8] sm:$0xff]  ;;  %v2117_v21 = vld [vmem:[#allocation35 + $0x8] sm:$0xff] }
 0xa41   :  { %3540 = vmatprep.subr.bf16.mxu0 %v4694_v0  ;;  %3573 = vmatprep.subr.bf16.mxu1 %v4694_v0 }
 0xa42   :  { %3094 = vmatprep.mubr.msk.f32.mxu0 %vm4698_vm14, %v4695_v35  ;;  %3149 = vmatprep.mubr.msk.f32.mxu1 %vm4698_vm14, %v4695_v35 }
 0xa44   :  { %3542 = vmatpush3.bf16.msra.mxu0 %v3541_v28  ;;  %3575 = vmatpush3.bf16.msra.mxu1 %v3574_v29  ;;  %v2026_v28 = vld [vmem:[#allocation32 + $0x30] sm:$0xff]  ;;  %v2027_v29 = vld [vmem:[#allocation32 + $0x38] sm:$0xff] }
 0xa45   :  { %3543 = vmatprep.subr.bf16.mxu0 %v4694_v0  ;;  %3576 = vmatprep.subr.bf16.mxu1 %v4694_v0  ;;  %v3592_v32 = vpack.c.bf16 %v2027_v29, %v2026_v28  ;;  %v2353_v29 = vld [vmem:[%s5563_s7 + $0x10] sm:$0xff] }
 0xa48   :  { %3545 = vmatpush3.bf16.msra.mxu0 %v3544_v36  ;;  %3578 = vmatpush3.bf16.msra.mxu1 %v3577_v37  ;;  %v2151_v36 = vld [vmem:[#allocation37 + $0x8] sm:$0xff]  ;;  %v2153_v37 = vld [vmem:[#allocation37 + $0x18] sm:$0xff] }
 0xa49   :  { %3546 = vmatprep.subr.bf16.mxu0 %v4694_v0  ;;  %3579 = vmatprep.subr.bf16.mxu1 %v4694_v0  ;;  %v3594_v38 = vpack.c.bf16 %v2153_v37, %v2151_v36  ;;  %v2355_v36 = vld [vmem:[%s5563_s7 + $0x20] sm:$0xff]  ;;  %v2357_v37 = vld [vmem:[%s5563_s7 + $0x30] sm:$0xff] }
 0xa4c   :  { %3548 = vmatpush3.bf16.msra.mxu0 %v3547_v40  ;;  %3581 = vmatpush3.bf16.msra.mxu1 %v3580_v43  ;;  %v2152_v40 = vld [vmem:[#allocation37 + $0x10] sm:$0xff]  ;;  %v2157_v43 = vld [vmem:[#allocation37 + $0x38] sm:$0xff] }
 0xa4d   :  { %3549 = vmatprep.subr.bf16.mxu0 %v4694_v0  ;;  %v3596_v41 = vpack.c.bf16 %v2152_v40, %v2150_v39  ;;  %3595 = vmatprep.subr.bf16.mxu1 %v3594_v38  ;;  %v2360_v38 = vld [vmem:[%s5563_s7 + $0x48] sm:$0xff]  ;;  %v2362_v39 = vld [vmem:[%s5563_s7 + $0x58] sm:$0xff]  ;;  %v3660_v40 = vpack.c.bf16 %v2357_v37, %v2355_v36 }
 0xa4e   :  { %v2396_v36 = vld [vmem:[%s5563_s7 + $0x168] sm:$0xff]  ;;  %v2398_v37 = vld [vmem:[%s5563_s7 + $0x178] sm:$0xff] }
 0xb12   :  { %v1653_v48 = vpop.f32.mrb[4].mxu0  ;;  %v1922_v49 = vpop.f32.mrb[8].mxu1 }
 0xb13   :  { %v1654_v50 = vadd.f32 %v2950_v44, %v1653_v48  ;;  %v1923_v51 = vadd.f32 %v2957_v45, %v1922_v49  ;;  %v3077_v52 = vpop.f32.mrb[5].mxu0  ;;  %v3132_v53 = vpop.f32.mrb[9].mxu1  ;;  %v3598_v44 = vpack.c.bf16 %v2157_v43, %v2155_v42  ;;  %v2154_v45 = vld [vmem:[#allocation37 + $0x20] sm:$0xff]  ;;  %v2159_v48 = vld [vmem:[#allocation37 + $0x48] sm:$0xff]  ;;  %v2161_v49 = vld [vmem:[#allocation37 + $0x58] sm:$0xff] }
 0xb14   :  { %v3600_v47 = vpack.c.bf16 %v2156_v46, %v2154_v45  ;;  %v2160_v52 = vld [vmem:[#allocation37 + $0x50] sm:$0xff]  ;;  %v2361_v43 = vld [vmem:[%s5563_s7 + $0x50] sm:$0xff] }
 0xb15   :  { %vm1657_vm15 = vcmp.gt.f32.partialorder %v1654_v50, 0.0  ;;  %v1658_v55 = vmul.f32 0.01, %v1654_v50  ;;  %vm1926_vm0 = vcmp.gt.f32.partialorder %v1923_v51, 0.0  ;;  %v1927_v57 = vmul.f32 0.01, %v1923_v51 }
 0xb16   :  { %v2359_v42 = vld [vmem:[%s5563_s7 + $0x40] sm:$0xff]  ;;  %v2366_v45 = vld [vmem:[%s5563_s7 + $0x78] sm:$0xff] }
 0xb17   :  { %v1659_v60 = vsel %vm1657_vm15, %v1654_v50, %v1658_v55  ;;  %v1928_v56 = vsel %vm1926_vm0, %v1923_v51, %v1927_v57  ;;  %v3602_v50 = vpack.c.bf16 %v2161_v49, %v2159_v48  ;;  %v2158_v51 = vld [vmem:[#allocation37 + $0x40] sm:$0xff]  ;;  %v2165_v55 = vld [vmem:[#allocation37 + $0x78] sm:$0xff]  ;;  %v3664_v46 = vpack.c.bf16 %v2361_v43, %v2359_v42  ;;  %v2402_v43 = vld [vmem:[%s5563_s7 + $0x198] sm:$0xff] }
 0xb18   :  { %3095 = vmatmul.mubr.msk.f32.vlgmr.msra.gmra.mrb[6].mxu0 %vm883_vm4, %v1659_v60  ;;  %3150 = vmatmul.mubr.msk.f32.vlgmr.msra.gmra.mrb[10].mxu1 %vm883_vm4, %v1928_v56  ;;  %v3604_v53 = vpack.c.bf16 %v2160_v52, %v2158_v51  ;;  %v3608_v60 = vpack.c.bf16 %v2164_v59, %v2162_v58  ;;  %v2167_v56 = vld [vmem:[#allocation37 + $0x88] sm:$0xff]  ;;  %v2363_v48 = vld [vmem:[%s5563_s7 + $0x60] sm:$0xff]  ;;  %v2400_v42 = vld [vmem:[%s5563_s7 + $0x188] sm:$0xff] }
 0xb19   :  { %3551 = vmatpush3.bf16.msra.mxu0 %v3550_v54  ;;  %3113 = vmatprep.mubr.msk.f32.mxu0 %vm4698_vm14, %v4695_v35  ;;  %v2163_v54 = vld [vmem:[#allocation37 + $0x68] sm:$0xff] }
 0xb1a   :  { %3552 = vmatprep.subr.bf16.mxu0 %v4694_v0  ;;  %2247 = vmatprep.mubr.f32.mxu1 %v4695_v35  ;;  %v3606_v57 = vpack.c.bf16 %v2165_v55, %v2163_v54  ;;  %v2365_v49 = vld [vmem:[%s5563_s7 + $0x70] sm:$0xff]  ;;  %v2370_v51 = vld [vmem:[%s5563_s7 + $0x98] sm:$0xff]  ;;  %v2367_v54 = vld [vmem:[%s5563_s7 + $0x80] sm:$0xff] }
 0xb1b   :  { %3597 = vmatpush1.bf16.msra.mxu1 %v3596_v41  ;;  %v3662_v41 = vpack.c.bf16 %v2362_v39, %v2360_v38  ;;  %v3668_v52 = vpack.c.bf16 %v2365_v49, %v2363_v48  ;;  %v2369_v55 = vld [vmem:[%s5563_s7 + $0x90] sm:$0xff]  ;;  %v2374_v58 = vld [vmem:[%s5563_s7 + $0xb8] sm:$0xff]  ;;  %v3698_v39 = vpack.c.bf16 %v2398_v37, %v2396_v36  ;;  %v2404_v48 = vld [vmem:[%s5563_s7 + $0x1a8] sm:$0xff] }
 0xb1c   :  { %3599 = vmatprep.subr.bf16.mxu1 %v3598_v44  ;;  %v2364_v44 = vld [vmem:[%s5563_s7 + $0x68] sm:$0xff]  ;;  %v3672_v59 = vpack.c.bf16 %v2369_v55, %v2367_v54  ;;  %v2406_v49 = vld [vmem:[%s5563_s7 + $0x1b8] sm:$0xff] }
 0xb1d   :  { %3554 = vmatpush3.bf16.msra.mxu0 %v3553_v62  ;;  %v2169_v62 = vld [vmem:[#allocation37 + $0x98] sm:$0xff]  ;;  %v2955_v55 = vld [vmem:[#allocation25] ss:$0 sm:$0xff] }
 0xb1e   :  { %3555 = vmatprep.subr.bf16.mxu0 %v4694_v0  ;;  %v3610_v2 = vpack.c.bf16 %v2169_v62, %v2167_v56  ;;  %v2371_v56 = vld [vmem:[%s5563_s7 + $0xa0] sm:$0xff]  ;;  %v2373_v62 = vld [vmem:[%s5563_s7 + $0xb0] sm:$0xff] }
 0xb1f   :  { %3601 = vmatpush1.bf16.msra.mxu1 %v3600_v47  ;;  %v3666_v47 = vpack.c.bf16 %v2366_v45, %v2364_v44  ;;  %v3702_v45 = vpack.c.bf16 %v2402_v43, %v2400_v42  ;;  %v2132_v36 = vld [vmem:[#allocation35 + $0x80] sm:$0xff]  ;;  %v2137_v37 = vld [vmem:[#allocation35 + $0xa8] sm:$0xff]  ;;  %v2138_v42 = vld [vmem:[#allocation35 + $0xb0] sm:$0xff] }
 0xb20   :  { %3603 = vmatprep.subr.bf16.mxu1 %v3602_v50  ;;  %v2368_v50 = vld [vmem:[%s5563_s7 + $0x88] sm:$0xff] }
 0xb21   :  { %3557 = vmatpush3.bf16.msra.mxu0 %v3556_v4  ;;  %v2168_v4 = vld [vmem:[#allocation37 + $0x90] sm:$0xff]  ;;  %v2141_v43 = vld [vmem:[#allocation35 + $0xc8] sm:$0xff] }
 0xb22   :  { %3558 = vmatprep.subr.bf16.mxu0 %v4694_v0  ;;  %v3612_v5 = vpack.c.bf16 %v2168_v4, %v2166_v3  ;;  %v2378_v3 = vld [vmem:[%s5563_s7 + $0xd8] sm:$0xff]  ;;  %v3676_v4 = vpack.c.bf16 %v2373_v62, %v2371_v56 }
 0xb23   :  { %3605 = vmatpush1.bf16.msra.mxu1 %v3604_v53  ;;  %v3670_v53 = vpack.c.bf16 %v2370_v51, %v2368_v50  ;;  %v3706_v51 = vpack.c.bf16 %v2406_v49, %v2404_v48  ;;  %v2142_v48 = vld [vmem:[#allocation35 + $0xd0] sm:$0xff]  ;;  %v2145_v49 = vld [vmem:[#allocation35 + $0xe8] sm:$0xff] }
 0xb24   :  { %3607 = vmatprep.subr.bf16.mxu1 %v3606_v57  ;;  %v2372_v57 = vld [vmem:[%s5563_s7 + $0xa8] sm:$0xff] }
 0xb25   :  { %3560 = vmatpush3.bf16.msra.mxu0 %v3559_v7  ;;  %v2173_v7 = vld [vmem:[#allocation37 + $0xb8] sm:$0xff] }
 0xb26   :  { %3582 = vmatprep.subr.bf16.mxu0 %v4694_v0 }
 0xb27   :  { %3609 = vmatpush1.bf16.msra.mxu1 %v3608_v60  ;;  %v3674_v60 = vpack.c.bf16 %v2374_v58, %v2372_v57 }
 0xb28   :  { %3611 = vmatprep.subr.bf16.mxu1 %v3610_v2  ;;  %v2376_v2 = vld [vmem:[%s5563_s7 + $0xc8] sm:$0xff] }
 0xb2b   :  { %3613 = vmatpush1.bf16.msra.mxu1 %v3612_v5  ;;  %v3678_v5 = vpack.c.bf16 %v2378_v3, %v2376_v2 }
 0xbeb   :  { %v1744_v10 = vpop.f32.mrb[6].mxu0  ;;  %v2013_v12 = vpop.f32.mrb[10].mxu1 }
 0xbec   :  { %v1745_v15 = vadd.f32 %v2953_v8, %v1744_v10  ;;  %v3096_v16 = vpop.f32.mrb[7].mxu0  ;;  %v3151_v17 = vpop.f32.mrb[11].mxu1  ;;  %v2014_v30 = vadd.f32 %v2960_v25, %v2013_v12  ;;  %v3614_v8 = vpack.c.bf16 %v2173_v7, %v2171_v6  ;;  %v2170_v10 = vld [vmem:[#allocation37 + $0xa0] sm:$0xff]  ;;  %v2172_v12 = vld [vmem:[#allocation37 + $0xb0] sm:$0xff] }
 0xbed   :  { %v3616_v13 = vpack.c.bf16 %v2172_v12, %v2170_v10  ;;  %v2174_v17 = vld [vmem:[#allocation37 + $0xc0] sm:$0xff]  ;;  %v2354_v25 = vld [vmem:[%s5563_s7 + $0x18] sm:$0xff]  ;;  %v2375_v6 = vld [vmem:[%s5563_s7 + $0xc0] sm:$0xff] }
 0xbee   :  { %vm1748_vm1 = vcmp.gt.f32.partialorder %v1745_v15, 0.0  ;;  %v1749_v18 = vmul.f32 0.01, %v1745_v15  ;;  %v2018_v33 = vmul.f32 0.01, %v2014_v30  ;;  %vm2017_vm2 = vcmp.gt.f32.partialorder %v2014_v30, 0.0  ;;  %3615 = vmatprep.subr.bf16.mxu1 %v3614_v8 }
 0xbef   :  { %3617 = vmatpush1.bf16.msra.mxu1 %v3616_v13  ;;  %v3654_v28 = vpack.c.bf16 %v2354_v25, %v2352_v24  ;;  %v2377_v7 = vld [vmem:[%s5563_s7 + $0xd0] sm:$0xff]  ;;  %v2380_v8 = vld [vmem:[%s5563_s7 + $0xe8] sm:$0xff]  ;;  %v2382_v10 = vld [vmem:[%s5563_s7 + $0xf8] sm:$0xff] }
 0xbf0   :  { %v1750_v22 = vsel %vm1748_vm1, %v1745_v15, %v1749_v18  ;;  %v2019_v34 = vsel %vm2017_vm2, %v2014_v30, %v2018_v33  ;;  %v2177_v15 = vld [vmem:[#allocation37 + $0xd8] sm:$0xff]  ;;  %v2176_v18 = vld [vmem:[#allocation37 + $0xd0] sm:$0xff]  ;;  %v3680_v12 = vpack.c.bf16 %v2377_v7, %v2375_v6  ;;  %v3682_v13 = vpack.c.bf16 %v2382_v10, %v2380_v8  ;;  %v2118_v6 = vld [vmem:[#allocation35 + $0x10] sm:$0xff] }
 0xbf1   :  { %3114 = vmatmul.mubr.msk.f32.vlgmr.msra.gmra.mrb[8].mxu0 %vm883_vm4, %v1750_v22  ;;  %v3618_v16 = vpack.c.bf16 %v2177_v15, %v2175_v14  ;;  %v2119_v22 = vld [vmem:[#allocation35 + $0x18] sm:$0xff]  ;;  %v2356_v30 = vld [vmem:[%s5563_s7 + $0x28] sm:$0xff]  ;;  %v2379_v14 = vld [vmem:[%s5563_s7 + $0xe0] sm:$0xff] }
 0xbf2   :  { %3584 = vmatpush3.bf16.msra.mxu0 %v3583_v19  ;;  %3168 = vmatprep.mubr.msk.f32.mxu0 %vm4698_vm14, %v4695_v35  ;;  %v3620_v19 = vpack.c.bf16 %v2176_v18, %v2174_v17  ;;  %v3622_v23 = vpack.c.bf16 %v2119_v22, %v2117_v21  ;;  %v2381_v15 = vld [vmem:[%s5563_s7 + $0xf0] sm:$0xff]  ;;  %v2386_v17 = vld [vmem:[%s5563_s7 + $0x118] sm:$0xff]  ;;  %v2388_v22 = vld [vmem:[%s5563_s7 + $0x128] sm:$0xff] }
 0xbf3   :  { %3585 = vmatprep.subr.bf16.mxu0 %v4694_v0  ;;  %3619 = vmatprep.subr.bf16.mxu1 %v3618_v16  ;;  %v2384_v16 = vld [vmem:[%s5563_s7 + $0x108] sm:$0xff]  ;;  %v3684_v18 = vpack.c.bf16 %v2381_v15, %v2379_v14  ;;  %v2385_v21 = vld [vmem:[%s5563_s7 + $0x110] sm:$0xff]  ;;  %v2387_v25 = vld [vmem:[%s5563_s7 + $0x120] sm:$0xff] }
 0xbf4   :  { %3621 = vmatpush1.bf16.msra.mxu1 %v3620_v19  ;;  %v3686_v19 = vpack.c.bf16 %v2386_v17, %v2384_v16  ;;  %v2121_v8 = vld [vmem:[#allocation35 + $0x28] sm:$0xff]  ;;  %v2123_v10 = vld [vmem:[#allocation35 + $0x38] sm:$0xff]  ;;  %v2120_v17 = vld [vmem:[#allocation35 + $0x20] sm:$0xff] }
 0xbf5   :  { %2211 = vmatprep.subr.mxu1 %v2179_v20  ;;  %v2383_v20 = vld [vmem:[%s5563_s7 + $0x100] sm:$0xff]  ;;  %v3626_v16 = vpack.c.bf16 %v2123_v10, %v2121_v8  ;;  %v2413_v10 = vld [vmem:[%s5563_s7 + $0x1f0] sm:$0xff] }
 0xbf6   :  { %3587 = vmatpush3.bf16.msra.mxu0 %v3586_v61  ;;  %v2178_v61 = vld [vmem:[#allocation37 + $0xe0] sm:$0xff]  ;;  %v2411_v8 = vld [vmem:[%s5563_s7 + $0x1e0] sm:$0xff] }
 0xbf7   :  { %3588 = vmatprep.subr.bf16.mxu0 %v4694_v0 }
 0xbf8   :  { %2212 = vmatpush1.msra.mxu1 %v2178_v61  ;;  %v2390_v61 = vld [vmem:[%s5563_s7 + $0x138] sm:$0xff] }
 0xbf9   :  { %3623 = vmatprep.subr.bf16.mxu1 %v3622_v23  ;;  %v3688_v23 = vpack.c.bf16 %v2385_v21, %v2383_v20  ;;  %v3690_v24 = vpack.c.bf16 %v2390_v61, %v2388_v22  ;;  %v2127_v20 = vld [vmem:[#allocation35 + $0x58] sm:$0xff]  ;;  %v2124_v61 = vld [vmem:[#allocation35 + $0x40] sm:$0xff] }
 0xbfa   :  { %3590 = vmatpush3.bf16.msra.mxu0 %v3589_v26  ;;  %v2351_v26 = vld [vmem:[%s5563_s7] sm:$0xff] }
 0xbfb   :  { %3591 = vmatprep.subr.bf16.mxu0 %v4694_v0  ;;  %v3656_v33 = vpack.c.bf16 %v2353_v29, %v2351_v26  ;;  %v2389_v26 = vld [vmem:[%s5563_s7 + $0x130] sm:$0xff]  ;;  %v2394_v29 = vld [vmem:[%s5563_s7 + $0x158] sm:$0xff] }
 0xbfe   :  { %3593 = vmatpush3.bf16.msra.mxu0 %v3592_v32  ;;  %v2358_v32 = vld [vmem:[%s5563_s7 + $0x38] sm:$0xff] }
 0xbff   :  { %3655 = vmatprep.subr.bf16.mxu0 %v3654_v28  ;;  %v2392_v28 = vld [vmem:[%s5563_s7 + $0x148] sm:$0xff] }
 0xc01   :  { %3169 = vmatmul.mubr.msk.f32.vlgmr.msra.gmra.mrb[10].mxu0 %vm883_vm4, %v2019_v34  ;;  %v3658_v34 = vpack.c.bf16 %v2358_v32, %v2356_v30  ;;  %v3692_v30 = vpack.c.bf16 %v2389_v26, %v2387_v25  ;;  %v3694_v32 = vpack.c.bf16 %v2394_v29, %v2392_v28  ;;  %v2128_v28 = vld [vmem:[#allocation35 + $0x60] sm:$0xff]  ;;  %v2130_v29 = vld [vmem:[#allocation35 + $0x70] sm:$0xff] }
 0xc02   :  { %3657 = vmatpush1.bf16.msra.mxu0 %v3656_v33  ;;  %v2391_v33 = vld [vmem:[%s5563_s7 + $0x140] sm:$0xff] }
 0xc03   :  { %3659 = vmatprep.subr.bf16.mxu0 %v3658_v34  ;;  %v2393_v34 = vld [vmem:[%s5563_s7 + $0x150] sm:$0xff] }
 0xc04   :  { %v3696_v38 = vpack.c.bf16 %v2393_v34, %v2391_v33  ;;  %v3636_v33 = vpack.c.bf16 %v2130_v29, %v2128_v28  ;;  %v2515_v28 = vld [vmem:[#allocation41 + $0x58] sm:$0xff] }
 0xc06   :  { %3661 = vmatpush1.bf16.msra.mxu0 %v3660_v40  ;;  %v2395_v40 = vld [vmem:[%s5563_s7 + $0x160] sm:$0xff] }
 0xc07   :  { %3663 = vmatprep.subr.bf16.mxu0 %v3662_v41  ;;  %v2397_v41 = vld [vmem:[%s5563_s7 + $0x170] sm:$0xff] }
 0xc08   :  { %v3700_v44 = vpack.c.bf16 %v2397_v41, %v2395_v40  ;;  %v2136_v41 = vld [vmem:[#allocation35 + $0xa0] sm:$0xff] }
 0xc0a   :  { %3665 = vmatpush1.bf16.msra.mxu0 %v3664_v46  ;;  %v2399_v46 = vld [vmem:[%s5563_s7 + $0x180] sm:$0xff] }
 0xc0b   :  { %3667 = vmatprep.subr.bf16.mxu0 %v3666_v47  ;;  %v2401_v47 = vld [vmem:[%s5563_s7 + $0x190] sm:$0xff] }
 0xc0c   :  { %v3704_v50 = vpack.c.bf16 %v2401_v47, %v2399_v46  ;;  %v2140_v47 = vld [vmem:[#allocation35 + $0xc0] sm:$0xff] }
 0xc0e   :  { %3669 = vmatpush1.bf16.msra.mxu0 %v3668_v52  ;;  %v2403_v52 = vld [vmem:[%s5563_s7 + $0x1a0] sm:$0xff] }
 0xc0f   :  { %3671 = vmatprep.subr.bf16.mxu0 %v3670_v53  ;;  %v2405_v53 = vld [vmem:[%s5563_s7 + $0x1b0] sm:$0xff] }
 0xc10   :  { %v3708_v54 = vpack.c.bf16 %v2405_v53, %v2403_v52  ;;  %v2144_v53 = vld [vmem:[#allocation35 + $0xe0] sm:$0xff] }
 0xc12   :  { %3673 = vmatpush1.bf16.msra.mxu0 %v3672_v59 }
 0xc13   :  { %3675 = vmatprep.subr.bf16.mxu0 %v3674_v60 }
 0xc16   :  { %3677 = vmatpush1.bf16.msra.mxu0 %v3676_v4  ;;  %v2962_v4 = vld [vmem:[#allocation34] ss:$0 sm:$0xff] }
 0xc17   :  { %3679 = vmatprep.subr.bf16.mxu0 %v3678_v5  ;;  %v2116_v5 = vld [vmem:[#allocation35] sm:$0xff] }
 0xc18   :  { %v3624_v14 = vpack.c.bf16 %v2118_v6, %v2116_v5  ;;  %v2412_v5 = vld [vmem:[%s5563_s7 + $0x1e8] sm:$0xff]  ;;  %v2414_v6 = vld [vmem:[%s5563_s7 + $0x1f8] sm:$0xff] }
 0xc1a   :  { %3681 = vmatpush1.bf16.msra.mxu0 %v3680_v12 }
 0xc1b   :  { %3683 = vmatprep.subr.bf16.mxu0 %v3682_v13 }
 0xc1e   :  { %3685 = vmatpush1.bf16.msra.mxu0 %v3684_v18  ;;  %v2122_v18 = vld [vmem:[#allocation35 + $0x30] sm:$0xff] }
 0xc1f   :  { %3687 = vmatprep.subr.bf16.mxu0 %v3686_v19  ;;  %v2125_v19 = vld [vmem:[#allocation35 + $0x48] sm:$0xff]  ;;  %v3628_v21 = vpack.c.bf16 %v2122_v18, %v2120_v17  ;;  %v2507_v17 = vld [vmem:[#allocation41 + $0x18] sm:$0xff] }
 0xc20   :  { %v3630_v22 = vpack.c.bf16 %v2127_v20, %v2125_v19  ;;  %v2508_v19 = vld [vmem:[#allocation41 + $0x20] sm:$0xff]  ;;  %v2509_v20 = vld [vmem:[#allocation41 + $0x28] sm:$0xff] }
 0xc22   :  { %3689 = vmatpush1.bf16.msra.mxu0 %v3688_v23  ;;  %v2126_v23 = vld [vmem:[#allocation35 + $0x50] sm:$0xff] }
 0xc23   :  { %3691 = vmatprep.subr.bf16.mxu0 %v3690_v24  ;;  %v2129_v24 = vld [vmem:[#allocation35 + $0x68] sm:$0xff]  ;;  %v3632_v25 = vpack.c.bf16 %v2126_v23, %v2124_v61  ;;  %v2511_v61 = vld [vmem:[#allocation41 + $0x38] sm:$0xff] }
 0xc26   :  { %3693 = vmatpush1.bf16.msra.mxu0 %v3692_v30  ;;  %v2133_v30 = vld [vmem:[#allocation35 + $0x88] sm:$0xff] }
 0xc27   :  { %3695 = vmatprep.subr.bf16.mxu0 %v3694_v32  ;;  %v2135_v32 = vld [vmem:[#allocation35 + $0x98] sm:$0xff] }
 0xc28   :  { %v3638_v34 = vpack.c.bf16 %v2135_v32, %v2133_v30  ;;  %v2516_v30 = vld [vmem:[#allocation41 + $0x60] sm:$0xff]  ;;  %v2517_v32 = vld [vmem:[#allocation41 + $0x68] sm:$0xff] }
 0xc2a   :  { %3697 = vmatpush1.bf16.msra.mxu0 %v3696_v38  ;;  %v2139_v38 = vld [vmem:[#allocation35 + $0xb8] sm:$0xff] }
 0xc2b   :  { %3699 = vmatprep.subr.bf16.mxu0 %v3698_v39  ;;  %v3642_v40 = vpack.c.bf16 %v2139_v38, %v2137_v37  ;;  %v2331_v37 = vld [vmem:[#allocation38] sm:$0x3] }
 0xc2c   :  { %v2336_v38 = vrot.slane %v2331_v37, %v5193_v9 }
 0xc2e   :  { %3701 = vmatpush1.bf16.msra.mxu0 %v3700_v44  ;;  %v2143_v44 = vld [vmem:[#allocation35 + $0xd8] sm:$0xff] }
 0xc2f   :  { %3703 = vmatprep.subr.bf16.mxu0 %v3702_v45  ;;  %v3644_v45 = vpack.c.bf16 %v2138_v42, %v2136_v41  ;;  %v3646_v46 = vpack.c.bf16 %v2143_v44, %v2141_v43 }
 0xc32   :  { %3705 = vmatpush1.bf16.msra.mxu0 %v3704_v50  ;;  %v2147_v50 = vld [vmem:[#allocation35 + $0xf8] sm:$0xff] }
 0xc33   :  { %3707 = vmatprep.subr.bf16.mxu0 %v3706_v51  ;;  %v3648_v51 = vpack.c.bf16 %v2142_v48, %v2140_v47  ;;  %v3650_v52 = vpack.c.bf16 %v2147_v50, %v2145_v49  ;;  %v2520_v48 = vld [vmem:[#allocation41 + $0x80] sm:$0xff]  ;;  %v2521_v49 = vld [vmem:[#allocation41 + $0x88] sm:$0xff] }
 0xc34   :  { %v3743_v50 = vpack.c.bf16 %v2521_v49, %v2520_v48  ;;  %v2784_v48 = vld [vmem:[#allocation47 + $0x10] sm:$0xff]  ;;  %v2785_v49 = vld [vmem:[#allocation47 + $0x18] sm:$0xff] }
 0xc36   :  { %3709 = vmatpush1.bf16.msra.mxu0 %v3708_v54  ;;  %v2146_v54 = vld [vmem:[#allocation35 + $0xf0] sm:$0xff] }
 0xcc4   :  { %v1835_v57 = vpop.f32.mrb[8].mxu0 }
 0xcc5   :  { %v1836_v58 = vadd.f32 %v2955_v55, %v1835_v57  ;;  %v3115_v59 = vpop.f32.mrb[9].mxu0  ;;  %v3652_v55 = vpack.c.bf16 %v2146_v54, %v2144_v53  ;;  %v2149_v57 = vld [vmem:[#allocation35 + $0x108] sm:$0x1f] }
 0xcc6   :  { %v3903_v59 = vld.sshfl [vmem:[%s5561_s28] sm:$0x33 pattern:$0x76325410] }
 0xcc7   :  { %v2964_v60 = vmul.f32 -1.442695, %v1836_v58  ;;  %v2148_v58 = vld [vmem:[#allocation35 + $0x100] sm:$0x1f]  ;;  %v2608_v54 = vld [vmem:[#allocation44] sm:$0xff] }
 0xcc9   :  { %3899 = vpow2.f32 %v2964_v60  ;;  %v2408_v60 = vld [vmem:[%s5563_s7 + $0x1c8] sm:$0xff] }
 0xcd3   :  { %v3900_v56 = vpop.eup %3899 }
 0xcd4   :  { %v2111_v62 = vadd.f32 1.0, %v3900_v56  ;;  %v2104_v2 = vpop.f32.mrb[10].mxu0  ;;  %v2410_v56 = vld [vmem:[%s5563_s7 + $0x1d8] sm:$0xff] }
 0xcd5   :  { %v3170_v3 = vpop.f32.mrb[11].mxu0  ;;  %v2105_v12 = vadd.f32 %v2962_v4, %v2104_v2  ;;  %v2407_v2 = vld [vmem:[%s5563_s7 + $0x1c0] sm:$0xff] }
 0xcd6   :  { %3901 = vrcp.f32 %v2111_v62  ;;  %v3710_v62 = vpack.c.bf16 %v2410_v56, %v2408_v60  ;;  %v2409_v3 = vld [vmem:[%s5563_s7 + $0x1d0] sm:$0xff]  ;;  %v2612_v56 = vld [vmem:[#allocation44 + $0x20] sm:$0xff] }
 0xcd7   :  { %v3712_v4 = vpack.c.bf16 %v2409_v3, %v2407_v2  ;;  %v2614_v3 = vld [vmem:[#allocation44 + $0x30] sm:$0xff] }
 0xcd8   :  { %3711 = vmatprep.subr.bf16.mxu0 %v3710_v62  ;;  %v2613_v62 = vld [vmem:[#allocation44 + $0x28] sm:$0xff] }
 0xcd9   :  { %3713 = vmatpush1.bf16.msra.mxu0 %v3712_v4  ;;  %v3755_v2 = vpack.c.bf16 %v2613_v62, %v2612_v56  ;;  %v2615_v4 = vld [vmem:[#allocation44 + $0x38] sm:$0xff] }
 0xce0   :  { %v3902_v7 = vpop.eup %3901 }
 0xce1   :  { %v2114_v13 = vmul.f32 %v3902_v7, %v5263_v1  ;;  %v2131_v1 = vld [vmem:[#allocation35 + $0x78] sm:$0xff]  ;;  %v3714_v7 = vpack.c.bf16 %v2414_v6, %v2412_v5  ;;  %v3758_v5 = vpack.c.bf16 %v2615_v4, %v2614_v3  ;;  %v2616_v6 = vld [vmem:[#allocation44 + $0x40] sm:$0xff] }
 0xce2   :  { %v3634_v26 = vpack.c.bf16 %v2131_v1, %v2129_v24  ;;  %v2512_v24 = vld [vmem:[#allocation41 + $0x40] sm:$0xff]  ;;  %v2513_v1 = vld [vmem:[#allocation41 + $0x48] sm:$0xff] }
 0xce3   :  { %v2115_v15 = vadd.f32 %v2114_v13, %v2105_v12  ;;  %v3716_v12 = vpack.c.bf16 %v2413_v10, %v2411_v8  ;;  %3715 = vmatprep.subr.bf16.mxu0 %v3714_v7  ;;  %v2504_v13 = vld [vmem:[#allocation41] sm:$0xff]  ;;  %v2617_v7 = vld [vmem:[#allocation44 + $0x48] sm:$0xff]  ;;  %v2618_v10 = vld [vmem:[#allocation44 + $0x50] sm:$0xff] }
 0xce4   :  { %v3761_v8 = vpack.c.bf16 %v2617_v7, %v2616_v6 }
 0xce5   :  { %2965 = vmatmul.mubr.msk.f32.vlgmr.msra.gmra.mrb[12].mxu1 %vm1210_vm8, %v2115_v15  ;;  %3717 = vmatpush1.bf16.msra.mxu0 %v3716_v12  ;;  %v2506_v15 = vld [vmem:[#allocation41 + $0x10] sm:$0xff]  ;;  %v2619_v12 = vld [vmem:[#allocation44 + $0x58] sm:$0xff] }
 0xce6   :  { %3625 = vmatpush1.bf16.msra.mxu1 %v3624_v14  ;;  %2968 = vmatprep.mubr.msk.f32.mxu1 %vm1295_vm9, %v5261_v63  ;;  %v2134_v63 = vld [vmem:[#allocation35 + $0x90] sm:$0xff]  ;;  %v3722_v18 = vpack.c.bf16 %v2507_v17, %v2506_v15  ;;  %v2415_v17 = vld [vmem:[#allocation40] sm:$0x3] }
 0xce7   :  { %3627 = vmatprep.subr.bf16.mxu1 %v3626_v16  ;;  %v3640_v39 = vpack.c.bf16 %v2134_v63, %v2132_v36  ;;  %3748 = vmatprep.subr.bf16.mxu0 %v4694_v0  ;;  %v2505_v14 = vld [vmem:[#allocation41 + $0x8] sm:$0xff]  ;;  %v2519_v36 = vld [vmem:[#allocation41 + $0x78] sm:$0xff] }
 0xce8   :  { %v3719_v16 = vpack.c.bf16 %v2505_v14, %v2504_v13  ;;  %v3764_v13 = vpack.c.bf16 %v2619_v12, %v2618_v10  ;;  %v2620_v14 = vld [vmem:[#allocation44 + $0x60] sm:$0xff]  ;;  %v2621_v15 = vld [vmem:[#allocation44 + $0x68] sm:$0xff] }
 0xcea   :  { %3629 = vmatpush1.bf16.msra.mxu1 %v3628_v21  ;;  %v3725_v21 = vpack.c.bf16 %v2509_v20, %v2508_v19  ;;  %v2424_v19 = vrot.slane %v2415_v17, %v5195_v11 }
 0xceb   :  { %3631 = vmatprep.subr.bf16.mxu1 %v3630_v22  ;;  %v2510_v22 = vld [vmem:[#allocation41 + $0x30] sm:$0xff] }
 0xcec   :  { %v3728_v23 = vpack.c.bf16 %v2511_v61, %v2510_v22 }
 0xcee   :  { %3633 = vmatpush1.bf16.msra.mxu1 %v3632_v25  ;;  %v3731_v25 = vpack.c.bf16 %v2513_v1, %v2512_v24 }
 0xcef   :  { %3635 = vmatprep.subr.bf16.mxu1 %v3634_v26  ;;  %v2514_v26 = vld [vmem:[#allocation41 + $0x50] sm:$0xff] }
 0xcf0   :  { %v3734_v29 = vpack.c.bf16 %v2515_v28, %v2514_v26  ;;  %v2623_v26 = vld [vmem:[#allocation44 + $0x78] sm:$0xff] }
 0xcf1   :  { %v2969_v28 = vld [vmem:[#allocation43] ss:$0 sm:$0xff] }
 0xcf2   :  { %3637 = vmatpush1.bf16.msra.mxu1 %v3636_v33  ;;  %v3737_v33 = vpack.c.bf16 %v2517_v32, %v2516_v30  ;;  %v2701_v30 = vld [vmem:[%s4888_s25] sm:$0xff]  ;;  %v2702_v32 = vld [vmem:[%s4888_s25 + $0x8] sm:$0xff] }
 0xcf3   :  { %3639 = vmatprep.subr.bf16.mxu1 %v3638_v34  ;;  %v2518_v34 = vld [vmem:[#allocation41 + $0x70] sm:$0xff] }
 0xcf4   :  { %v3740_v63 = vpack.c.bf16 %v2519_v36, %v2518_v34 }
 0xcf6   :  { %3641 = vmatpush1.bf16.msra.mxu1 %v3640_v39  ;;  %v2340_v39 = vrot.slane %v2331_v37, %v5195_v11  ;;  %v2703_v37 = vld [vmem:[%s4888_s25 + $0x10] sm:$0xff] }
 0xcf7   :  { %3643 = vmatprep.subr.bf16.mxu1 %v3642_v40 }
 0xcfa   :  { %3645 = vmatpush1.bf16.msra.mxu1 %v3644_v45 }
 0xcfb   :  { %3647 = vmatprep.subr.bf16.mxu1 %v3646_v46 }
 0xcfe   :  { %3649 = vmatpush1.bf16.msra.mxu1 %v3648_v51  ;;  %v2522_v51 = vld [vmem:[#allocation41 + $0x90] sm:$0xff] }
 0xcff   :  { %3651 = vmatprep.subr.bf16.mxu1 %v3650_v52  ;;  %v2523_v52 = vld [vmem:[#allocation41 + $0x98] sm:$0xff] }
 0xd00   :  { %v3746_v53 = vpack.c.bf16 %v2523_v52, %v2522_v51  ;;  %v2786_v51 = vld [vmem:[#allocation47 + $0x20] sm:$0xff]  ;;  %v2787_v52 = vld [vmem:[#allocation47 + $0x28] sm:$0xff] }
 0xd02   :  { %3653 = vmatpush1.bf16.msra.mxu1 %v3652_v55  ;;  %v2609_v55 = vld [vmem:[#allocation44 + $0x8] sm:$0xff] }
 0xd03   :  { %2966 = vmatprep.subr.msk.mxu1 %vm1298_vm10, %v2149_v57  ;;  %v2610_v57 = vld [vmem:[#allocation44 + $0x10] sm:$0xff] }
 0xd06   :  { %2967 = vmatpush1.msk.msra.mxu1 %vm1298_vm10, %v2148_v58  ;;  %v3749_v58 = vpack.c.bf16 %v2609_v55, %v2608_v54  ;;  %v2788_v54 = vld [vmem:[#allocation47 + $0x30] sm:$0x3] }
 0xd07   :  { %2325 = vmatmul.mubr.f32.vlgmr.msra.gmra.mrb[12].mxu1 %v3903_v59  ;;  %3718 = vmatprep.subr.bf16.mxu1 %v4694_v0  ;;  %v2611_v59 = vld [vmem:[#allocation44 + $0x18] sm:$0xff] }
 0xd08   :  { %3720 = vmatpush1.bf16.msra.mxu1 %v3719_v16  ;;  %v3752_v60 = vpack.c.bf16 %v2611_v59, %v2610_v57  ;;  %v3767_v16 = vpack.c.bf16 %v2621_v15, %v2620_v14 }
 0xd09   :  { %3721 = vmatprep.subr.bf16.mxu1 %v4694_v0 }
 0xd0c   :  { %3723 = vmatpush1.bf16.msra.mxu1 %v3722_v18  ;;  %v2420_v18 = vrot.slane %v2415_v17, %v5193_v9  ;;  %v2622_v9 = vld [vmem:[#allocation44 + $0x70] sm:$0xff] }
 0xd0d   :  { %3724 = vmatprep.subr.bf16.mxu1 %v4694_v0  ;;  %v3770_v11 = vpack.c.bf16 %v2623_v26, %v2622_v9 }
 0xd10   :  { %3726 = vmatpush1.bf16.msra.mxu1 %v3725_v21 }
 0xd11   :  { %3727 = vmatprep.subr.bf16.mxu1 %v4694_v0 }
 0xd14   :  { %3729 = vmatpush1.bf16.msra.mxu1 %v3728_v23 }
 0xd15   :  { %3730 = vmatprep.subr.bf16.mxu1 %v4694_v0 }
 0xd18   :  { %3732 = vmatpush1.bf16.msra.mxu1 %v3731_v25 }
 0xd19   :  { %3733 = vmatprep.subr.bf16.mxu1 %v4694_v0 }
 0xd1c   :  { %3735 = vmatpush1.bf16.msra.mxu1 %v3734_v29 }
 0xd1d   :  { %3736 = vmatprep.subr.bf16.mxu1 %v4694_v0 }
 0xd20   :  { %3738 = vmatpush1.bf16.msra.mxu1 %v3737_v33 }
 0xd21   :  { %3739 = vmatprep.subr.bf16.mxu1 %v4694_v0 }
 0xd24   :  { %3741 = vmatpush1.bf16.msra.mxu1 %v3740_v63  ;;  %v3773_v63 = vpack.c.bf16 %v2702_v32, %v2701_v30 }
 0xd25   :  { %3742 = vmatprep.subr.bf16.mxu1 %v4694_v0 }
 0xd28   :  { %3744 = vmatpush1.bf16.msra.mxu1 %v3743_v50  ;;  %v3785_v50 = vpack.c.bf16 %v2785_v49, %v2784_v48 }
 0xd29   :  { %3745 = vmatprep.subr.bf16.mxu1 %v4694_v0 }
 0xd2c   :  { %3747 = vmatpush1.bf16.msra.mxu1 %v3746_v53  ;;  %v3788_v53 = vpack.c.bf16 %v2787_v52, %v2786_v51 }
 0xdda   :  { %v2326_v40 = vpop.f32.mrb[12].mxu1 }
 0xddb   :  { %v2343_v41 = vadd.f32 %v2336_v38, %v2326_v40  ;;  %v2328_v42 = vpop.f32.mrb[13].mxu1  ;;  %v2704_v38 = vld [vmem:[%s4888_s25 + $0x18] sm:$0xff] }
 0xddc   :  { %v2344_v43 = vadd.f32 %v2340_v39, %v2328_v42  ;;  %v3776_v40 = vpack.c.bf16 %v2704_v38, %v2703_v37  ;;  %v2706_v42 = vld [vmem:[%s4888_s25 + $0x28] sm:$0xff] }
 0xddd   :  { %v2347_v44 = vmul.f32 0.01, %v2343_v41  ;;  %vm2345_vm3 = vcmp.gt.f32.partialorder %v2343_v41, 0.0 }
 0xdde   :  { %v2348_v45 = vmul.f32 0.01, %v2344_v43  ;;  %vm2346_vm4 = vcmp.gt.f32.partialorder %v2344_v43, 0.0 }
 0xddf   :  { %v2349_v47 = vsel %vm2345_vm3, %v2343_v41, %v2347_v44  ;;  %v2705_v41 = vld [vmem:[%s4888_s25 + $0x20] sm:$0xff] }
 0xde0   :  { %v2350_v46 = vsel %vm2346_vm4, %v2344_v43, %v2348_v45  ;;  %v3779_v43 = vpack.c.bf16 %v2706_v42, %v2705_v41  ;;  %v2782_v44 = vld [vmem:[#allocation47] sm:$0xff]  ;;  %v2783_v45 = vld [vmem:[#allocation47 + $0x8] sm:$0xff] }
 0xde1   :  { %2491 = vmatprep.mubr.f32.mxu0 %v2350_v46  ;;  %v2707_v46 = vld [vmem:[%s4888_s25 + $0x30] sm:$0x3]  ;;  %s4699_s25 = smov [#allocation49]  }
 0xde2   :  { %2492 = vmatmul.mubr.f32.vlgmr.msra.gmra.mrb[12].mxu0 %v2349_v47  ;;  %v3782_v47 = vpack.c.bf16 %v2783_v45, %v2782_v44  ;;  %s2870_s14 = sshll.u32 %s4699_s25, 4  ;;  %s2871_s14 = int_to_ptr.vmem [resolvable:$true] %s2870_s14 }
 0xde3   :  { %3203 = vmatprep.mubr.msk.f32.mxu0 %vm4698_vm14, %v4695_v35  ;;  %3750 = vmatpush3.bf16.msra.mxu0 %v3749_v58  ;;  %s4564_s10 = scalar_lea.vmem %s2871_s14, 32  ;;  %p4569_p3 = scmp.lt.s32.totalorder %s2871_s14, %s2871_s14 }
 0xde4   :  { %3751 = vmatprep.subr.bf16.mxu0 %v4694_v0  ;;  %p4565_p2 = scmp.ne.s32.totalorder %s2871_s14, %s4564_s10  ;;  %p4570_p4 = scmp.lt.s32.totalorder %s4564_s10, %s4564_s10 }
 0xde6   :  { %p4571_p5 = por %p4570_p4, %p4569_p3 }
 0xde7   :  { %3753 = vmatpush3.bf16.msra.mxu0 %v3752_v60 }
 0xde8   :  { %3754 = vmatprep.subr.bf16.mxu0 %v4694_v0  ;;  %p4572_p6 = pnand %p4571_p5, %p4565_p2 }
 0xdeb   :  { %3756 = vmatpush3.bf16.msra.mxu0 %v3755_v2 }
 0xdec   :  { %3757 = vmatprep.subr.bf16.mxu0 %v4694_v0 }
 0xdef   :  { %3759 = vmatpush3.bf16.msra.mxu0 %v3758_v5 }
 0xdf0   :  { %3760 = vmatprep.subr.bf16.mxu0 %v4694_v0 }
 0xdf3   :  { %3762 = vmatpush3.bf16.msra.mxu0 %v3761_v8 }
 0xdf4   :  { %3763 = vmatprep.subr.bf16.mxu0 %v4694_v0 }
 0xdf7   :  { %3765 = vmatpush3.bf16.msra.mxu0 %v3764_v13 }
 0xdf8   :  { %3766 = vmatprep.subr.bf16.mxu0 %v4694_v0 }
 0xdfb   :  { %3768 = vmatpush3.bf16.msra.mxu0 %v3767_v16 }
 0xdfc   :  { %3769 = vmatprep.subr.bf16.mxu0 %v4694_v0 }
 0xdff   :  { %3771 = vmatpush3.bf16.msra.mxu0 %v3770_v11 }
 0xe00   :  { %3772 = vmatprep.subr.bf16.mxu0 %v4694_v0 }
 0xeb5   :  { %v2493_v20 = vpop.f32.mrb[12].mxu0 }
 0xeb6   :  { %v2494_v21 = vadd.f32 %v2493_v20, %v2420_v18  ;;  %v2495_v22 = vpop.f32.mrb[13].mxu0 }
 0xeb7   :  { %v2496_v61 = vadd.f32 %v2495_v22, %v2424_v19 }
 0xeb8   :  { %v2500_v23 = vmul.f32 0.01, %v2494_v21  ;;  %vm2498_vm5 = vcmp.gt.f32.partialorder %v2494_v21, 0.0 }
 0xeb9   :  { %vm2499_vm6 = vcmp.gt.f32.partialorder %v2496_v61, 0.0  ;;  %v2501_v24 = vmul.f32 0.01, %v2496_v61 }
 0xeba   :  { %v2502_v25 = vsel %vm2498_vm5, %v2494_v21, %v2500_v23 }
 0xebb   :  { %v2503_v1 = vsel %vm2499_vm6, %v2496_v61, %v2501_v24 }
 0xebc   :  { %2970 = vmatprep.mubr.msk.f32.mxu1 %vm2531_vm7, %v2503_v1 }
 0xebd   :  { %2600 = vmatmul.mubr.f32.vlgmr.msra.gmra.mrb[14].mxu1 %v2502_v25 }
 0xf90   :  { %v2601_v29 = vpop.f32.mrb[14].mxu1 }
 0xf91   :  { %v2602_v33 = vadd.f32 %v2969_v28, %v2601_v29  ;;  %v2603_v34 = vpop.f32.mrb[15].mxu1 }
 0xf93   :  { %vm2605_vm8 = vcmp.gt.f32.partialorder %v2602_v33, 0.0  ;;  %v2606_v36 = vmul.f32 0.01, %v2602_v33 }
 0xf95   :  { %v2607_v39 = vsel %vm2605_vm8, %v2602_v33, %v2606_v36 }
 0xf96   :  { %3204 = vmatmul.mubr.f32.vlgmr.msra.gmra.mrb[14].mxu0 %v2607_v39 }
 0xf97   :  { %3774 = vmatpush3.bf16.msra.mxu0 %v3773_v63  ;;  %3220 = vmatprep.mubr.msk.f32.mxu0 %vm4698_vm14, %v4695_v35 }
 0xf98   :  { %3775 = vmatprep.subr.bf16.mxu0 %v4694_v0 }
 0xf9b   :  { %3777 = vmatpush3.bf16.msra.mxu0 %v3776_v40 }
 0xf9c   :  { %3778 = vmatprep.subr.bf16.mxu0 %v4694_v0 }
 0xf9f   :  { %3780 = vmatpush3.bf16.msra.mxu0 %v3779_v43 }
 0xfa0   :  { %3218 = vmatprep.subr.mxu0 %v4695_v35 }
 0xfa3   :  { %3219 = vmatpush3.msk.msra.mxu0 %vm1455_vm11, %v2707_v46 }
 0xfa4   :  { %3221 = vmatmul.mubr.msk.f32.vlgmr.msra.gmra.mrb[14].mxu0 %vm1452_vm13, %v5311_v31  ;;  %3781 = vmatprep.subr.bf16.mxu0 %v4694_v0  ;;  %v2971_v31 = vld [vmem:[#allocation46] ss:$0 sm:$0xff] }
 0xfa5   :  { %3783 = vmatpush3.bf16.msra.mxu0 %v3782_v47  ;;  %3237 = vmatprep.mubr.msk.f32.mxu0 %vm4698_vm14, %v4695_v35 }
 0xfa6   :  { %3784 = vmatprep.subr.bf16.mxu0 %v4694_v0 }
 0xfa9   :  { %3786 = vmatpush3.bf16.msra.mxu0 %v3785_v50 }
 0xfaa   :  { %3787 = vmatprep.subr.bf16.mxu0 %v4694_v0 }
 0xfad   :  { %3789 = vmatpush3.bf16.msra.mxu0 %v3788_v53 }
 0xfae   :  { %3235 = vmatprep.subr.mxu0 %v4695_v35 }
 0xfb1   :  { %3236 = vmatpush3.msk.msra.mxu0 %vm1455_vm11, %v2788_v54 }
 0xfb2   :  { %3238 = vmatmul.mubr.msk.f32.vlgmr.msra.gmra.mrb[14].mxu0 %vm1452_vm13, %v5340_v27 }
0x1085   :  { %v2858_v55 = vpop.f32.mrb[14].mxu0 }
0x1086   :  { %v3792_v57 = vadd.f32 %v2971_v31, %v2858_v55  ;;  %v3239_v58 = vpop.f32.mrb[15].mxu0 }
0x1088   :  { %2863 = vst [vmem:[#allocation49] sm:$0x3] %v3792_v57 }
0x1089   :  { %4575 = shalt.err (!%p4572_p6)
}
0x108a   :  { %s4576_s11 = scalar_lea.hbm %s4898_s13, 32 }
0x108b   :  { %p4577_p7 = scmp.ne.s32.totalorder %s4898_s13, %s4576_s11  ;;  %p4580_p8 = scmp.lt.u32.totalorder %s4576_s11, %s4898_s13 }
0x108d   :  { %p4582_p9 = pnand %p4580_p8, %p4577_p7 }
0x108f   :  { %4585 = shalt.err (!%p4582_p9)
}
0x1090   :  { %2873 = dma.vmem_to_hbm [thread:$0]  %s2871_s14, 32, %s4898_s13, [#allocation4]  }
0x1091   :  { %4618 = dma.done.wait [#allocation4], 32  }
0x1092   :  { %4619 = vsyncadd [#allocation4], 4294967264 }
0x1093   :  { %2877 = vsyncpa [#allocation3], 1 }
0x1094   :  { %2878 = vsyncpa [#allocation6], 1 }
0x1095   :  { %2879 = vsyncpa [#allocation9], 1 }
0x1096   :  { %2880 = vsyncpa [#allocation12], 1 }
0x1097   :  { %2881 = vsyncpa [#allocation15], 1 }
0x1098   :  { %2882 = vsyncpa [#allocation18], 1 }
0x1099   :  { %2883 = vsyncpa [#allocation21], 1 }
0x109a   :  { %2884 = vsyncpa [#allocation24], 1 }
0x109b   :  { %2885 = vsyncpa [#allocation27], 1 }
0x109c   :  { %2886 = vsyncpa [#allocation30], 1 }
0x109d   :  { %2887 = vsyncpa [#allocation33], 1 }
0x109e   :  { %2888 = vsyncpa [#allocation36], 1 }
0x109f   :  { %2889 = vsyncpa [#allocation39], 1 }
0x10a0   :  { %2890 = vsyncpa [#allocation42], 1 }
0x10a1   :  { %2891 = vsyncpa [#allocation45], 1 }
0x10a2   :  { %2892 = vsyncpa [#allocation48], 1 }
0x10a3   :  { %2893 = vsyncpa [#allocation4], 1 }

</bundles_post_ra>
